<compile_context>
chip_gen: v7x
topology: tpu7x:2x2x1
jax: 0.10.0
libtpu: 0.0.40
codegen_flags: <defaults>
</compile_context>

<pallas_src>
import functools

import jax
import jax.numpy as jnp
import numpy as np
from jax.experimental import pallas as pl
from jax.experimental.pallas import tpu as pltpu

_BN_EPS = 1e-5
_LANE = 128
_VMEM_LIMIT = 48 * 1024 * 1024


def _round_up(v, m):
    return (v + m - 1) // m * m


def _pick_tile(total, target):
    """Largest tile <= target that divides `total` and keeps the sublane rule happy."""
    if total <= target:
        return total
    for t in range(target, 7, -1):
        if total % t == 0 and t % 8 == 0:
            return t
    return total


def _cparams():
    return pltpu.CompilerParams(dimension_semantics=("parallel",),
                                vmem_limit_bytes=_VMEM_LIMIT)


# ----------------------------- Pallas kernels ------------------------------ #

def _maxpool_kernel(xe_ref, xo_ref, o_ref):
    # xe/xo: (TB, 2, W2, C) = even/odd W columns, dim 1 is the H parity.
    a = jnp.maximum(xe_ref[:, 0, :, :], xo_ref[:, 0, :, :])
    b = jnp.maximum(xe_ref[:, 1, :, :], xo_ref[:, 1, :, :])
    o_ref[...] = jnp.maximum(a, b).astype(o_ref.dtype)


def _conv3x3_stats_kernel(xpf_ref, w_ref, mask_ref, y_ref, s1_ref, s2_ref, *, wp):
    # xpf_ref : (1, (H2+2)*wp + 8, Cin) f32 -- padded image, rows flattened as (h, w)
    # w_ref   : (9, Cin, CoutP) bf16        -- 3x3 taps as 9 matmul weights
    # mask_ref: (H2*wp, 1) f32              -- 1 for valid pixels, 0 for W-pad columns
    # y_ref   : (1, H2*wp, CoutP) f32       -- conv output in the same padded-row layout
    # s1/s2   : (1, 1, CoutP) f32           -- per-image masked sum / sum of squares
    rows = y_ref.shape[1]
    acc = None
    for t in range(9):
        dy, dx = divmod(t, 3)
        lhs = xpf_ref[0, pl.ds(dy * wp + dx, rows), :].astype(jnp.bfloat16)
        part = jnp.dot(lhs, w_ref[t], preferred_element_type=jnp.float32)
        acc = part if acc is None else acc + part
    y_ref[0] = acc
    masked = acc * mask_ref[...]
    s1_ref[0] = jnp.sum(masked, axis=0, keepdims=True)
    s2_ref[0] = jnp.sum(masked * acc, axis=0, keepdims=True)


def _bn_relu_kernel(y_ref, sc_ref, sh_ref, o_ref):
    # y * scale + shift -> ReLU, per (TM, CoutP) tile.
    o_ref[...] = jnp.maximum(y_ref[...] * sc_ref[...] + sh_ref[...],
                             0.0).astype(o_ref.dtype)


def _bn_relu_res1x1_kernel(y_ref, sc_ref, sh_ref, p_ref, w1_ref, b1_ref, o_ref):
    # Last layer: BN+ReLU fused with the 1x1-conv residual branch and the add.
    act = jnp.maximum(y_ref[...] * sc_ref[...] + sh_ref[...], 0.0)
    res = jnp.dot(p_ref[...].astype(jnp.bfloat16), w1_ref[...],
                  preferred_element_type=jnp.float32)
    o_ref[...] = (act + res + b1_ref[...]).astype(o_ref.dtype)


# ------------------------------ Pallas wrappers ----------------------------- #

def _maxpool2(x_nhwc):
    """MaxPool2d(2); the 2x2 max runs in a tiled Pallas kernel."""
    n, h, w, c = x_nhwc.shape
    h2, w2 = h // 2, w // 2
    rows = n * h2
    # TODO(synk): the stride-2 W tap split stays an XLA slice (H parity handled
    #             in-kernel) to avoid relying on strided sublane slicing in Mosaic.
    xe = x_nhwc[:, :, 0::2, :].reshape(rows, 2, w2, c)
    xo = x_nhwc[:, :, 1::2, :].reshape(rows, 2, w2, c)
    tb = _pick_tile(rows, 256)
    pooled = pl.pallas_call(
        _maxpool_kernel,
        out_shape=jax.ShapeDtypeStruct((rows, w2, c), jnp.float32),
        grid=(rows // tb,),
        in_specs=[pl.BlockSpec((tb, 2, w2, c), lambda i: (i, 0, 0, 0)),
                  pl.BlockSpec((tb, 2, w2, c), lambda i: (i, 0, 0, 0))],
        out_specs=pl.BlockSpec((tb, w2, c), lambda i: (i, 0, 0)),
        compiler_params=_cparams(),
    )(xe, xo)
    return pooled.reshape(n, h2, w2, c)


def _conv3x3_batch_stats(act, w9, cout_p):
    """Pass 1: 3x3 conv (tap-accumulated matmuls) + per-image BN partial sums."""
    n, h2, w2, cin = act.shape
    wp = w2 + 2
    rows = h2 * wp
    xp = jnp.pad(act, ((0, 0), (1, 1), (1, 1), (0, 0)))           # SAME padding
    xpf = xp.reshape(n, (h2 + 2) * wp, cin)
    xpf = jnp.pad(xpf, ((0, 0), (0, 8), (0, 0)))                  # slack for corner taps
    mask = ((jnp.arange(rows) % wp) < w2).astype(jnp.float32).reshape(rows, 1)

    kernel = functools.partial(_conv3x3_stats_kernel, wp=wp)
    y, s1, s2 = pl.pallas_call(
        kernel,
        out_shape=(jax.ShapeDtypeStruct((n, rows, cout_p), jnp.float32),
                   jax.ShapeDtypeStruct((n, 1, cout_p), jnp.float32),
                   jax.ShapeDtypeStruct((n, 1, cout_p), jnp.float32)),
        grid=(n,),
        in_specs=[pl.BlockSpec((1, (h2 + 2) * wp + 8, cin), lambda b: (b, 0, 0)),
                  pl.BlockSpec((9, cin, cout_p), lambda b: (0, 0, 0)),
                  pl.BlockSpec((rows, 1), lambda b: (0, 0))],
        out_specs=(pl.BlockSpec((1, rows, cout_p), lambda b: (b, 0, 0)),
                   pl.BlockSpec((1, 1, cout_p), lambda b: (b, 0, 0)),
                   pl.BlockSpec((1, 1, cout_p), lambda b: (b, 0, 0))),
        compiler_params=_cparams(),
    )(xpf, w9, mask)
    return y, s1, s2


def downblock_forward(x_nchw, params, out_channels):
    x = jnp.transpose(x_nchw, (0, 2, 3, 1))            # NCHW -> NHWC (f32)
    pooled = _maxpool2(x)                              # (N, H2, W2, Cin)
    n, h2, w2, cin = pooled.shape
    wp = w2 + 2
    m_pad = n * h2 * wp
    m_valid = n * h2 * w2
    cout_p = params["w1"].shape[1]

    act = pooled
    n_layers = len(params["nconvs"])
    out_flat = None
    for li, layer in enumerate(params["nconvs"]):
        y, s1, s2 = _conv3x3_batch_stats(act, layer["w"], cout_p)

        # Training-mode BatchNorm: batch statistics (biased variance, eps=1e-5).
        mean = jnp.sum(s1[:, 0, :], axis=0) / m_valid
        var = jnp.sum(s2[:, 0, :], axis=0) / m_valid - mean * mean
        scale = (layer["gamma"] * jax.lax.rsqrt(var + _BN_EPS)).reshape(1, cout_p)
        shift = layer["beta"].reshape(1, cout_p) - mean.reshape(1, cout_p) * scale

        y_flat = y.reshape(m_pad, cout_p)
        tm = _pick_tile(m_pad, 512)
        grid = (m_pad // tm,)
        if li < n_layers - 1:
            act_flat = pl.pallas_call(
                _bn_relu_kernel,
                out_shape=jax.ShapeDtypeStruct((m_pad, cout_p), jnp.float32),
                grid=grid,
                in_specs=[pl.BlockSpec((tm, cout_p), lambda i: (i, 0)),
                          pl.BlockSpec((1, cout_p), lambda i: (0, 0)),
                          pl.BlockSpec((1, cout_p), lambda i: (0, 0))],
                out_specs=pl.BlockSpec((tm, cout_p), lambda i: (i, 0)),
                compiler_params=_cparams(),
            )(y_flat, scale, shift)
            # drop the padded-W columns before the next layer re-pads spatially
            act = act_flat.reshape(n, h2, wp, cout_p)[:, :, :w2, :]
        else:
            # residual (1x1 conv of the pooled input) in the same padded-row layout
            pooled_pad = jnp.pad(pooled, ((0, 0), (0, 0), (0, wp - w2), (0, 0)))
            pooled_flat = pooled_pad.reshape(m_pad, cin)
            out_flat = pl.pallas_call(
                _bn_relu_res1x1_kernel,
                out_shape=jax.ShapeDtypeStruct((m_pad, cout_p), jnp.float32),
                grid=grid,
                in_specs=[pl.BlockSpec((tm, cout_p), lambda i: (i, 0)),
                          pl.BlockSpec((1, cout_p), lambda i: (0, 0)),
                          pl.BlockSpec((1, cout_p), lambda i: (0, 0)),
                          pl.BlockSpec((tm, cin), lambda i: (i, 0)),
                          pl.BlockSpec((cin, cout_p), lambda i: (0, 0)),
                          pl.BlockSpec((1, cout_p), lambda i: (0, 0))],
                out_specs=pl.BlockSpec((tm, cout_p), lambda i: (i, 0)),
                compiler_params=_cparams(),
            )(y_flat, scale, shift, pooled_flat, params["w1"], params["b1"])

    out = out_flat.reshape(n, h2, wp, cout_p)[:, :, :w2, :out_channels]
    return jnp.transpose(out, (0, 3, 1, 2))            # NHWC -> NCHW


# --------------------------- params & reference ----------------------------- #

def init_params(key, in_channels, out_channels, nb_conv):
    """Raw float32 parameters matching the PyTorch module layout."""
    ks = jax.random.split(key, 2 + 4 * nb_conv)
    params = {
        "w1": 0.1 * jax.random.normal(ks[0], (in_channels, out_channels), jnp.float32),
        "b1": 0.1 * jax.random.normal(ks[1], (out_channels,), jnp.float32),
        "nconvs": [],
    }
    cin = in_channels
    for i in range(nb_conv):
        k0, k1, k2, k3 = ks[2 + 4 * i: 6 + 4 * i]
        params["nconvs"].append({
            "w": 0.1 * jax.random.normal(k0, (3, 3, cin, out_channels), jnp.float32),
            "b": 0.1 * jax.random.normal(k1, (out_channels,), jnp.float32),
            "gamma": 1.0 + 0.1 * jax.random.normal(k2, (out_channels,), jnp.float32),
            "beta": 0.1 * jax.random.normal(k3, (out_channels,), jnp.float32),
        })
        cin = out_channels
    return params


def prepare_params(raw):
    """Pad output channels to the 128-lane width and cast matmul weights to bf16."""
    cin0, cout = raw["w1"].shape
    cout_p = _round_up(cout, _LANE)
    prep = {
        "w1": jnp.pad(raw["w1"], ((0, 0), (0, cout_p - cout))).astype(jnp.bfloat16),
        "b1": jnp.pad(raw["b1"], (0, cout_p - cout)).reshape(1, cout_p).astype(jnp.float32),
        "nconvs": [],
    }
    for i, lyr in enumerate(raw["nconvs"]):
        w = lyr["w"]                                   # (3, 3, cin_l, cout), HWIO
        cin_l = w.shape[2]
        in_pad = 0 if i == 0 else (cout_p - cin_l)     # later layers see padded acts
        w_p = jnp.pad(w, ((0, 0), (0, 0), (0, in_pad), (0, cout_p - cout)))
        prep["nconvs"].append({
            # conv bias is dropped on purpose: cancelled exactly by BN mean subtraction
            "w": w_p.reshape(9, cin_l + in_pad, cout_p).astype(jnp.bfloat16),
            "gamma": jnp.pad(lyr["gamma"], (0, cout_p - cout)).astype(jnp.float32),
            "beta": jnp.pad(lyr["beta"], (0, cout_p - cout)).astype(jnp.float32),
        })
    return prep


def reference_forward(x_nchw, params):
    """Pure-JAX f32 reference (independent of the Pallas path)."""
    x = jnp.transpose(x_nchw, (0, 2, 3, 1))
    pooled = jax.lax.reduce_window(x, -jnp.inf, jax.lax.max,
                                   (1, 2, 2, 1), (1, 2, 2, 1), "VALID")

    def cbr(h, layer):
        y = jax.lax.conv_general_dilated(
            h, layer["w"], (1, 1), "SAME",
            dimension_numbers=("NHWC", "HWIO", "NHWC"))
        y = y + layer["b"]
        mean = jnp.mean(y, axis=(0, 1, 2), keepdims=True)
        var = jnp.mean((y - mean) ** 2, axis=(0, 1, 2), keepdims=True)
        y = layer["gamma"] * (y - mean) / jnp.sqrt(var + _BN_EPS) + layer["beta"]
        return jnp.maximum(y, 0.0)

    out = pooled
    for layer in params["nconvs"]:
        out = cbr(out, layer)
    x0 = jnp.einsum("nhwc,cd->nhwd", pooled, params["w1"]) + params["b1"]
    return jnp.transpose(x0 + out, (0, 3, 1, 2))


# --------------------------------- main ------------------------------------ #

if __name__ == "__main__":
    key = jax.random.PRNGKey(0)
    kx, kp = jax.random.split(key)

    N, C_IN, C_OUT, H, W, NB_CONV = 2, 4, 8, 16, 16, 2
    x = jax.random.normal(kx, (N, C_IN, H, W), jnp.float32)
    raw_params = init_params(kp, C_IN, C_OUT, NB_CONV)
    kernel_params = prepare_params(raw_params)

    fwd = jax.jit(downblock_forward, static_argnums=(2,))
    out = jax.block_until_ready(fwd(x, kernel_params, C_OUT))
    assert out.shape == (N, C_OUT, H // 2, W // 2), out.shape

    ref = jax.block_until_ready(reference_forward(x, raw_params))
    err = float(np.max(np.abs(np.asarray(out) - np.asarray(ref))))
    # bf16 MXU operands -> allow small drift vs. the f32 reference
    assert np.allclose(np.asarray(out), np.asarray(ref), atol=2e-2, rtol=2e-2), err

    print("KERNEL_OK")
</pallas_src>

<mosaic_0001>
module attributes {stable_mosaic.version = 11 : i64} {
  func.func @_maxpool_kernel(%arg0: i32, %arg1: memref<16x2x8x4xf32, #tpu.memory_space<vmem>>, %arg2: memref<16x2x8x4xf32, #tpu.memory_space<vmem>>, %arg3: memref<16x8x4xf32, #tpu.memory_space<vmem>>) attributes {dimension_semantics = [#tpu.dimension_semantics<parallel>], iteration_bounds = array<i64: 1>, scalar_prefetch = 0 : i64, scratch_operands = 0 : i64, tpu.core_type = #tpu.core_type<tc>, window_params = [{transform_indices = @transform_0, window_bounds = array<i64: 16, 2, 8, 4>}, {transform_indices = @transform_1, window_bounds = array<i64: 16, 2, 8, 4>}, {transform_indices = @transform_2, window_bounds = array<i64: 16, 8, 4>}]} {
    %c0 = arith.constant 0 : index
    %c0_0 = arith.constant 0 : index
    %c0_1 = arith.constant 0 : index
    %c0_2 = arith.constant 0 : index
    %0 = vector.load %arg1[%c0, %c0_0, %c0_1, %c0_2] : memref<16x2x8x4xf32, #tpu.memory_space<vmem>>, vector<16x1x8x4xf32>
    %1 = vector.shape_cast %0 : vector<16x1x8x4xf32> to vector<16x8x4xf32>
    %c0_3 = arith.constant 0 : index
    %c0_4 = arith.constant 0 : index
    %c0_5 = arith.constant 0 : index
    %c0_6 = arith.constant 0 : index
    %2 = vector.load %arg2[%c0_3, %c0_4, %c0_5, %c0_6] : memref<16x2x8x4xf32, #tpu.memory_space<vmem>>, vector<16x1x8x4xf32>
    %3 = vector.shape_cast %2 : vector<16x1x8x4xf32> to vector<16x8x4xf32>
    %4 = arith.maximumf %1, %3 : vector<16x8x4xf32>
    %c0_7 = arith.constant 0 : index
    %c1 = arith.constant 1 : index
    %c0_8 = arith.constant 0 : index
    %c0_9 = arith.constant 0 : index
    %5 = vector.load %arg1[%c0_7, %c1, %c0_8, %c0_9] : memref<16x2x8x4xf32, #tpu.memory_space<vmem>>, vector<16x1x8x4xf32>
    %6 = vector.shape_cast %5 : vector<16x1x8x4xf32> to vector<16x8x4xf32>
    %c0_10 = arith.constant 0 : index
    %c1_11 = arith.constant 1 : index
    %c0_12 = arith.constant 0 : index
    %c0_13 = arith.constant 0 : index
    %7 = vector.load %arg2[%c0_10, %c1_11, %c0_12, %c0_13] : memref<16x2x8x4xf32, #tpu.memory_space<vmem>>, vector<16x1x8x4xf32>
    %8 = vector.shape_cast %7 : vector<16x1x8x4xf32> to vector<16x8x4xf32>
    %9 = arith.maximumf %6, %8 : vector<16x8x4xf32>
    %10 = arith.maximumf %4, %9 : vector<16x8x4xf32>
    %c0_14 = arith.constant 0 : index
    %c0_15 = arith.constant 0 : index
    %c0_16 = arith.constant 0 : index
    %11 = vector.load %arg3[%c0_14, %c0_15, %c0_16] : memref<16x8x4xf32, #tpu.memory_space<vmem>>, vector<16x8x4xf32>
    tpu.vector_store %arg3[%c0_14, %c0_15, %c0_16], %10 {strides = array<i32>} : memref<16x8x4xf32, #tpu.memory_space<vmem>>, vector<16x8x4xf32>,
    return
  }
  func.func @transform_0(%arg0: i32) -> (i32, i32, i32, i32) {
    %c0_i32 = arith.constant 0 : i32
    %c0_i32_0 = arith.constant 0 : i32
    %c0_i32_1 = arith.constant 0 : i32
    %c0_i32_2 = arith.constant 0 : i32
    return %arg0, %c0_i32, %c0_i32_0, %c0_i32_1 : i32, i32, i32, i32
  }
  func.func @transform_1(%arg0: i32) -> (i32, i32, i32, i32) {
    %c0_i32 = arith.constant 0 : i32
    %c0_i32_0 = arith.constant 0 : i32
    %c0_i32_1 = arith.constant 0 : i32
    %c0_i32_2 = arith.constant 0 : i32
    return %arg0, %c0_i32, %c0_i32_0, %c0_i32_1 : i32, i32, i32, i32
  }
  func.func @transform_2(%arg0: i32) -> (i32, i32, i32) {
    %c0_i32 = arith.constant 0 : i32
    %c0_i32_0 = arith.constant 0 : i32
    %c0_i32_1 = arith.constant 0 : i32
    return %arg0, %c0_i32, %c0_i32_0 : i32, i32, i32
  }
}

module attributes {stable_mosaic.version = 11 : i64} {
  func.func @_conv3x3_stats_kernel(%arg0: i32, %arg1: memref<1x108x4xf32, #tpu.memory_space<vmem>>, %arg2: memref<9x4x128xbf16, #tpu.memory_space<vmem>>, %arg3: memref<80x1xf32, #tpu.memory_space<vmem>>, %arg4: memref<1x80x128xf32, #tpu.memory_space<vmem>>, %arg5: memref<1x1x128xf32, #tpu.memory_space<vmem>>, %arg6: memref<1x1x128xf32, #tpu.memory_space<vmem>>) attributes {dimension_semantics = [#tpu.dimension_semantics<parallel>], iteration_bounds = array<i64: 2>, scalar_prefetch = 0 : i64, scratch_operands = 0 : i64, tpu.core_type = #tpu.core_type<tc>, window_params = [{transform_indices = @transform_0, window_bounds = array<i64: 1, 108, 4>}, {pipeline_mode = #tpu.pipeline_mode<synchronous>, transform_indices = @transform_1, window_bounds = array<i64: 9, 4, 128>}, {pipeline_mode = #tpu.pipeline_mode<synchronous>, transform_indices = @transform_2, window_bounds = array<i64: 80, 1>}, {transform_indices = @transform_3, window_bounds = array<i64: 1, 80, 128>}, {transform_indices = @transform_4, window_bounds = array<i64: 1, 1, 128>}, {transform_indices = @transform_5, window_bounds = array<i64: 1, 1, 128>}]} {
    %c0 = arith.constant 0 : index
    %c0_0 = arith.constant 0 : index
    %c0_1 = arith.constant 0 : index
    %0 = vector.load %arg1[%c0, %c0_0, %c0_1] : memref<1x108x4xf32, #tpu.memory_space<vmem>>, vector<1x80x4xf32>
    %1 = vector.shape_cast %0 : vector<1x80x4xf32> to vector<80x4xf32>
    %2 = arith.truncf %1 : vector<80x4xf32> to vector<80x4xbf16>
    %c0_2 = arith.constant 0 : index
    %c0_3 = arith.constant 0 : index
    %c0_4 = arith.constant 0 : index
    %3 = vector.load %arg2[%c0_2, %c0_3, %c0_4] : memref<9x4x128xbf16, #tpu.memory_space<vmem>>, vector<1x4x128xbf16>
    %4 = vector.shape_cast %3 : vector<1x4x128xbf16> to vector<4x128xbf16>
    %cst = arith.constant dense<0.000000e+00> : vector<80x128xf32>
    %5 = tpu.matmul %2, %4, %cst {dimension_numbers = #tpu.dot_dimension_numbers<[1], [0], [0], [1], [0, 0, 1, 1], [], []>} : vector<80x4xbf16>, vector<4x128xbf16>, vector<80x128xf32> -> vector<80x128xf32>
    %c0_5 = arith.constant 0 : index
    %c1 = arith.constant 1 : index
    %c0_6 = arith.constant 0 : index
    %6 = vector.load %arg1[%c0_5, %c1, %c0_6] : memref<1x108x4xf32, #tpu.memory_space<vmem>>, vector<1x80x4xf32>
    %7 = vector.shape_cast %6 : vector<1x80x4xf32> to vector<80x4xf32>
    %8 = arith.truncf %7 : vector<80x4xf32> to vector<80x4xbf16>
    %c1_7 = arith.constant 1 : index
    %c0_8 = arith.constant 0 : index
    %c0_9 = arith.constant 0 : index
    %9 = vector.load %arg2[%c1_7, %c0_8, %c0_9] : memref<9x4x128xbf16, #tpu.memory_space<vmem>>, vector<1x4x128xbf16>
    %10 = vector.shape_cast %9 : vector<1x4x128xbf16> to vector<4x128xbf16>
    %cst_10 = arith.constant dense<0.000000e+00> : vector<80x128xf32>
    %11 = tpu.matmul %8, %10, %cst_10 {dimension_numbers = #tpu.dot_dimension_numbers<[1], [0], [0], [1], [0, 0, 1, 1], [], []>} : vector<80x4xbf16>, vector<4x128xbf16>, vector<80x128xf32> -> vector<80x128xf32>
    %12 = arith.addf %5, %11 : vector<80x128xf32>
    %c0_11 = arith.constant 0 : index
    %c2 = arith.constant 2 : index
    %c0_12 = arith.constant 0 : index
    %13 = vector.load %arg1[%c0_11, %c2, %c0_12] : memref<1x108x4xf32, #tpu.memory_space<vmem>>, vector<1x80x4xf32>
    %14 = vector.shape_cast %13 : vector<1x80x4xf32> to vector<80x4xf32>
    %15 = arith.truncf %14 : vector<80x4xf32> to vector<80x4xbf16>
    %c2_13 = arith.constant 2 : index
    %c0_14 = arith.constant 0 : index
    %c0_15 = arith.constant 0 : index
    %16 = vector.load %arg2[%c2_13, %c0_14, %c0_15] : memref<9x4x128xbf16, #tpu.memory_space<vmem>>, vector<1x4x128xbf16>
    %17 = vector.shape_cast %16 : vector<1x4x128xbf16> to vector<4x128xbf16>
    %cst_16 = arith.constant dense<0.000000e+00> : vector<80x128xf32>
    %18 = tpu.matmul %15, %17, %cst_16 {dimension_numbers = #tpu.dot_dimension_numbers<[1], [0], [0], [1], [0, 0, 1, 1], [], []>} : vector<80x4xbf16>, vector<4x128xbf16>, vector<80x128xf32> -> vector<80x128xf32>
    %19 = arith.addf %12, %18 : vector<80x128xf32>
    %c0_17 = arith.constant 0 : index
    %c10 = arith.constant 10 : index
    %c0_18 = arith.constant 0 : index
    %20 = vector.load %arg1[%c0_17, %c10, %c0_18] : memref<1x108x4xf32, #tpu.memory_space<vmem>>, vector<1x80x4xf32>
    %21 = vector.shape_cast %20 : vector<1x80x4xf32> to vector<80x4xf32>
    %22 = arith.truncf %21 : vector<80x4xf32> to vector<80x4xbf16>
    %c3 = arith.constant 3 : index
    %c0_19 = arith.constant 0 : index
    %c0_20 = arith.constant 0 : index
    %23 = vector.load %arg2[%c3, %c0_19, %c0_20] : memref<9x4x128xbf16, #tpu.memory_space<vmem>>, vector<1x4x128xbf16>
    %24 = vector.shape_cast %23 : vector<1x4x128xbf16> to vector<4x128xbf16>
    %cst_21 = arith.constant dense<0.000000e+00> : vector<80x128xf32>
    %25 = tpu.matmul %22, %24, %cst_21 {dimension_numbers = #tpu.dot_dimension_numbers<[1], [0], [0], [1], [0, 0, 1, 1], [], []>} : vector<80x4xbf16>, vector<4x128xbf16>, vector<80x128xf32> -> vector<80x128xf32>
    %26 = arith.addf %19, %25 : vector<80x128xf32>
    %c0_22 = arith.constant 0 : index
    %c11 = arith.constant 11 : index
    %c0_23 = arith.constant 0 : index
    %27 = vector.load %arg1[%c0_22, %c11, %c0_23] : memref<1x108x4xf32, #tpu.memory_space<vmem>>, vector<1x80x4xf32>
    %28 = vector.shape_cast %27 : vector<1x80x4xf32> to vector<80x4xf32>
    %29 = arith.truncf %28 : vector<80x4xf32> to vector<80x4xbf16>
    %c4 = arith.constant 4 : index
    %c0_24 = arith.constant 0 : index
    %c0_25 = arith.constant 0 : index
    %30 = vector.load %arg2[%c4, %c0_24, %c0_25] : memref<9x4x128xbf16, #tpu.memory_space<vmem>>, vector<1x4x128xbf16>
    %31 = vector.shape_cast %30 : vector<1x4x128xbf16> to vector<4x128xbf16>
    %cst_26 = arith.constant dense<0.000000e+00> : vector<80x128xf32>
    %32 = tpu.matmul %29, %31, %cst_26 {dimension_numbers = #tpu.dot_dimension_numbers<[1], [0], [0], [1], [0, 0, 1, 1], [], []>} : vector<80x4xbf16>, vector<4x128xbf16>, vector<80x128xf32> -> vector<80x128xf32>
    %33 = arith.addf %26, %32 : vector<80x128xf32>
    %c0_27 = arith.constant 0 : index
    %c12 = arith.constant 12 : index
    %c0_28 = arith.constant 0 : index
    %34 = vector.load %arg1[%c0_27, %c12, %c0_28] : memref<1x108x4xf32, #tpu.memory_space<vmem>>, vector<1x80x4xf32>
    %35 = vector.shape_cast %34 : vector<1x80x4xf32> to vector<80x4xf32>
    %36 = arith.truncf %35 : vector<80x4xf32> to vector<80x4xbf16>
    %c5 = arith.constant 5 : index
    %c0_29 = arith.constant 0 : index
    %c0_30 = arith.constant 0 : index
    %37 = vector.load %arg2[%c5, %c0_29, %c0_30] : memref<9x4x128xbf16, #tpu.memory_space<vmem>>, vector<1x4x128xbf16>
    %38 = vector.shape_cast %37 : vector<1x4x128xbf16> to vector<4x128xbf16>
    %cst_31 = arith.constant dense<0.000000e+00> : vector<80x128xf32>
    %39 = tpu.matmul %36, %38, %cst_31 {dimension_numbers = #tpu.dot_dimension_numbers<[1], [0], [0], [1], [0, 0, 1, 1], [], []>} : vector<80x4xbf16>, vector<4x128xbf16>, vector<80x128xf32> -> vector<80x128xf32>
    %40 = arith.addf %33, %39 : vector<80x128xf32>
    %c0_32 = arith.constant 0 : index
    %c20 = arith.constant 20 : index
    %c0_33 = arith.constant 0 : index
    %41 = vector.load %arg1[%c0_32, %c20, %c0_33] : memref<1x108x4xf32, #tpu.memory_space<vmem>>, vector<1x80x4xf32>
    %42 = vector.shape_cast %41 : vector<1x80x4xf32> to vector<80x4xf32>
    %43 = arith.truncf %42 : vector<80x4xf32> to vector<80x4xbf16>
    %c6 = arith.constant 6 : index
    %c0_34 = arith.constant 0 : index
    %c0_35 = arith.constant 0 : index
    %44 = vector.load %arg2[%c6, %c0_34, %c0_35] : memref<9x4x128xbf16, #tpu.memory_space<vmem>>, vector<1x4x128xbf16>
    %45 = vector.shape_cast %44 : vector<1x4x128xbf16> to vector<4x128xbf16>
    %cst_36 = arith.constant dense<0.000000e+00> : vector<80x128xf32>
    %46 = tpu.matmul %43, %45, %cst_36 {dimension_numbers = #tpu.dot_dimension_numbers<[1], [0], [0], [1], [0, 0, 1, 1], [], []>} : vector<80x4xbf16>, vector<4x128xbf16>, vector<80x128xf32> -> vector<80x128xf32>
    %47 = arith.addf %40, %46 : vector<80x128xf32>
    %c0_37 = arith.constant 0 : index
    %c21 = arith.constant 21 : index
    %c0_38 = arith.constant 0 : index
    %48 = vector.load %arg1[%c0_37, %c21, %c0_38] : memref<1x108x4xf32, #tpu.memory_space<vmem>>, vector<1x80x4xf32>
    %49 = vector.shape_cast %48 : vector<1x80x4xf32> to vector<80x4xf32>
    %50 = arith.truncf %49 : vector<80x4xf32> to vector<80x4xbf16>
    %c7 = arith.constant 7 : index
    %c0_39 = arith.constant 0 : index
    %c0_40 = arith.constant 0 : index
    %51 = vector.load %arg2[%c7, %c0_39, %c0_40] : memref<9x4x128xbf16, #tpu.memory_space<vmem>>, vector<1x4x128xbf16>
    %52 = vector.shape_cast %51 : vector<1x4x128xbf16> to vector<4x128xbf16>
    %cst_41 = arith.constant dense<0.000000e+00> : vector<80x128xf32>
    %53 = tpu.matmul %50, %52, %cst_41 {dimension_numbers = #tpu.dot_dimension_numbers<[1], [0], [0], [1], [0, 0, 1, 1], [], []>} : vector<80x4xbf16>, vector<4x128xbf16>, vector<80x128xf32> -> vector<80x128xf32>
    %54 = arith.addf %47, %53 : vector<80x128xf32>
    %c0_42 = arith.constant 0 : index
    %c22 = arith.constant 22 : index
    %c0_43 = arith.constant 0 : index
    %55 = vector.load %arg1[%c0_42, %c22, %c0_43] : memref<1x108x4xf32, #tpu.memory_space<vmem>>, vector<1x80x4xf32>
    %56 = vector.shape_cast %55 : vector<1x80x4xf32> to vector<80x4xf32>
    %57 = arith.truncf %56 : vector<80x4xf32> to vector<80x4xbf16>
    %c8 = arith.constant 8 : index
    %c0_44 = arith.constant 0 : index
    %c0_45 = arith.constant 0 : index
    %58 = vector.load %arg2[%c8, %c0_44, %c0_45] : memref<9x4x128xbf16, #tpu.memory_space<vmem>>, vector<1x4x128xbf16>
    %59 = vector.shape_cast %58 : vector<1x4x128xbf16> to vector<4x128xbf16>
    %cst_46 = arith.constant dense<0.000000e+00> : vector<80x128xf32>
    %60 = tpu.matmul %57, %59, %cst_46 {dimension_numbers = #tpu.dot_dimension_numbers<[1], [0], [0], [1], [0, 0, 1, 1], [], []>} : vector<80x4xbf16>, vector<4x128xbf16>, vector<80x128xf32> -> vector<80x128xf32>
    %61 = arith.addf %54, %60 : vector<80x128xf32>
    %c0_47 = arith.constant 0 : index
    %c0_48 = arith.constant 0 : index
    %c0_49 = arith.constant 0 : index
    %62 = vector.load %arg4[%c0_47, %c0_48, %c0_49] : memref<1x80x128xf32, #tpu.memory_space<vmem>>, vector<1x80x128xf32>
    %63 = vector.shape_cast %62 : vector<1x80x128xf32> to vector<80x128xf32>
    %64 = vector.shape_cast %61 : vector<80x128xf32> to vector<1x80x128xf32>
    tpu.vector_store %arg4[%c0_47, %c0_48, %c0_49], %64 {strides = array<i32>} : memref<1x80x128xf32, #tpu.memory_space<vmem>>, vector<1x80x128xf32>,
    %c0_50 = arith.constant 0 : index
    %c0_51 = arith.constant 0 : index
    %65 = vector.load %arg3[%c0_50, %c0_51] : memref<80x1xf32, #tpu.memory_space<vmem>>, vector<80x1xf32>
    %66 = vector.broadcast %65 : vector<80x1xf32> to vector<80x128xf32>
    %67 = arith.mulf %61, %66 : vector<80x128xf32>
    %cst_52 = arith.constant dense<0.000000e+00> : vector<128xf32>
    %68 = vector.multi_reduction <add>, %67, %cst_52 [0] : vector<80x128xf32> to vector<128xf32>
    %69 = vector.shape_cast %68 : vector<128xf32> to vector<1x128xf32>
    %c0_53 = arith.constant 0 : index
    %c0_54 = arith.constant 0 : index
    %c0_55 = arith.constant 0 : index
    %70 = vector.load %arg5[%c0_53, %c0_54, %c0_55] : memref<1x1x128xf32, #tpu.memory_space<vmem>>, vector<1x1x128xf32>
    %71 = vector.shape_cast %70 : vector<1x1x128xf32> to vector<1x128xf32>
    %72 = vector.shape_cast %69 : vector<1x128xf32> to vector<1x1x128xf32>
    tpu.vector_store %arg5[%c0_53, %c0_54, %c0_55], %72 {strides = array<i32>} : memref<1x1x128xf32, #tpu.memory_space<vmem>>, vector<1x1x128xf32>,
    %73 = arith.mulf %67, %61 : vector<80x128xf32>
    %cst_56 = arith.constant dense<0.000000e+00> : vector<128xf32>
    %74 = vector.multi_reduction <add>, %73, %cst_56 [0] : vector<80x128xf32> to vector<128xf32>
    %75 = vector.shape_cast %74 : vector<128xf32> to vector<1x128xf32>
    %c0_57 = arith.constant 0 : index
    %c0_58 = arith.constant 0 : index
    %c0_59 = arith.constant 0 : index
    %76 = vector.load %arg6[%c0_57, %c0_58, %c0_59] : memref<1x1x128xf32, #tpu.memory_space<vmem>>, vector<1x1x128xf32>
    %77 = vector.shape_cast %76 : vector<1x1x128xf32> to vector<1x128xf32>
    %78 = vector.shape_cast %75 : vector<1x128xf32> to vector<1x1x128xf32>
    tpu.vector_store %arg6[%c0_57, %c0_58, %c0_59], %78 {strides = array<i32>} : memref<1x1x128xf32, #tpu.memory_space<vmem>>, vector<1x1x128xf32>,
    return
  }
  func.func @transform_0(%arg0: i32) -> (i32, i32, i32) {
    %c0_i32 = arith.constant 0 : i32
    %c0_i32_0 = arith.constant 0 : i32
    %c0_i32_1 = arith.constant 0 : i32
    return %arg0, %c0_i32, %c0_i32_0 : i32, i32, i32
  }
  func.func @transform_1(%arg0: i32) -> (i32, i32, i32) {
    %c0_i32 = arith.constant 0 : i32
    %c0_i32_0 = arith.constant 0 : i32
    %c0_i32_1 = arith.constant 0 : i32
    %c0_i32_2 = arith.constant 0 : i32
    return %c0_i32, %c0_i32_0, %c0_i32_1 : i32, i32, i32
  }
  func.func @transform_2(%arg0: i32) -> (i32, i32) {
    %c0_i32 = arith.constant 0 : i32
    %c0_i32_0 = arith.constant 0 : i32
    %c0_i32_1 = arith.constant 0 : i32
    return %c0_i32, %c0_i32_0 : i32, i32
  }
  func.func @transform_3(%arg0: i32) -> (i32, i32, i32) {
    %c0_i32 = arith.constant 0 : i32
    %c0_i32_0 = arith.constant 0 : i32
    %c0_i32_1 = arith.constant 0 : i32
    return %arg0, %c0_i32, %c0_i32_0 : i32, i32, i32
  }
  func.func @transform_4(%arg0: i32) -> (i32, i32, i32) {
    %c0_i32 = arith.constant 0 : i32
    %c0_i32_0 = arith.constant 0 : i32
    %c0_i32_1 = arith.constant 0 : i32
    return %arg0, %c0_i32, %c0_i32_0 : i32, i32, i32
  }
  func.func @transform_5(%arg0: i32) -> (i32, i32, i32) {
    %c0_i32 = arith.constant 0 : i32
    %c0_i32_0 = arith.constant 0 : i32
    %c0_i32_1 = arith.constant 0 : i32
    return %arg0, %c0_i32, %c0_i32_0 : i32, i32, i32
  }
}

module attributes {stable_mosaic.version = 11 : i64} {
  func.func @_bn_relu_kernel(%arg0: i32, %arg1: memref<160x128xf32, #tpu.memory_space<vmem>>, %arg2: memref<1x128xf32, #tpu.memory_space<vmem>>, %arg3: memref<1x128xf32, #tpu.memory_space<vmem>>, %arg4: memref<160x128xf32, #tpu.memory_space<vmem>>) attributes {dimension_semantics = [#tpu.dimension_semantics<parallel>], iteration_bounds = array<i64: 1>, scalar_prefetch = 0 : i64, scratch_operands = 0 : i64, tpu.core_type = #tpu.core_type<tc>, window_params = [{transform_indices = @transform_0, window_bounds = array<i64: 160, 128>}, {pipeline_mode = #tpu.pipeline_mode<synchronous>, transform_indices = @transform_1, window_bounds = array<i64: 1, 128>}, {pipeline_mode = #tpu.pipeline_mode<synchronous>, transform_indices = @transform_2, window_bounds = array<i64: 1, 128>}, {transform_indices = @transform_3, window_bounds = array<i64: 160, 128>}]} {
    %c0 = arith.constant 0 : index
    %c0_0 = arith.constant 0 : index
    %0 = vector.load %arg1[%c0, %c0_0] : memref<160x128xf32, #tpu.memory_space<vmem>>, vector<160x128xf32>
    %c0_1 = arith.constant 0 : index
    %c0_2 = arith.constant 0 : index
    %1 = vector.load %arg2[%c0_1, %c0_2] : memref<1x128xf32, #tpu.memory_space<vmem>>, vector<1x128xf32>
    %2 = vector.broadcast %1 : vector<1x128xf32> to vector<160x128xf32>
    %3 = arith.mulf %0, %2 : vector<160x128xf32>
    %c0_3 = arith.constant 0 : index
    %c0_4 = arith.constant 0 : index
    %4 = vector.load %arg3[%c0_3, %c0_4] : memref<1x128xf32, #tpu.memory_space<vmem>>, vector<1x128xf32>
    %5 = vector.broadcast %4 : vector<1x128xf32> to vector<160x128xf32>
    %6 = arith.addf %3, %5 : vector<160x128xf32>
    %cst = arith.constant 0.000000e+00 : f32
    %7 = vector.broadcast %cst : f32 to vector<160x128xf32>
    %8 = arith.maximumf %6, %7 : vector<160x128xf32>
    %c0_5 = arith.constant 0 : index
    %c0_6 = arith.constant 0 : index
    %9 = vector.load %arg4[%c0_5, %c0_6] : memref<160x128xf32, #tpu.memory_space<vmem>>, vector<160x128xf32>
    tpu.vector_store %arg4[%c0_5, %c0_6], %8 {strides = array<i32>} : memref<160x128xf32, #tpu.memory_space<vmem>>, vector<160x128xf32>,
    return
  }
  func.func @transform_0(%arg0: i32) -> (i32, i32) {
    %c0_i32 = arith.constant 0 : i32
    %c0_i32_0 = arith.constant 0 : i32
    return %arg0, %c0_i32 : i32, i32
  }
  func.func @transform_1(%arg0: i32) -> (i32, i32) {
    %c0_i32 = arith.constant 0 : i32
    %c0_i32_0 = arith.constant 0 : i32
    %c0_i32_1 = arith.constant 0 : i32
    return %c0_i32, %c0_i32_0 : i32, i32
  }
  func.func @transform_2(%arg0: i32) -> (i32, i32) {
    %c0_i32 = arith.constant 0 : i32
    %c0_i32_0 = arith.constant 0 : i32
    %c0_i32_1 = arith.constant 0 : i32
    return %c0_i32, %c0_i32_0 : i32, i32
  }
  func.func @transform_3(%arg0: i32) -> (i32, i32) {
    %c0_i32 = arith.constant 0 : i32
    %c0_i32_0 = arith.constant 0 : i32
    return %arg0, %c0_i32 : i32, i32
  }
}

module attributes {stable_mosaic.version = 11 : i64} {
  func.func @_conv3x3_stats_kernel(%arg0: i32, %arg1: memref<1x108x128xf32, #tpu.memory_space<vmem>>, %arg2: memref<9x128x128xbf16, #tpu.memory_space<vmem>>, %arg3: memref<80x1xf32, #tpu.memory_space<vmem>>, %arg4: memref<1x80x128xf32, #tpu.memory_space<vmem>>, %arg5: memref<1x1x128xf32, #tpu.memory_space<vmem>>, %arg6: memref<1x1x128xf32, #tpu.memory_space<vmem>>) attributes {dimension_semantics = [#tpu.dimension_semantics<parallel>], iteration_bounds = array<i64: 2>, scalar_prefetch = 0 : i64, scratch_operands = 0 : i64, tpu.core_type = #tpu.core_type<tc>, window_params = [{transform_indices = @transform_0, window_bounds = array<i64: 1, 108, 128>}, {pipeline_mode = #tpu.pipeline_mode<synchronous>, transform_indices = @transform_1, window_bounds = array<i64: 9, 128, 128>}, {pipeline_mode = #tpu.pipeline_mode<synchronous>, transform_indices = @transform_2, window_bounds = array<i64: 80, 1>}, {transform_indices = @transform_3, window_bounds = array<i64: 1, 80, 128>}, {transform_indices = @transform_4, window_bounds = array<i64: 1, 1, 128>}, {transform_indices = @transform_5, window_bounds = array<i64: 1, 1, 128>}]} {
    %c0 = arith.constant 0 : index
    %c0_0 = arith.constant 0 : index
    %c0_1 = arith.constant 0 : index
    %0 = vector.load %arg1[%c0, %c0_0, %c0_1] : memref<1x108x128xf32, #tpu.memory_space<vmem>>, vector<1x80x128xf32>
    %1 = vector.shape_cast %0 : vector<1x80x128xf32> to vector<80x128xf32>
    %2 = arith.truncf %1 : vector<80x128xf32> to vector<80x128xbf16>
    %c0_2 = arith.constant 0 : index
    %c0_3 = arith.constant 0 : index
    %c0_4 = arith.constant 0 : index
    %3 = vector.load %arg2[%c0_2, %c0_3, %c0_4] : memref<9x128x128xbf16, #tpu.memory_space<vmem>>, vector<1x128x128xbf16>
    %4 = vector.shape_cast %3 : vector<1x128x128xbf16> to vector<128x128xbf16>
    %cst = arith.constant dense<0.000000e+00> : vector<80x128xf32>
    %5 = tpu.matmul %2, %4, %cst {dimension_numbers = #tpu.dot_dimension_numbers<[1], [0], [0], [1], [0, 0, 1, 1], [], []>} : vector<80x128xbf16>, vector<128x128xbf16>, vector<80x128xf32> -> vector<80x128xf32>
    %c0_5 = arith.constant 0 : index
    %c1 = arith.constant 1 : index
    %c0_6 = arith.constant 0 : index
    %6 = vector.load %arg1[%c0_5, %c1, %c0_6] : memref<1x108x128xf32, #tpu.memory_space<vmem>>, vector<1x80x128xf32>
    %7 = vector.shape_cast %6 : vector<1x80x128xf32> to vector<80x128xf32>
    %8 = arith.truncf %7 : vector<80x128xf32> to vector<80x128xbf16>
    %c1_7 = arith.constant 1 : index
    %c0_8 = arith.constant 0 : index
    %c0_9 = arith.constant 0 : index
    %9 = vector.load %arg2[%c1_7, %c0_8, %c0_9] : memref<9x128x128xbf16, #tpu.memory_space<vmem>>, vector<1x128x128xbf16>
    %10 = vector.shape_cast %9 : vector<1x128x128xbf16> to vector<128x128xbf16>
    %cst_10 = arith.constant dense<0.000000e+00> : vector<80x128xf32>
    %11 = tpu.matmul %8, %10, %cst_10 {dimension_numbers = #tpu.dot_dimension_numbers<[1], [0], [0], [1], [0, 0, 1, 1], [], []>} : vector<80x128xbf16>, vector<128x128xbf16>, vector<80x128xf32> -> vector<80x128xf32>
    %12 = arith.addf %5, %11 : vector<80x128xf32>
    %c0_11 = arith.constant 0 : index
    %c2 = arith.constant 2 : index
    %c0_12 = arith.constant 0 : index
    %13 = vector.load %arg1[%c0_11, %c2, %c0_12] : memref<1x108x128xf32, #tpu.memory_space<vmem>>, vector<1x80x128xf32>
    %14 = vector.shape_cast %13 : vector<1x80x128xf32> to vector<80x128xf32>
    %15 = arith.truncf %14 : vector<80x128xf32> to vector<80x128xbf16>
    %c2_13 = arith.constant 2 : index
    %c0_14 = arith.constant 0 : index
    %c0_15 = arith.constant 0 : index
    %16 = vector.load %arg2[%c2_13, %c0_14, %c0_15] : memref<9x128x128xbf16, #tpu.memory_space<vmem>>, vector<1x128x128xbf16>
    %17 = vector.shape_cast %16 : vector<1x128x128xbf16> to vector<128x128xbf16>
    %cst_16 = arith.constant dense<0.000000e+00> : vector<80x128xf32>
    %18 = tpu.matmul %15, %17, %cst_16 {dimension_numbers = #tpu.dot_dimension_numbers<[1], [0], [0], [1], [0, 0, 1, 1], [], []>} : vector<80x128xbf16>, vector<128x128xbf16>, vector<80x128xf32> -> vector<80x128xf32>
    %19 = arith.addf %12, %18 : vector<80x128xf32>
    %c0_17 = arith.constant 0 : index
    %c10 = arith.constant 10 : index
    %c0_18 = arith.constant 0 : index
    %20 = vector.load %arg1[%c0_17, %c10, %c0_18] : memref<1x108x128xf32, #tpu.memory_space<vmem>>, vector<1x80x128xf32>
    %21 = vector.shape_cast %20 : vector<1x80x128xf32> to vector<80x128xf32>
    %22 = arith.truncf %21 : vector<80x128xf32> to vector<80x128xbf16>
    %c3 = arith.constant 3 : index
    %c0_19 = arith.constant 0 : index
    %c0_20 = arith.constant 0 : index
    %23 = vector.load %arg2[%c3, %c0_19, %c0_20] : memref<9x128x128xbf16, #tpu.memory_space<vmem>>, vector<1x128x128xbf16>
    %24 = vector.shape_cast %23 : vector<1x128x128xbf16> to vector<128x128xbf16>
    %cst_21 = arith.constant dense<0.000000e+00> : vector<80x128xf32>
    %25 = tpu.matmul %22, %24, %cst_21 {dimension_numbers = #tpu.dot_dimension_numbers<[1], [0], [0], [1], [0, 0, 1, 1], [], []>} : vector<80x128xbf16>, vector<128x128xbf16>, vector<80x128xf32> -> vector<80x128xf32>
    %26 = arith.addf %19, %25 : vector<80x128xf32>
    %c0_22 = arith.constant 0 : index
    %c11 = arith.constant 11 : index
    %c0_23 = arith.constant 0 : index
    %27 = vector.load %arg1[%c0_22, %c11, %c0_23] : memref<1x108x128xf32, #tpu.memory_space<vmem>>, vector<1x80x128xf32>
    %28 = vector.shape_cast %27 : vector<1x80x128xf32> to vector<80x128xf32>
    %29 = arith.truncf %28 : vector<80x128xf32> to vector<80x128xbf16>
    %c4 = arith.constant 4 : index
    %c0_24 = arith.constant 0 : index
    %c0_25 = arith.constant 0 : index
    %30 = vector.load %arg2[%c4, %c0_24, %c0_25] : memref<9x128x128xbf16, #tpu.memory_space<vmem>>, vector<1x128x128xbf16>
    %31 = vector.shape_cast %30 : vector<1x128x128xbf16> to vector<128x128xbf16>
    %cst_26 = arith.constant dense<0.000000e+00> : vector<80x128xf32>
    %32 = tpu.matmul %29, %31, %cst_26 {dimension_numbers = #tpu.dot_dimension_numbers<[1], [0], [0], [1], [0, 0, 1, 1], [], []>} : vector<80x128xbf16>, vector<128x128xbf16>, vector<80x128xf32> -> vector<80x128xf32>
    %33 = arith.addf %26, %32 : vector<80x128xf32>
    %c0_27 = arith.constant 0 : index
    %c12 = arith.constant 12 : index
    %c0_28 = arith.constant 0 : index
    %34 = vector.load %arg1[%c0_27, %c12, %c0_28] : memref<1x108x128xf32, #tpu.memory_space<vmem>>, vector<1x80x128xf32>
    %35 = vector.shape_cast %34 : vector<1x80x128xf32> to vector<80x128xf32>
    %36 = arith.truncf %35 : vector<80x128xf32> to vector<80x128xbf16>
    %c5 = arith.constant 5 : index
    %c0_29 = arith.constant 0 : index
    %c0_30 = arith.constant 0 : index
    %37 = vector.load %arg2[%c5, %c0_29, %c0_30] : memref<9x128x128xbf16, #tpu.memory_space<vmem>>, vector<1x128x128xbf16>
    %38 = vector.shape_cast %37 : vector<1x128x128xbf16> to vector<128x128xbf16>
    %cst_31 = arith.constant dense<0.000000e+00> : vector<80x128xf32>
    %39 = tpu.matmul %36, %38, %cst_31 {dimension_numbers = #tpu.dot_dimension_numbers<[1], [0], [0], [1], [0, 0, 1, 1], [], []>} : vector<80x128xbf16>, vector<128x128xbf16>, vector<80x128xf32> -> vector<80x128xf32>
    %40 = arith.addf %33, %39 : vector<80x128xf32>
    %c0_32 = arith.constant 0 : index
    %c20 = arith.constant 20 : index
    %c0_33 = arith.constant 0 : index
    %41 = vector.load %arg1[%c0_32, %c20, %c0_33] : memref<1x108x128xf32, #tpu.memory_space<vmem>>, vector<1x80x128xf32>
    %42 = vector.shape_cast %41 : vector<1x80x128xf32> to vector<80x128xf32>
    %43 = arith.truncf %42 : vector<80x128xf32> to vector<80x128xbf16>
    %c6 = arith.constant 6 : index
    %c0_34 = arith.constant 0 : index
    %c0_35 = arith.constant 0 : index
    %44 = vector.load %arg2[%c6, %c0_34, %c0_35] : memref<9x128x128xbf16, #tpu.memory_space<vmem>>, vector<1x128x128xbf16>
    %45 = vector.shape_cast %44 : vector<1x128x128xbf16> to vector<128x128xbf16>
    %cst_36 = arith.constant dense<0.000000e+00> : vector<80x128xf32>
    %46 = tpu.matmul %43, %45, %cst_36 {dimension_numbers = #tpu.dot_dimension_numbers<[1], [0], [0], [1], [0, 0, 1, 1], [], []>} : vector<80x128xbf16>, vector<128x128xbf16>, vector<80x128xf32> -> vector<80x128xf32>
    %47 = arith.addf %40, %46 : vector<80x128xf32>
    %c0_37 = arith.constant 0 : index
    %c21 = arith.constant 21 : index
    %c0_38 = arith.constant 0 : index
    %48 = vector.load %arg1[%c0_37, %c21, %c0_38] : memref<1x108x128xf32, #tpu.memory_space<vmem>>, vector<1x80x128xf32>
    %49 = vector.shape_cast %48 : vector<1x80x128xf32> to vector<80x128xf32>
    %50 = arith.truncf %49 : vector<80x128xf32> to vector<80x128xbf16>
    %c7 = arith.constant 7 : index
    %c0_39 = arith.constant 0 : index
    %c0_40 = arith.constant 0 : index
    %51 = vector.load %arg2[%c7, %c0_39, %c0_40] : memref<9x128x128xbf16, #tpu.memory_space<vmem>>, vector<1x128x128xbf16>
    %52 = vector.shape_cast %51 : vector<1x128x128xbf16> to vector<128x128xbf16>
    %cst_41 = arith.constant dense<0.000000e+00> : vector<80x128xf32>
    %53 = tpu.matmul %50, %52, %cst_41 {dimension_numbers = #tpu.dot_dimension_numbers<[1], [0], [0], [1], [0, 0, 1, 1], [], []>} : vector<80x128xbf16>, vector<128x128xbf16>, vector<80x128xf32> -> vector<80x128xf32>
    %54 = arith.addf %47, %53 : vector<80x128xf32>
    %c0_42 = arith.constant 0 : index
    %c22 = arith.constant 22 : index
    %c0_43 = arith.constant 0 : index
    %55 = vector.load %arg1[%c0_42, %c22, %c0_43] : memref<1x108x128xf32, #tpu.memory_space<vmem>>, vector<1x80x128xf32>
    %56 = vector.shape_cast %55 : vector<1x80x128xf32> to vector<80x128xf32>
    %57 = arith.truncf %56 : vector<80x128xf32> to vector<80x128xbf16>
    %c8 = arith.constant 8 : index
    %c0_44 = arith.constant 0 : index
    %c0_45 = arith.constant 0 : index
    %58 = vector.load %arg2[%c8, %c0_44, %c0_45] : memref<9x128x128xbf16, #tpu.memory_space<vmem>>, vector<1x128x128xbf16>
    %59 = vector.shape_cast %58 : vector<1x128x128xbf16> to vector<128x128xbf16>
    %cst_46 = arith.constant dense<0.000000e+00> : vector<80x128xf32>
    %60 = tpu.matmul %57, %59, %cst_46 {dimension_numbers = #tpu.dot_dimension_numbers<[1], [0], [0], [1], [0, 0, 1, 1], [], []>} : vector<80x128xbf16>, vector<128x128xbf16>, vector<80x128xf32> -> vector<80x128xf32>
    %61 = arith.addf %54, %60 : vector<80x128xf32>
    %c0_47 = arith.constant 0 : index
    %c0_48 = arith.constant 0 : index
    %c0_49 = arith.constant 0 : index
    %62 = vector.load %arg4[%c0_47, %c0_48, %c0_49] : memref<1x80x128xf32, #tpu.memory_space<vmem>>, vector<1x80x128xf32>
    %63 = vector.shape_cast %62 : vector<1x80x128xf32> to vector<80x128xf32>
    %64 = vector.shape_cast %61 : vector<80x128xf32> to vector<1x80x128xf32>
    tpu.vector_store %arg4[%c0_47, %c0_48, %c0_49], %64 {strides = array<i32>} : memref<1x80x128xf32, #tpu.memory_space<vmem>>, vector<1x80x128xf32>,
    %c0_50 = arith.constant 0 : index
    %c0_51 = arith.constant 0 : index
    %65 = vector.load %arg3[%c0_50, %c0_51] : memref<80x1xf32, #tpu.memory_space<vmem>>, vector<80x1xf32>
    %66 = vector.broadcast %65 : vector<80x1xf32> to vector<80x128xf32>
    %67 = arith.mulf %61, %66 : vector<80x128xf32>
    %cst_52 = arith.constant dense<0.000000e+00> : vector<128xf32>
    %68 = vector.multi_reduction <add>, %67, %cst_52 [0] : vector<80x128xf32> to vector<128xf32>
    %69 = vector.shape_cast %68 : vector<128xf32> to vector<1x128xf32>
    %c0_53 = arith.constant 0 : index
    %c0_54 = arith.constant 0 : index
    %c0_55 = arith.constant 0 : index
    %70 = vector.load %arg5[%c0_53, %c0_54, %c0_55] : memref<1x1x128xf32, #tpu.memory_space<vmem>>, vector<1x1x128xf32>
    %71 = vector.shape_cast %70 : vector<1x1x128xf32> to vector<1x128xf32>
    %72 = vector.shape_cast %69 : vector<1x128xf32> to vector<1x1x128xf32>
    tpu.vector_store %arg5[%c0_53, %c0_54, %c0_55], %72 {strides = array<i32>} : memref<1x1x128xf32, #tpu.memory_space<vmem>>, vector<1x1x128xf32>,
    %73 = arith.mulf %67, %61 : vector<80x128xf32>
    %cst_56 = arith.constant dense<0.000000e+00> : vector<128xf32>
    %74 = vector.multi_reduction <add>, %73, %cst_56 [0] : vector<80x128xf32> to vector<128xf32>
    %75 = vector.shape_cast %74 : vector<128xf32> to vector<1x128xf32>
    %c0_57 = arith.constant 0 : index
    %c0_58 = arith.constant 0 : index
    %c0_59 = arith.constant 0 : index
    %76 = vector.load %arg6[%c0_57, %c0_58, %c0_59] : memref<1x1x128xf32, #tpu.memory_space<vmem>>, vector<1x1x128xf32>
    %77 = vector.shape_cast %76 : vector<1x1x128xf32> to vector<1x128xf32>
    %78 = vector.shape_cast %75 : vector<1x128xf32> to vector<1x1x128xf32>
    tpu.vector_store %arg6[%c0_57, %c0_58, %c0_59], %78 {strides = array<i32>} : memref<1x1x128xf32, #tpu.memory_space<vmem>>, vector<1x1x128xf32>,
    return
  }
  func.func @transform_0(%arg0: i32) -> (i32, i32, i32) {
    %c0_i32 = arith.constant 0 : i32
    %c0_i32_0 = arith.constant 0 : i32
    %c0_i32_1 = arith.constant 0 : i32
    return %arg0, %c0_i32, %c0_i32_0 : i32, i32, i32
  }
  func.func @transform_1(%arg0: i32) -> (i32, i32, i32) {
    %c0_i32 = arith.constant 0 : i32
    %c0_i32_0 = arith.constant 0 : i32
    %c0_i32_1 = arith.constant 0 : i32
    %c0_i32_2 = arith.constant 0 : i32
    return %c0_i32, %c0_i32_0, %c0_i32_1 : i32, i32, i32
  }
  func.func @transform_2(%arg0: i32) -> (i32, i32) {
    %c0_i32 = arith.constant 0 : i32
    %c0_i32_0 = arith.constant 0 : i32
    %c0_i32_1 = arith.constant 0 : i32
    return %c0_i32, %c0_i32_0 : i32, i32
  }
  func.func @transform_3(%arg0: i32) -> (i32, i32, i32) {
    %c0_i32 = arith.constant 0 : i32
    %c0_i32_0 = arith.constant 0 : i32
    %c0_i32_1 = arith.constant 0 : i32
    return %arg0, %c0_i32, %c0_i32_0 : i32, i32, i32
  }
  func.func @transform_4(%arg0: i32) -> (i32, i32, i32) {
    %c0_i32 = arith.constant 0 : i32
    %c0_i32_0 = arith.constant 0 : i32
    %c0_i32_1 = arith.constant 0 : i32
    return %arg0, %c0_i32, %c0_i32_0 : i32, i32, i32
  }
  func.func @transform_5(%arg0: i32) -> (i32, i32, i32) {
    %c0_i32 = arith.constant 0 : i32
    %c0_i32_0 = arith.constant 0 : i32
    %c0_i32_1 = arith.constant 0 : i32
    return %arg0, %c0_i32, %c0_i32_0 : i32, i32, i32
  }
}

module attributes {stable_mosaic.version = 11 : i64} {
  func.func @_bn_relu_res1x1_kernel(%arg0: i32, %arg1: memref<160x128xf32, #tpu.memory_space<vmem>>, %arg2: memref<1x128xf32, #tpu.memory_space<vmem>>, %arg3: memref<1x128xf32, #tpu.memory_space<vmem>>, %arg4: memref<160x4xf32, #tpu.memory_space<vmem>>, %arg5: memref<4x128xbf16, #tpu.memory_space<vmem>>, %arg6: memref<1x128xf32, #tpu.memory_space<vmem>>, %arg7: memref<160x128xf32, #tpu.memory_space<vmem>>) attributes {dimension_semantics = [#tpu.dimension_semantics<parallel>], iteration_bounds = array<i64: 1>, scalar_prefetch = 0 : i64, scratch_operands = 0 : i64, tpu.core_type = #tpu.core_type<tc>, window_params = [{transform_indices = @transform_0, window_bounds = array<i64: 160, 128>}, {pipeline_mode = #tpu.pipeline_mode<synchronous>, transform_indices = @transform_1, window_bounds = array<i64: 1, 128>}, {pipeline_mode = #tpu.pipeline_mode<synchronous>, transform_indices = @transform_2, window_bounds = array<i64: 1, 128>}, {transform_indices = @transform_3, window_bounds = array<i64: 160, 4>}, {pipeline_mode = #tpu.pipeline_mode<synchronous>, transform_indices = @transform_4, window_bounds = array<i64: 4, 128>}, {pipeline_mode = #tpu.pipeline_mode<synchronous>, transform_indices = @transform_5, window_bounds = array<i64: 1, 128>}, {transform_indices = @transform_6, window_bounds = array<i64: 160, 128>}]} {
    %c0 = arith.constant 0 : index
    %c0_0 = arith.constant 0 : index
    %0 = vector.load %arg1[%c0, %c0_0] : memref<160x128xf32, #tpu.memory_space<vmem>>, vector<160x128xf32>
    %c0_1 = arith.constant 0 : index
    %c0_2 = arith.constant 0 : index
    %1 = vector.load %arg2[%c0_1, %c0_2] : memref<1x128xf32, #tpu.memory_space<vmem>>, vector<1x128xf32>
    %2 = vector.broadcast %1 : vector<1x128xf32> to vector<160x128xf32>
    %3 = arith.mulf %0, %2 : vector<160x128xf32>
    %c0_3 = arith.constant 0 : index
    %c0_4 = arith.constant 0 : index
    %4 = vector.load %arg3[%c0_3, %c0_4] : memref<1x128xf32, #tpu.memory_space<vmem>>, vector<1x128xf32>
    %5 = vector.broadcast %4 : vector<1x128xf32> to vector<160x128xf32>
    %6 = arith.addf %3, %5 : vector<160x128xf32>
    %cst = arith.constant 0.000000e+00 : f32
    %7 = vector.broadcast %cst : f32 to vector<160x128xf32>
    %8 = arith.maximumf %6, %7 : vector<160x128xf32>
    %c0_5 = arith.constant 0 : index
    %c0_6 = arith.constant 0 : index
    %9 = vector.load %arg4[%c0_5, %c0_6] : memref<160x4xf32, #tpu.memory_space<vmem>>, vector<160x4xf32>
    %10 = arith.truncf %9 : vector<160x4xf32> to vector<160x4xbf16>
    %c0_7 = arith.constant 0 : index
    %c0_8 = arith.constant 0 : index
    %11 = vector.load %arg5[%c0_7, %c0_8] : memref<4x128xbf16, #tpu.memory_space<vmem>>, vector<4x128xbf16>
    %cst_9 = arith.constant dense<0.000000e+00> : vector<160x128xf32>
    %12 = tpu.matmul %10, %11, %cst_9 {dimension_numbers = #tpu.dot_dimension_numbers<[1], [0], [0], [1], [0, 0, 1, 1], [], []>} : vector<160x4xbf16>, vector<4x128xbf16>, vector<160x128xf32> -> vector<160x128xf32>
    %13 = arith.addf %8, %12 : vector<160x128xf32>
    %c0_10 = arith.constant 0 : index
    %c0_11 = arith.constant 0 : index
    %14 = vector.load %arg6[%c0_10, %c0_11] : memref<1x128xf32, #tpu.memory_space<vmem>>, vector<1x128xf32>
    %15 = vector.broadcast %14 : vector<1x128xf32> to vector<160x128xf32>
    %16 = arith.addf %13, %15 : vector<160x128xf32>
    %c0_12 = arith.constant 0 : index
    %c0_13 = arith.constant 0 : index
    %17 = vector.load %arg7[%c0_12, %c0_13] : memref<160x128xf32, #tpu.memory_space<vmem>>, vector<160x128xf32>
    tpu.vector_store %arg7[%c0_12, %c0_13], %16 {strides = array<i32>} : memref<160x128xf32, #tpu.memory_space<vmem>>, vector<160x128xf32>,
    return
  }
  func.func @transform_0(%arg0: i32) -> (i32, i32) {
    %c0_i32 = arith.constant 0 : i32
    %c0_i32_0 = arith.constant 0 : i32
    return %arg0, %c0_i32 : i32, i32
  }
  func.func @transform_1(%arg0: i32) -> (i32, i32) {
    %c0_i32 = arith.constant 0 : i32
    %c0_i32_0 = arith.constant 0 : i32
    %c0_i32_1 = arith.constant 0 : i32
    return %c0_i32, %c0_i32_0 : i32, i32
  }
  func.func @transform_2(%arg0: i32) -> (i32, i32) {
    %c0_i32 = arith.constant 0 : i32
    %c0_i32_0 = arith.constant 0 : i32
    %c0_i32_1 = arith.constant 0 : i32
    return %c0_i32, %c0_i32_0 : i32, i32
  }
  func.func @transform_3(%arg0: i32) -> (i32, i32) {
    %c0_i32 = arith.constant 0 : i32
    %c0_i32_0 = arith.constant 0 : i32
    return %arg0, %c0_i32 : i32, i32
  }
  func.func @transform_4(%arg0: i32) -> (i32, i32) {
    %c0_i32 = arith.constant 0 : i32
    %c0_i32_0 = arith.constant 0 : i32
    %c0_i32_1 = arith.constant 0 : i32
    return %c0_i32, %c0_i32_0 : i32, i32
  }
  func.func @transform_5(%arg0: i32) -> (i32, i32) {
    %c0_i32 = arith.constant 0 : i32
    %c0_i32_0 = arith.constant 0 : i32
    %c0_i32_1 = arith.constant 0 : i32
    return %c0_i32, %c0_i32_0 : i32, i32
  }
  func.func @transform_6(%arg0: i32) -> (i32, i32) {
    %c0_i32 = arith.constant 0 : i32
    %c0_i32_0 = arith.constant 0 : i32
    return %arg0, %c0_i32 : i32, i32
  }
}

</mosaic_0001>

<bundles_post_ra>
// kernel: downblock_forward.5
= control target key start
LH: loop header
LB: loop body
LE: loop exit
PB: predicated region body
PF: predicated region fallthrough
CT: control target
= control target key end

     0   :  { %vm125_vm0 = vcmask 31744   ;;  %s449_s0 = inlined_call_operand.vmem [shape: f32[16,2,8,4], index: 0, kind: input, shape index: {}]   ;;  %s450_s1 = inlined_call_operand.vmem [shape: f32[16,2,8,4], index: 1, kind: input, shape index: {}]   ;;  %s451_s2 = inlined_call_operand.vmem [shape: f32[16,8,4], index: 2, kind: output, shape index: {}]  }
   0x1   :  { %v11_v0 = vld [vmem:[%s449_s0] sm:$0xff]  ;;  %v146_v2 = vld [vmem:[%s449_s0 + $0x8] sm:$0xff]  ;;  %v12_v5 = vld [vmem:[%s449_s0 + $0x10] sm:$0xff] }
   0x2   :  { %v27_v1 = vld [vmem:[%s450_s1] sm:$0xff]  ;;  %v162_v4 = vld [vmem:[%s450_s1 + $0x8] sm:$0xff]  ;;  %v28_v6 = vld [vmem:[%s450_s1 + $0x10] sm:$0xff] }
   0x3   :  { %v43_v3 = vmax.f32 %v11_v0, %v27_v1  ;;  %v93_v7 = vmax.f32 %v146_v2, %v162_v4  ;;  %v44_v8 = vmax.f32 %v12_v5, %v28_v6  ;;  %v147_v9 = vld [vmem:[%s449_s0 + $0x18] sm:$0xff]  ;;  %v13_v11 = vld [vmem:[%s449_s0 + $0x20] sm:$0xff]  ;;  %v148_v14 = vld [vmem:[%s449_s0 + $0x28] sm:$0xff] }
   0x4   :  { %v163_v10 = vld [vmem:[%s450_s1 + $0x18] sm:$0xff]  ;;  %v29_v13 = vld [vmem:[%s450_s1 + $0x20] sm:$0xff]  ;;  %v164_v15 = vld [vmem:[%s450_s1 + $0x28] sm:$0xff] }
   0x5   :  { %v94_v12 = vmax.f32 %v147_v9, %v163_v10  ;;  %v109_v16 = vmax.f32 %v43_v3, %v93_v7  ;;  %v45_v17 = vmax.f32 %v13_v11, %v29_v13  ;;  %v95_v18 = vmax.f32 %v148_v14, %v164_v15  ;;  %v14_v19 = vld [vmem:[%s449_s0 + $0x30] sm:$0xff]  ;;  %v149_v21 = vld [vmem:[%s449_s0 + $0x38] sm:$0xff]  ;;  %v15_v25 = vld [vmem:[%s449_s0 + $0x40] sm:$0xff] }
   0x6   :  { %v30_v20 = vld [vmem:[%s450_s1 + $0x30] sm:$0xff]  ;;  %v165_v24 = vld [vmem:[%s450_s1 + $0x38] sm:$0xff]  ;;  %v31_v26 = vld [vmem:[%s450_s1 + $0x40] sm:$0xff] }
   0x7   :  { %v110_v22 = vmax.f32 %v44_v8, %v94_v12  ;;  %v46_v23 = vmax.f32 %v14_v19, %v30_v20  ;;  %126 = vst.msk [vmem:[%s451_s2] sm:$0xff] %vm125_vm0, %v109_v16  ;;  %v111_v27 = vmax.f32 %v45_v17, %v95_v18  ;;  %v96_v28 = vmax.f32 %v149_v21, %v165_v24  ;;  %v150_v30 = vld [vmem:[%s449_s0 + $0x48] sm:$0xff]  ;;  %v16_v32 = vld [vmem:[%s449_s0 + $0x50] sm:$0xff]  ;;  %v151_v35 = vld [vmem:[%s449_s0 + $0x58] sm:$0xff] }
   0x8   :  { %v47_v29 = vmax.f32 %v15_v25, %v31_v26  ;;  %v166_v31 = vld [vmem:[%s450_s1 + $0x48] sm:$0xff]  ;;  %v32_v34 = vld [vmem:[%s450_s1 + $0x50] sm:$0xff]  ;;  %v167_v36 = vld [vmem:[%s450_s1 + $0x58] sm:$0xff] }
   0x9   :  { %127 = vst.msk [vmem:[%s451_s2 + $0x8] sm:$0xff] %vm125_vm0, %v110_v22  ;;  %v97_v33 = vmax.f32 %v150_v30, %v166_v31  ;;  %128 = vst.msk [vmem:[%s451_s2 + $0x10] sm:$0xff] %vm125_vm0, %v111_v27  ;;  %v112_v37 = vmax.f32 %v46_v23, %v96_v28  ;;  %v48_v38 = vmax.f32 %v16_v32, %v32_v34  ;;  %v17_v40 = vld [vmem:[%s449_s0 + $0x60] sm:$0xff]  ;;  %v152_v42 = vld [vmem:[%s449_s0 + $0x68] sm:$0xff] }
   0xa   :  { %v98_v39 = vmax.f32 %v151_v35, %v167_v36  ;;  %v33_v41 = vld [vmem:[%s450_s1 + $0x60] sm:$0xff]  ;;  %v168_v45 = vld [vmem:[%s450_s1 + $0x68] sm:$0xff]  ;;  %v18_v46 = vld [vmem:[%s449_s0 + $0x70] sm:$0xff] }
   0xb   :  { %v113_v43 = vmax.f32 %v47_v29, %v97_v33  ;;  %v49_v44 = vmax.f32 %v17_v40, %v33_v41  ;;  %v34_v47 = vld [vmem:[%s450_s1 + $0x70] sm:$0xff]  ;;  %129 = vst.msk [vmem:[%s451_s2 + $0x18] sm:$0xff] %vm125_vm0, %v112_v37  ;;  %v99_v49 = vmax.f32 %v152_v42, %v168_v45  ;;  %v153_v51 = vld [vmem:[%s449_s0 + $0x78] sm:$0xff]  ;;  %v19_v53 = vld [vmem:[%s449_s0 + $0x80] sm:$0xff] }
   0xc   :  { %v114_v48 = vmax.f32 %v48_v38, %v98_v39  ;;  %v50_v50 = vmax.f32 %v18_v46, %v34_v47  ;;  %v169_v52 = vld [vmem:[%s450_s1 + $0x78] sm:$0xff]  ;;  %v35_v55 = vld [vmem:[%s450_s1 + $0x80] sm:$0xff]  ;;  %v154_v56 = vld [vmem:[%s449_s0 + $0x88] sm:$0xff] }
   0xd   :  { %130 = vst.msk [vmem:[%s451_s2 + $0x20] sm:$0xff] %vm125_vm0, %v113_v43  ;;  %v100_v54 = vmax.f32 %v153_v51, %v169_v52  ;;  %v170_v57 = vld [vmem:[%s450_s1 + $0x88] sm:$0xff]  ;;  %v115_v58 = vmax.f32 %v49_v44, %v99_v49  ;;  %v51_v59 = vmax.f32 %v19_v53, %v35_v55  ;;  %v20_v61 = vld [vmem:[%s449_s0 + $0x90] sm:$0xff]  ;;  %v155_v63 = vld [vmem:[%s449_s0 + $0x98] sm:$0xff] }
   0xe   :  { %131 = vst.msk [vmem:[%s451_s2 + $0x28] sm:$0xff] %vm125_vm0, %v114_v48  ;;  %v101_v60 = vmax.f32 %v154_v56, %v170_v57  ;;  %v36_v62 = vld [vmem:[%s450_s1 + $0x90] sm:$0xff]  ;;  %v171_v2 = vld [vmem:[%s450_s1 + $0x98] sm:$0xff]  ;;  %v21_v3 = vld [vmem:[%s449_s0 + $0xa0] sm:$0xff] }
   0xf   :  { %v116_v0 = vmax.f32 %v50_v50, %v100_v54  ;;  %v52_v1 = vmax.f32 %v20_v61, %v36_v62  ;;  %v37_v4 = vld [vmem:[%s450_s1 + $0xa0] sm:$0xff]  ;;  %132 = vst.msk [vmem:[%s451_s2 + $0x30] sm:$0xff] %vm125_vm0, %v115_v58  ;;  %v102_v6 = vmax.f32 %v155_v63, %v171_v2  ;;  %v156_v8 = vld [vmem:[%s449_s0 + $0xa8] sm:$0xff]  ;;  %v22_v10 = vld [vmem:[%s449_s0 + $0xb0] sm:$0xff] }
  0x10   :  { %v117_v5 = vmax.f32 %v51_v59, %v101_v60  ;;  %v53_v7 = vmax.f32 %v21_v3, %v37_v4  ;;  %v172_v9 = vld [vmem:[%s450_s1 + $0xa8] sm:$0xff]  ;;  %v38_v12 = vld [vmem:[%s450_s1 + $0xb0] sm:$0xff]  ;;  %v157_v13 = vld [vmem:[%s449_s0 + $0xb8] sm:$0xff] }
  0x11   :  { %133 = vst.msk [vmem:[%s451_s2 + $0x38] sm:$0xff] %vm125_vm0, %v116_v0  ;;  %v103_v11 = vmax.f32 %v156_v8, %v172_v9  ;;  %v173_v14 = vld [vmem:[%s450_s1 + $0xb8] sm:$0xff]  ;;  %v118_v15 = vmax.f32 %v52_v1, %v102_v6  ;;  %v54_v16 = vmax.f32 %v22_v10, %v38_v12  ;;  %v23_v18 = vld [vmem:[%s449_s0 + $0xc0] sm:$0xff]  ;;  %v158_v20 = vld [vmem:[%s449_s0 + $0xc8] sm:$0xff] }
  0x12   :  { %134 = vst.msk [vmem:[%s451_s2 + $0x40] sm:$0xff] %vm125_vm0, %v117_v5  ;;  %v104_v17 = vmax.f32 %v157_v13, %v173_v14  ;;  %v39_v19 = vld [vmem:[%s450_s1 + $0xc0] sm:$0xff]  ;;  %v174_v23 = vld [vmem:[%s450_s1 + $0xc8] sm:$0xff]  ;;  %v24_v24 = vld [vmem:[%s449_s0 + $0xd0] sm:$0xff] }
  0x13   :  { %v119_v21 = vmax.f32 %v53_v7, %v103_v11  ;;  %v55_v22 = vmax.f32 %v23_v18, %v39_v19  ;;  %v40_v25 = vld [vmem:[%s450_s1 + $0xd0] sm:$0xff]  ;;  %135 = vst.msk [vmem:[%s451_s2 + $0x48] sm:$0xff] %vm125_vm0, %v118_v15  ;;  %v105_v27 = vmax.f32 %v158_v20, %v174_v23  ;;  %v159_v29 = vld [vmem:[%s449_s0 + $0xd8] sm:$0xff]  ;;  %v25_v31 = vld [vmem:[%s449_s0 + $0xe0] sm:$0xff] }
  0x14   :  { %v120_v26 = vmax.f32 %v54_v16, %v104_v17  ;;  %v56_v28 = vmax.f32 %v24_v24, %v40_v25  ;;  %v175_v30 = vld [vmem:[%s450_s1 + $0xd8] sm:$0xff]  ;;  %v41_v33 = vld [vmem:[%s450_s1 + $0xe0] sm:$0xff]  ;;  %v160_v34 = vld [vmem:[%s449_s0 + $0xe8] sm:$0xff] }
  0x15   :  { %136 = vst.msk [vmem:[%s451_s2 + $0x50] sm:$0xff] %vm125_vm0, %v119_v21  ;;  %v106_v32 = vmax.f32 %v159_v29, %v175_v30  ;;  %v176_v35 = vld [vmem:[%s450_s1 + $0xe8] sm:$0xff]  ;;  %v121_v36 = vmax.f32 %v55_v22, %v105_v27  ;;  %v57_v37 = vmax.f32 %v25_v31, %v41_v33  ;;  %v26_v39 = vld [vmem:[%s449_s0 + $0xf0] sm:$0xff]  ;;  %v161_v41 = vld [vmem:[%s449_s0 + $0xf8] sm:$0xff] }
  0x16   :  { %137 = vst.msk [vmem:[%s451_s2 + $0x58] sm:$0xff] %vm125_vm0, %v120_v26  ;;  %v107_v38 = vmax.f32 %v160_v34, %v176_v35  ;;  %v42_v40 = vld [vmem:[%s450_s1 + $0xf0] sm:$0xff]  ;;  %v177_v44 = vld [vmem:[%s450_s1 + $0xf8] sm:$0xff] }
  0x17   :  { %v122_v42 = vmax.f32 %v56_v28, %v106_v32  ;;  %v58_v43 = vmax.f32 %v26_v39, %v42_v40  ;;  %138 = vst.msk [vmem:[%s451_s2 + $0x60] sm:$0xff] %vm125_vm0, %v121_v36  ;;  %v108_v46 = vmax.f32 %v161_v41, %v177_v44 }
  0x18   :  { %v123_v45 = vmax.f32 %v57_v37, %v107_v38 }
  0x19   :  { %139 = vst.msk [vmem:[%s451_s2 + $0x68] sm:$0xff] %vm125_vm0, %v122_v42  ;;  %v124_v47 = vmax.f32 %v58_v43, %v108_v46 }
  0x1a   :  { %140 = vst.msk [vmem:[%s451_s2 + $0x70] sm:$0xff] %vm125_vm0, %v123_v45 }
  0x1b   :  { %141 = vst.msk [vmem:[%s451_s2 + $0x78] sm:$0xff] %vm125_vm0, %v124_v47 }

// kernel: downblock_forward.7
= control target key start
LH: loop header
LB: loop body
LE: loop exit
PB: predicated region body
PF: predicated region fallthrough
CT: control target
= control target key end

     0   :  { %s324_s0 = inlined_call_operand.vmem [shape: f32[160,128], index: 0, kind: input, shape index: {}]   ;;  %s325_s1 = inlined_call_operand.vmem [shape: f32[1,128], index: 1, kind: input, shape index: {}]   ;;  %s326_s2 = inlined_call_operand.vmem [shape: f32[1,128], index: 2, kind: input, shape index: {}]   ;;  %s327_s3 = inlined_call_operand.vmem [shape: f32[160,128], index: 3, kind: output, shape index: {}]  }
   0x1   :  { %v14_v0 = vld [vmem:[%s324_s0] sm:$0xff]  ;;  %v15_v4 = vld [vmem:[%s324_s0 + $0x8] sm:$0xff]  ;;  %v16_v5 = vld [vmem:[%s324_s0 + $0x10] sm:$0xff] }
   0x2   :  { %v160_v1 = vld [vmem:[%s325_s1] ss:$0 sm:$0xff]  ;;  %v17_v6 = vld [vmem:[%s324_s0 + $0x18] sm:$0xff]  ;;  %v19_v11 = vld [vmem:[%s324_s0 + $0x28] sm:$0xff] }
   0x3   :  { %v165_v2 = vld [vmem:[%s326_s2] ss:$0 sm:$0xff]  ;;  %v41_v3 = vmul.f32 %v160_v1, %v14_v0  ;;  %v42_v7 = vmul.f32 %v160_v1, %v15_v4  ;;  %v43_v8 = vmul.f32 %v160_v1, %v16_v5  ;;  %v44_v9 = vmul.f32 %v160_v1, %v17_v6  ;;  %v20_v12 = vld [vmem:[%s324_s0 + $0x30] sm:$0xff]  ;;  %v21_v17 = vld [vmem:[%s324_s0 + $0x38] sm:$0xff] }
   0x4   :  { %v18_v10 = vld [vmem:[%s324_s0 + $0x20] sm:$0xff]  ;;  %v46_v15 = vmul.f32 %v160_v1, %v19_v11  ;;  %v47_v16 = vmul.f32 %v160_v1, %v20_v12  ;;  %v48_v21 = vmul.f32 %v160_v1, %v21_v17  ;;  %v23_v27 = vld [vmem:[%s324_s0 + $0x48] sm:$0xff]  ;;  %v24_v28 = vld [vmem:[%s324_s0 + $0x50] sm:$0xff] }
   0x5   :  { %v68_v13 = vadd.f32 %v165_v2, %v41_v3  ;;  %v45_v14 = vmul.f32 %v160_v1, %v18_v10  ;;  %v69_v18 = vadd.f32 %v165_v2, %v42_v7  ;;  %v70_v19 = vadd.f32 %v165_v2, %v43_v8  ;;  %v22_v22 = vld [vmem:[%s324_s0 + $0x40] sm:$0xff]  ;;  %v25_v29 = vld [vmem:[%s324_s0 + $0x58] sm:$0xff]  ;;  %v27_v35 = vld [vmem:[%s324_s0 + $0x68] sm:$0xff] }
   0x6   :  { %v71_v20 = vadd.f32 %v165_v2, %v44_v9  ;;  %v73_v25 = vadd.f32 %v165_v2, %v46_v15  ;;  %v74_v26 = vadd.f32 %v165_v2, %v47_v16  ;;  %v75_v33 = vadd.f32 %v165_v2, %v48_v21  ;;  %v26_v34 = vld [vmem:[%s324_s0 + $0x60] sm:$0xff]  ;;  %v28_v36 = vld [vmem:[%s324_s0 + $0x70] sm:$0xff]  ;;  %v29_v41 = vld [vmem:[%s324_s0 + $0x78] sm:$0xff] }
   0x7   :  { %v88_v23 = vmax.f32 %v68_v13, 0.0  ;;  %v72_v24 = vadd.f32 %v165_v2, %v45_v14  ;;  %v89_v30 = vmax.f32 %v69_v18, 0.0  ;;  %v90_v31 = vmax.f32 %v70_v19, 0.0  ;;  %v30_v54 = vld [vmem:[%s324_s0 + $0x80] sm:$0xff]  ;;  %v31_v59 = vld [vmem:[%s324_s0 + $0x88] sm:$0xff]  ;;  %v32_v60 = vld [vmem:[%s324_s0 + $0x90] sm:$0xff] }
   0x8   :  { %v91_v32 = vmax.f32 %v71_v20, 0.0  ;;  %v93_v38 = vmax.f32 %v73_v25, 0.0  ;;  %v94_v39 = vmax.f32 %v74_v26, 0.0  ;;  %v49_v40 = vmul.f32 %v160_v1, %v22_v22  ;;  %v33_v61 = vld [vmem:[%s324_s0 + $0x98] sm:$0xff] }
   0x9   :  { %108 = vst [vmem:[%s327_s3] sm:$0xff] %v88_v23  ;;  %v92_v37 = vmax.f32 %v72_v24, 0.0  ;;  %109 = vst [vmem:[%s327_s3 + $0x8] sm:$0xff] %v89_v30  ;;  %v95_v42 = vmax.f32 %v75_v33, 0.0  ;;  %v50_v43 = vmul.f32 %v160_v1, %v23_v27  ;;  %v51_v44 = vmul.f32 %v160_v1, %v24_v28 }
   0xa   :  { %110 = vst [vmem:[%s327_s3 + $0x10] sm:$0xff] %v90_v31  ;;  %111 = vst [vmem:[%s327_s3 + $0x18] sm:$0xff] %v91_v32  ;;  %v52_v45 = vmul.f32 %v160_v1, %v25_v29  ;;  %v76_v46 = vadd.f32 %v165_v2, %v49_v40  ;;  %v53_v47 = vmul.f32 %v160_v1, %v26_v34 }
   0xb   :  { %112 = vst [vmem:[%s327_s3 + $0x20] sm:$0xff] %v92_v37  ;;  %113 = vst [vmem:[%s327_s3 + $0x28] sm:$0xff] %v93_v38  ;;  %v54_v48 = vmul.f32 %v160_v1, %v27_v35  ;;  %v55_v49 = vmul.f32 %v160_v1, %v28_v36  ;;  %v77_v50 = vadd.f32 %v165_v2, %v50_v43 }
   0xc   :  { %114 = vst [vmem:[%s327_s3 + $0x30] sm:$0xff] %v94_v39  ;;  %115 = vst [vmem:[%s327_s3 + $0x38] sm:$0xff] %v95_v42  ;;  %v78_v51 = vadd.f32 %v165_v2, %v51_v44  ;;  %v79_v52 = vadd.f32 %v165_v2, %v52_v45  ;;  %v56_v53 = vmul.f32 %v160_v1, %v29_v41  ;;  %v96_v55 = vmax.f32 %v76_v46, 0.0 }
   0xd   :  { %v80_v56 = vadd.f32 %v165_v2, %v53_v47  ;;  %v81_v57 = vadd.f32 %v165_v2, %v54_v48  ;;  %v82_v58 = vadd.f32 %v165_v2, %v55_v49  ;;  %v97_v62 = vmax.f32 %v77_v50, 0.0 }
   0xe   :  { %v98_v63 = vmax.f32 %v78_v51, 0.0  ;;  %v99_v0 = vmax.f32 %v79_v52, 0.0  ;;  %v83_v3 = vadd.f32 %v165_v2, %v56_v53  ;;  %116 = vst [vmem:[%s327_s3 + $0x40] sm:$0xff] %v96_v55  ;;  %v57_v7 = vmul.f32 %v160_v1, %v30_v54 }
   0xf   :  { %v100_v4 = vmax.f32 %v80_v56, 0.0  ;;  %v101_v5 = vmax.f32 %v81_v57, 0.0  ;;  %v102_v6 = vmax.f32 %v82_v58, 0.0  ;;  %117 = vst [vmem:[%s327_s3 + $0x48] sm:$0xff] %v97_v62  ;;  %v58_v9 = vmul.f32 %v160_v1, %v31_v59 }
  0x10   :  { %118 = vst [vmem:[%s327_s3 + $0x50] sm:$0xff] %v98_v63  ;;  %119 = vst [vmem:[%s327_s3 + $0x58] sm:$0xff] %v99_v0  ;;  %v103_v8 = vmax.f32 %v83_v3, 0.0  ;;  %v59_v10 = vmul.f32 %v160_v1, %v32_v60  ;;  %v60_v11 = vmul.f32 %v160_v1, %v33_v61  ;;  %v84_v12 = vadd.f32 %v165_v2, %v57_v7 }
  0x11   :  { %120 = vst [vmem:[%s327_s3 + $0x60] sm:$0xff] %v100_v4  ;;  %121 = vst [vmem:[%s327_s3 + $0x68] sm:$0xff] %v101_v5  ;;  %v85_v1 = vadd.f32 %v165_v2, %v58_v9 }
  0x12   :  { %122 = vst [vmem:[%s327_s3 + $0x70] sm:$0xff] %v102_v6  ;;  %123 = vst [vmem:[%s327_s3 + $0x78] sm:$0xff] %v103_v8  ;;  %v86_v13 = vadd.f32 %v165_v2, %v59_v10  ;;  %v87_v14 = vadd.f32 %v165_v2, %v60_v11  ;;  %v104_v15 = vmax.f32 %v84_v12, 0.0 }
  0x13   :  { %v105_v16 = vmax.f32 %v85_v1, 0.0 }
  0x14   :  { %v106_v17 = vmax.f32 %v86_v13, 0.0  ;;  %v107_v18 = vmax.f32 %v87_v14, 0.0  ;;  %124 = vst [vmem:[%s327_s3 + $0x80] sm:$0xff] %v104_v15 }
  0x15   :  { %125 = vst [vmem:[%s327_s3 + $0x88] sm:$0xff] %v105_v16 }
  0x16   :  { %126 = vst [vmem:[%s327_s3 + $0x90] sm:$0xff] %v106_v17  ;;  %127 = vst [vmem:[%s327_s3 + $0x98] sm:$0xff] %v107_v18 }

// kernel: downblock_forward.6
= control target key start
LH: loop header
LB: loop body
LE: loop exit
PB: predicated region body
PF: predicated region fallthrough
CT: control target
= control target key end

     0   :  { %s2035_s18 = smov 0   ;;  %s2401_s0 = inlined_call_operand.vmem [shape: f32[2,108,4], index: 0, kind: input, shape index: {}]   ;;  %s2402_s1 = inlined_call_operand.vmem [shape: bf16[9,4,128], index: 1, kind: input, shape index: {}]   ;;  %s2403_s2 = inlined_call_operand.vmem [shape: f32[80,1], index: 2, kind: input, shape index: {}]   ;;  %s2404_s3 = inlined_call_operand.vmem [shape: f32[2,80,128], index: 3, kind: output, shape index: {0}]   ;;  %s2405_s4 = inlined_call_operand.vmem [shape: f32[2,1,128], index: 4, kind: output, shape index: {1}]   ;;  %s2406_s5 = inlined_call_operand.vmem [shape: f32[2,1,128], index: 5, kind: output, shape index: {2}]  }
   0x1 LB: > { %s1513_s19 = sadd.s32 4294967295, %s2000_s18   ;;  %p1517_p0 = scmp.ge.s32.totalorder %s2000_s18, 1  ;;  %s2000_s18 = sphi %s2035_s18, %s16_s18  }
   0x2   : > { %p192_p1 = scmp.lt.s32.totalorder %s2000_s18, 3 }
   0x4   : > { %p193_p2 = pnand %p1517_p0, %p192_p1 }
   0x5   : > { %vm292_vm0 = vcmask (!%p193_p2), 1041408   ;;  %v1543_v0 = vld [vmem:[%s2402_s1 + $0x8] sm:$0x3] (!%p193_p2)  ;;  %v1520_v1 = vld [vmem:[%s2402_s1 + $0x2] sm:$0x3] (!%p193_p2)  ;;  %v2002_v2 = vmov (!%p193_p2), 0.0  }
   0x6   : > { %196 = sbr.rel (%p193_p2) target bundleno = 432 (0x1b0), region = 32  ;;  %1717 = vmatprep.subr.bf16.mxu0 (!%p193_p2), %v2002_v2  ;;  %1629 = vmatprep.subr.bf16.mxu1 (!%p193_p2), %v2002_v2  ;;  %v2052_v3 = vsel (!%p193_p2), %vm292_vm0, %v1543_v0, 0  ;;  %v294_v4 = vsel (!%p193_p2), %vm292_vm0, %v1520_v1, 0  ;;  %p226_p3 = scmp.lt.s32.totalorder (!%p193_p2), %s1513_s19, 1  ;;  %vm2003_vm1 = vmmov (!%p193_p2), 0   ;;  %vm276_vm2 = vcmask (!%p193_p2), 31744  }
   0x7   : > { %1718 = vmatpush3.bf16.msra.mxu0 (!%p193_p2), %v2052_v3  ;;  %1630 = vmatpush3.bf16.msra.mxu1 (!%p193_p2), %v294_v4  ;;  %v1549_v5 = vld [vmem:[%s2402_s1 + $0xa] sm:$0x3] (!%p193_p2)  ;;  %v258_v6 = vld [vmem:[%s2402_s1] sm:$0x3] (!%p193_p2)  ;;  %v1555_v32 = vld [vmem:[%s2402_s1 + $0xc] sm:$0x3] (!%p193_p2) }
   0x8   : > { %1631 = vmatprep.mubr.msk.bf16.mxu1 (!%p193_p2), %vm2003_vm1, %v2002_v2  ;;  %1719 = vmatprep.mubr.msk.bf16.mxu0 (!%p193_p2), %vm2003_vm1, %v2002_v2  ;;  %v847_v13 = vsel (!%p193_p2), %vm292_vm0, %v1549_v5, 0  ;;  %v385_v14 = vsel (!%p193_p2), %vm292_vm0, %v258_v6, 0  ;;  %v965_v34 = vsel (!%p193_p2), %vm292_vm0, %v1555_v32, 0  ;;  %v1531_v46 = vld [vmem:[%s2402_s1 + $0x4] sm:$0x3] (!%p193_p2)  ;;  %v1298_v58 = vld [vmem:[%s2403_s2 + $0x10] sm:$0xff] (!%p193_p2) }
   0x9   : > { %1739 = vmatprep.subr.bf16.mxu0 (!%p193_p2), %v2002_v2  ;;  %1651 = vmatprep.subr.bf16.mxu1 (!%p193_p2), %v2002_v2  ;;  %v493_v48 = vsel (!%p193_p2), %vm292_vm0, %v1531_v46, 0  ;;  %v1296_v57 = vld [vmem:[%s2403_s2] sm:$0xff] (!%p193_p2)  ;;  %v2004_v61 = vmov (!%p193_p2), 0   ;;  %v1297_v63 = vld [vmem:[%s2403_s2 + $0x8] sm:$0xff] (!%p193_p2)  ;;  %v1299_v1 = vld [vmem:[%s2403_s2 + $0x18] sm:$0xff] (!%p193_p2) }
   0xa   : > { %1992 = vset.pattern.permute.xlu0 (!%p193_p2), %v2004_v61  ;;  %1993 = vset.pattern.permute.xlu1 (!%p193_p2), %v2004_v61  ;;  %v1300_v4 = vld [vmem:[%s2403_s2 + $0x20] sm:$0xff] (!%p193_p2) }
   0xb   : > { %1308 = vperm.xlu0 (!%p193_p2), %1992, %v1296_v57   ;;  %1318 = vperm.xlu1 (!%p193_p2), %1993, %v1298_v58  }
   0xd   : > { %s2408_s19 = smov (!%p226_p3, %s1513_s19), 1 }
   0xe   : > { %s1979_s24 = smul.u32 112, %s2408_s19  ;;  %s238_s22 = scalar_lea.vmem %s2405_s4, %s2408_s19 }
   0xf   : > { %1313 = vperm.xlu0 %1992, %v1297_v63   ;;  %1323 = vperm.xlu1 %1993, %v1299_v1   ;;  %s1980_s15 = smul.u32 80, %s2408_s19  ;;  %s241_s25 = scalar_lea.vmem %s2406_s5, %s2408_s19 }
  0x10   : > { %s2068_s27 = scalar_lea.vmem %s2401_s0, %s1979_s24 }
  0x11   : > { %v259_v7 = vld [vmem:[%s2068_s27 + $0x1] sm:$0xff]  ;;  %v260_v8 = vld [vmem:[%s2068_s27 + $0x9] sm:$0xff]  ;;  %v697_v11 = vld [vmem:[%s2068_s27 + $0x13] sm:$0xff]  ;;  %s2378_s17 = scalar_lea.vmem %s2404_s3, %s1980_s15 }
  0x12   : > { %v696_v9 = vld [vmem:[%s2068_s27 + $0xb] sm:$0xff]  ;;  %v269_v10 = vpack.c.bf16 %v260_v8, %v259_v7  ;;  %v262_v16 = vld [vmem:[%s2068_s27 + $0x19] sm:$0xff]  ;;  %v699_v18 = vld [vmem:[%s2068_s27 + $0x23] sm:$0xff] }
  0x13   : > { %v706_v12 = vpack.c.bf16 %v697_v11, %v696_v9  ;;  %v261_v15 = vld [vmem:[%s2068_s27 + $0x11] sm:$0xff]  ;;  %v698_v17 = vld [vmem:[%s2068_s27 + $0x1b] sm:$0xff]  ;;  %v264_v22 = vld [vmem:[%s2068_s27 + $0x29] sm:$0xff]  ;;  %1328 = vperm.xlu0 %1992, %v1300_v4  }
  0x14   : > { %1632 = vmatmul.mubr.msk.bf16.vlgmr.msra.gmra.mrb[0].mxu1 %vm276_vm2, %v269_v10  ;;  %v270_v19 = vpack.c.bf16 %v262_v16, %v261_v15  ;;  %v707_v20 = vpack.c.bf16 %v699_v18, %v698_v17  ;;  %v263_v21 = vld [vmem:[%s2068_s27 + $0x21] sm:$0xff]  ;;  %v700_v23 = vld [vmem:[%s2068_s27 + $0x2b] sm:$0xff]  ;;  %v701_v24 = vld [vmem:[%s2068_s27 + $0x33] sm:$0xff] }
  0x15   : > { %1720 = vmatmul.mubr.msk.bf16.vlgmr.msra.gmra.mrb[0].mxu0 %vm276_vm2, %v706_v12  ;;  %1635 = vmatprep.mubr.msk.bf16.mxu1 %vm2003_vm1, %v2002_v2  ;;  %v271_v25 = vpack.c.bf16 %v264_v22, %v263_v21  ;;  %v708_v26 = vpack.c.bf16 %v701_v24, %v700_v23  ;;  %v265_v27 = vld [vmem:[%s2068_s27 + $0x31] sm:$0xff]  ;;  %v266_v28 = vld [vmem:[%s2068_s27 + $0x39] sm:$0xff]  ;;  %v267_v35 = vld [vmem:[%s2068_s27 + $0x41] sm:$0xff] }
  0x16   : > { %1740 = vmatpush3.bf16.msra.mxu0 %v847_v13  ;;  %1723 = vmatprep.mubr.msk.bf16.mxu0 %vm2003_vm1, %v2002_v2  ;;  %v814_v29 = vld [vmem:[%s2068_s27 + $0xc] sm:$0xff]  ;;  %v2114_v30 = vld [vmem:[%s2068_s27 + $0x14] sm:$0xff]  ;;  %v272_v31 = vpack.c.bf16 %v266_v28, %v265_v27  ;;  %v2130_v37 = vld [vmem:[%s2068_s27 + $0x1c] sm:$0xff] }
  0x17   : > { %1652 = vmatpush3.bf16.msra.mxu1 %v385_v14  ;;  %1761 = vmatprep.subr.bf16.mxu0 %v2002_v2  ;;  %v824_v33 = vpack.c.bf16 %v2114_v30, %v814_v29  ;;  %v268_v36 = vld [vmem:[%s2068_s27 + $0x49] sm:$0xff]  ;;  %v243_v41 = vld [vmem:[%s2068_s27] sm:$0xff]  ;;  %v2150_v44 = vld [vmem:[%s2068_s27 + $0x34] sm:$0xff]  ;;  %v942_v11 = vpack.c.bf16 %v2130_v37, %v2114_v30 }
  0x18   : > { %1673 = vmatprep.subr.bf16.mxu1 %v2002_v2  ;;  %v2133_v38 = vld [vmem:[%s2068_s27 + $0x24] sm:$0xff]  ;;  %v273_v39 = vpack.c.bf16 %v268_v36, %v267_v35  ;;  %v2147_v43 = vld [vmem:[%s2068_s27 + $0x2c] sm:$0xff]  ;;  %v246_v50 = vld [vmem:[%s2068_s27 + $0x18] sm:$0xff] }
  0x19   : > { %v825_v40 = vpack.c.bf16 %v2133_v38, %v2130_v37  ;;  %v244_v42 = vld [vmem:[%s2068_s27 + $0x8] sm:$0xff]  ;;  %v826_v47 = vpack.c.bf16 %v2150_v44, %v2147_v43  ;;  %v245_v49 = vld [vmem:[%s2068_s27 + $0x10] sm:$0xff]  ;;  %v2167_v51 = vld [vmem:[%s2068_s27 + $0x3c] sm:$0xff] }
  0x1a   : > { %v253_v45 = vpack.c.bf16 %v244_v42, %v243_v41  ;;  %v2170_v52 = vld [vmem:[%s2068_s27 + $0x44] sm:$0xff]  ;;  %v254_v53 = vpack.c.bf16 %v246_v50, %v245_v49  ;;  %v2190_v59 = vld [vmem:[%s2068_s27 + $0x4c] sm:$0xff]  ;;  %v2193_v60 = vld [vmem:[%s2068_s27 + $0x54] sm:$0xff]  ;;  %v944_v24 = vpack.c.bf16 %v2167_v51, %v2150_v44 }
  0x1b   : > { %v827_v54 = vpack.c.bf16 %v2170_v52, %v2167_v51  ;;  %v247_v55 = vld [vmem:[%s2068_s27 + $0x20] sm:$0xff]  ;;  %v248_v56 = vld [vmem:[%s2068_s27 + $0x28] sm:$0xff]  ;;  %v828_v0 = vpack.c.bf16 %v2193_v60, %v2190_v59  ;;  %v249_v5 = vld [vmem:[%s2068_s27 + $0x30] sm:$0xff]  ;;  %v945_v29 = vpack.c.bf16 %v2190_v59, %v2170_v52 }
  0x1c   : > { %1636 = vmatmul.mubr.msk.bf16.gmra.mrb[4].mxu1 %vm276_vm2, %v270_v19  ;;  %v255_v62 = vpack.c.bf16 %v248_v56, %v247_v55  ;;  %v250_v6 = vld [vmem:[%s2068_s27 + $0x38] sm:$0xff]  ;;  %v1301_v7 = vld [vmem:[%s2403_s2 + $0x28] sm:$0xff]  ;;  %v1302_v10 = vld [vmem:[%s2403_s2 + $0x30] sm:$0xff]  ;;  %v943_v19 = vpack.c.bf16 %v2147_v43, %v2133_v38 }
  0x1d   : > { %1724 = vmatmul.mubr.msk.bf16.gmra.mrb[4].mxu0 %vm276_vm2, %v707_v20  ;;  %1639 = vmatprep.mubr.msk.bf16.mxu1 %vm2003_vm1, %v2002_v2  ;;  %v256_v8 = vpack.c.bf16 %v250_v6, %v249_v5  ;;  %v1561_v9 = vld [vmem:[%s2402_s1 + $0xe] sm:$0x3]  ;;  %v1303_v12 = vld [vmem:[%s2403_s2 + $0x38] sm:$0xff]  ;;  %v1304_v14 = vld [vmem:[%s2403_s2 + $0x40] sm:$0xff] }
  0x1e   : > { %1727 = vmatprep.mubr.msk.bf16.mxu0 %vm2003_vm1, %v2002_v2  ;;  %1333 = vperm.xlu1 %1993, %v1301_v7   ;;  %v1083_v13 = vsel %vm292_vm0, %v1561_v9, 0  ;;  %v251_v15 = vld [vmem:[%s2068_s27 + $0x40] sm:$0xff]  ;;  %v252_v16 = vld [vmem:[%s2068_s27 + $0x48] sm:$0xff]  ;;  %v466_v35 = vld [vmem:[%s2068_s27 + $0x32] sm:$0xff] }
  0x1f   : > { %1338 = vperm.xlu0 %1992, %v1302_v10   ;;  %v1305_v17 = vld [vmem:[%s2403_s2 + $0x48] sm:$0xff]  ;;  %v257_v18 = vpack.c.bf16 %v252_v16, %v251_v15  ;;  %v1537_v23 = vld [vmem:[%s2402_s1 + $0x6] sm:$0x3]  ;;  %v463_v27 = vld [vmem:[%s2068_s27 + $0x1a] sm:$0xff] }
  0x20   : > { %v460_v20 = vld [vmem:[%s2068_s27 + $0x2] sm:$0xff]  ;;  %v461_v21 = vld [vmem:[%s2068_s27 + $0xa] sm:$0xff]  ;;  %v467_v36 = vld [vmem:[%s2068_s27 + $0x3a] sm:$0xff] }
  0x21   : > { %v470_v22 = vpack.c.bf16 %v461_v21, %v460_v20  ;;  %v464_v30 = vld [vmem:[%s2068_s27 + $0x22] sm:$0xff]  ;;  %v1050_v37 = vld [vmem:[%s2068_s27 + $0x15] sm:$0xff]  ;;  %v469_v44 = vld [vmem:[%s2068_s27 + $0x4a] sm:$0xff] }
  0x22   : > { %1343 = vperm.xlu1 %1993, %v1303_v12   ;;  %v941_v32 = vld [vmem:[%s2068_s27 + $0x5c] sm:$0xff]  ;;  %v1053_v46 = vld [vmem:[%s2068_s27 + $0x2d] sm:$0xff]  ;;  %v589_v55 = vpack.c.bf16 %v464_v30, %v463_v27 }
  0x23   : > { %1348 = vperm.xlu0 %1992, %v1304_v14   ;;  %v1051_v38 = vld [vmem:[%s2068_s27 + $0x1d] sm:$0xff]  ;;  %v1054_v49 = vld [vmem:[%s2068_s27 + $0x35] sm:$0xff]  ;;  %v1170_v1 = vld [vmem:[%s2068_s27 + $0x26] sm:$0xff] }
  0x24   : > { %1640 = vmatmul.mubr.msk.bf16.gmra.mrb[8].mxu1 %vm276_vm2, %v271_v25  ;;  %v611_v25 = vsel %vm292_vm0, %v1537_v23, 0  ;;  %v1060_v41 = vpack.c.bf16 %v1051_v38, %v1050_v37  ;;  %v468_v43 = vld [vmem:[%s2068_s27 + $0x42] sm:$0xff]  ;;  %v1058_v57 = vld [vmem:[%s2068_s27 + $0x55] sm:$0xff] }
  0x25   : > { %1728 = vmatmul.mubr.msk.bf16.gmra.mrb[8].mxu0 %vm276_vm2, %v708_v26  ;;  %1643 = vmatprep.mubr.msk.bf16.mxu1 %vm2003_vm1, %v2002_v2  ;;  %v462_v26 = vld [vmem:[%s2068_s27 + $0x12] sm:$0xff]  ;;  %v1055_v50 = vld [vmem:[%s2068_s27 + $0x3d] sm:$0xff]  ;;  %v1174_v15 = vld [vmem:[%s2068_s27 + $0x46] sm:$0xff] }
  0x26   : > { %1741 = vmatprep.mubr.msk.bf16.mxu0 %vm2003_vm1, %v2002_v2  ;;  %1353 = vperm.xlu1 %1993, %v1305_v17   ;;  %v471_v28 = vpack.c.bf16 %v463_v27, %v462_v26  ;;  %v588_v51 = vpack.c.bf16 %v462_v26, %v461_v21  ;;  %v1062_v52 = vpack.c.bf16 %v1055_v50, %v1054_v49  ;;  %v1059_v58 = vld [vmem:[%s2068_s27 + $0x5d] sm:$0xff]  ;;  %v1171_v4 = vld [vmem:[%s2068_s27 + $0x2e] sm:$0xff] }
  0x27   : > { %v1064_v59 = vpack.c.bf16 %v1059_v58, %v1058_v57  ;;  %v1169_v61 = vld [vmem:[%s2068_s27 + $0x1e] sm:$0xff]  ;;  %v1179_v6 = vpack.c.bf16 %v1171_v4, %v1170_v1  ;;  %v1172_v9 = vld [vmem:[%s2068_s27 + $0x36] sm:$0xff]  ;;  %v1175_v16 = vld [vmem:[%s2068_s27 + $0x4e] sm:$0xff] }
  0x28   : > { %v702_v7 = vld [vmem:[%s2068_s27 + $0x3b] sm:$0xff]  ;;  %v705_v14 = vld [vmem:[%s2068_s27 + $0x53] sm:$0xff] }
  0x29   : > { %v1173_v10 = vld [vmem:[%s2068_s27 + $0x3e] sm:$0xff] }
  0x2a   : > { %v1180_v12 = vpack.c.bf16 %v1173_v10, %v1172_v9  ;;  %v1177_v20 = vld [vmem:[%s2068_s27 + $0x5e] sm:$0xff] }
  0x2c   : > { %1644 = vmatmul.mubr.msk.bf16.gmra.mrb[12].mxu1 %vm276_vm2, %v272_v31  ;;  %v465_v31 = vld [vmem:[%s2068_s27 + $0x2a] sm:$0xff] }
  0x2d   : > { %1742 = vmatmul.mubr.msk.bf16.vlgmr.msra.gmra.mrb[0].mxu0 %vm276_vm2, %v824_v33  ;;  %1647 = vmatprep.mubr.msk.bf16.mxu1 %vm2003_vm1, %v2002_v2  ;;  %v472_v33 = vpack.c.bf16 %v465_v31, %v464_v30 }
  0x2e   : > { %1762 = vmatpush3.bf16.msra.mxu0 %v965_v34  ;;  %1745 = vmatprep.mubr.msk.bf16.mxu0 %vm2003_vm1, %v2002_v2  ;;  %v946_v34 = vpack.c.bf16 %v941_v32, %v2193_v60  ;;  %v1168_v60 = vld [vmem:[%s2068_s27 + $0x16] sm:$0xff] }
  0x2f   : > { %1783 = vmatprep.subr.bf16.mxu0 %v2002_v2  ;;  %v1178_v63 = vpack.c.bf16 %v1169_v61, %v1168_v60 }
  0x34   : > { %1648 = vmatmul.mubr.msk.bf16.gmra.mrb[16].mxu1 %vm276_vm2, %v273_v39  ;;  %v473_v39 = vpack.c.bf16 %v467_v36, %v466_v35 }
  0x35   : > { %1746 = vmatmul.mubr.msk.bf16.gmra.mrb[4].mxu0 %vm276_vm2, %v825_v40  ;;  %1653 = vmatprep.mubr.msk.bf16.mxu1 %vm2003_vm1, %v2002_v2  ;;  %v1567_v40 = vld [vmem:[%s2402_s1 + $0x10] sm:$0x3] }
  0x36   : > { %1749 = vmatprep.mubr.msk.bf16.mxu0 %vm2003_vm1, %v2002_v2  ;;  %v1201_v42 = vsel %vm292_vm0, %v1567_v40, 0 }
  0x3c   : > { %1654 = vmatmul.mubr.msk.bf16.vlgmr.msra.gmra.mrb[0].mxu1 %vm276_vm2, %v253_v45  ;;  %v1052_v45 = vld [vmem:[%s2068_s27 + $0x25] sm:$0xff] }
  0x3d   : > { %1750 = vmatmul.mubr.msk.bf16.gmra.mrb[8].mxu0 %vm276_vm2, %v826_v47  ;;  %1657 = vmatprep.mubr.msk.bf16.mxu1 %vm2003_vm1, %v2002_v2  ;;  %v474_v47 = vpack.c.bf16 %v469_v44, %v468_v43 }
  0x3e   : > { %1753 = vmatprep.mubr.msk.bf16.mxu0 %vm2003_vm1, %v2002_v2  ;;  %1674 = vmatpush3.bf16.msra.mxu1 %v493_v48  ;;  %v1061_v48 = vpack.c.bf16 %v1053_v46, %v1052_v45 }
  0x3f   : > { %1695 = vmatprep.subr.bf16.mxu1 %v2002_v2 }
  0x44   : > { %1658 = vmatmul.mubr.msk.bf16.gmra.mrb[4].mxu1 %vm276_vm2, %v254_v53  ;;  %v1056_v53 = vld [vmem:[%s2068_s27 + $0x45] sm:$0xff] }
  0x45   : > { %1754 = vmatmul.mubr.msk.bf16.gmra.mrb[12].mxu0 %vm276_vm2, %v827_v54  ;;  %1661 = vmatprep.mubr.msk.bf16.mxu1 %vm2003_vm1, %v2002_v2  ;;  %v1057_v54 = vld [vmem:[%s2068_s27 + $0x4d] sm:$0xff] }
  0x46   : > { %1757 = vmatprep.mubr.msk.bf16.mxu0 %vm2003_vm1, %v2002_v2  ;;  %v1063_v56 = vpack.c.bf16 %v1057_v54, %v1056_v53 }
  0x4c   : > { %1662 = vmatmul.mubr.msk.bf16.gmra.mrb[8].mxu1 %vm276_vm2, %v255_v62  ;;  %v591_v62 = vpack.c.bf16 %v468_v43, %v467_v36 }
  0x4d   : > { %1758 = vmatmul.mubr.msk.bf16.gmra.mrb[16].mxu0 %vm276_vm2, %v828_v0  ;;  %1665 = vmatprep.mubr.msk.bf16.mxu1 %vm2003_vm1, %v2002_v2  ;;  %v587_v0 = vld [vmem:[%s2068_s27 + $0x52] sm:$0xff] }
  0x4e   : > { %1763 = vmatprep.mubr.msk.bf16.mxu0 %vm2003_vm1, %v2002_v2  ;;  %v592_v5 = vpack.c.bf16 %v587_v0, %v469_v44 }
  0x54   : > { %1666 = vmatmul.mubr.msk.bf16.gmra.mrb[12].mxu1 %vm276_vm2, %v256_v8  ;;  %v703_v8 = vld [vmem:[%s2068_s27 + $0x43] sm:$0xff] }
  0x55   : > { %1764 = vmatmul.mubr.msk.bf16.vlgmr.msra.gmra.mrb[0].mxu0 %vm276_vm2, %v942_v11  ;;  %1669 = vmatprep.mubr.msk.bf16.mxu1 %vm2003_vm1, %v2002_v2  ;;  %v709_v11 = vpack.c.bf16 %v703_v8, %v702_v7 }
  0x56   : > { %1784 = vmatpush3.bf16.msra.mxu0 %v1083_v13  ;;  %1767 = vmatprep.mubr.msk.bf16.mxu0 %vm2003_vm1, %v2002_v2  ;;  %v704_v13 = vld [vmem:[%s2068_s27 + $0x4b] sm:$0xff] }
  0x57   : > { %1805 = vmatprep.subr.bf16.mxu0 %v2002_v2  ;;  %v710_v17 = vpack.c.bf16 %v705_v14, %v704_v13 }
  0x5c   : > { %1670 = vmatmul.mubr.msk.bf16.gmra.mrb[16].mxu1 %vm276_vm2, %v257_v18  ;;  %v1181_v18 = vpack.c.bf16 %v1175_v16, %v1174_v15 }
  0x5d   : > { %1768 = vmatmul.mubr.msk.bf16.gmra.mrb[4].mxu0 %vm276_vm2, %v943_v19  ;;  %1675 = vmatprep.mubr.msk.bf16.mxu1 %vm2003_vm1, %v2002_v2  ;;  %v1176_v19 = vld [vmem:[%s2068_s27 + $0x56] sm:$0xff] }
  0x5e   : > { %1771 = vmatprep.mubr.msk.bf16.mxu0 %vm2003_vm1, %v2002_v2  ;;  %v1182_v21 = vpack.c.bf16 %v1177_v20, %v1176_v19 }
  0x64   : > { %1676 = vmatmul.mubr.msk.bf16.vlgmr.msra.gmra.mrb[0].mxu1 %vm276_vm2, %v470_v22 }
  0x65   : > { %1772 = vmatmul.mubr.msk.bf16.gmra.mrb[8].mxu0 %vm276_vm2, %v944_v24  ;;  %1679 = vmatprep.mubr.msk.bf16.mxu1 %vm2003_vm1, %v2002_v2 }
  0x66   : > { %1775 = vmatprep.mubr.msk.bf16.mxu0 %vm2003_vm1, %v2002_v2  ;;  %1696 = vmatpush3.bf16.msra.mxu1 %v611_v25 }
  0x67   : > { %1827 = vmatprep.subr.bf16.mxu1 %v2002_v2 }
  0x6c   : > { %1680 = vmatmul.mubr.msk.bf16.gmra.mrb[4].mxu1 %vm276_vm2, %v471_v28 }
  0x6d   : > { %1776 = vmatmul.mubr.msk.bf16.gmra.mrb[12].mxu0 %vm276_vm2, %v945_v29  ;;  %1683 = vmatprep.mubr.msk.bf16.mxu1 %vm2003_vm1, %v2002_v2 }
  0x6e   : > { %1779 = vmatprep.mubr.msk.bf16.mxu0 %vm2003_vm1, %v2002_v2 }
  0x74   : > { %1684 = vmatmul.mubr.msk.bf16.gmra.mrb[8].mxu1 %vm276_vm2, %v472_v33 }
  0x75   : > { %1780 = vmatmul.mubr.msk.bf16.gmra.mrb[16].mxu0 %vm276_vm2, %v946_v34  ;;  %1687 = vmatprep.mubr.msk.bf16.mxu1 %vm2003_vm1, %v2002_v2 }
  0x76   : > { %1785 = vmatprep.mubr.msk.bf16.mxu0 %vm2003_vm1, %v2002_v2 }
  0x7c   : > { %1688 = vmatmul.mubr.msk.bf16.gmra.mrb[12].mxu1 %vm276_vm2, %v473_v39 }
  0x7d   : > { %1786 = vmatmul.mubr.msk.bf16.vlgmr.msra.gmra.mrb[0].mxu0 %vm276_vm2, %v1060_v41  ;;  %1691 = vmatprep.mubr.msk.bf16.mxu1 %vm2003_vm1, %v2002_v2 }
  0x7e   : > { %1806 = vmatpush3.bf16.msra.mxu0 %v1201_v42  ;;  %1789 = vmatprep.mubr.msk.bf16.mxu0 %vm2003_vm1, %v2002_v2 }
  0x84   : > { %1692 = vmatmul.mubr.msk.bf16.gmra.mrb[16].mxu1 %vm276_vm2, %v474_v47 }
  0x85   : > { %1790 = vmatmul.mubr.msk.bf16.gmra.mrb[4].mxu0 %vm276_vm2, %v1061_v48  ;;  %1697 = vmatprep.mubr.msk.bf16.mxu1 %vm2003_vm1, %v2002_v2 }
  0x86   : > { %1793 = vmatprep.mubr.msk.bf16.mxu0 %vm2003_vm1, %v2002_v2 }
  0x8a   : > { %v1309_v34 = vpop.permute.xlu0 %1308  ;;  %v1319_v43 = vpop.permute.xlu1 %1318 }
  0x8c   : > { %1698 = vmatmul.mubr.msk.bf16.vlgmr.msra.gmra.mrb[0].mxu1 %vm276_vm2, %v588_v51 }
  0x8d   : > { %1794 = vmatmul.mubr.msk.bf16.gmra.mrb[8].mxu0 %vm276_vm2, %v1062_v52  ;;  %1701 = vmatprep.mubr.msk.bf16.mxu1 %vm2003_vm1, %v2002_v2 }
  0x8e   : > { %1797 = vmatprep.mubr.msk.bf16.mxu0 %vm2003_vm1, %v2002_v2  ;;  %1828 = vmatpush3.bf16.msra.mxu1 %v2052_v3  ;;  %v590_v3 = vpack.c.bf16 %v466_v35, %v465_v31  ;;  %v1314_v38 = vpop.permute.xlu0 %1313 }
  0x94   : > { %1702 = vmatmul.mubr.msk.bf16.gmra.mrb[4].mxu1 %vm276_vm2, %v589_v55  ;;  %v1324_v55 = vpop.permute.xlu1 %1323 }
  0x95   : > { %1798 = vmatmul.mubr.msk.bf16.gmra.mrb[12].mxu0 %vm276_vm2, %v1063_v56  ;;  %1705 = vmatprep.mubr.msk.bf16.mxu1 %vm2003_vm1, %v2002_v2 }
  0x96   : > { %1801 = vmatprep.mubr.msk.bf16.mxu0 %vm2003_vm1, %v2002_v2 }
  0x9c   : > { %1706 = vmatmul.mubr.msk.bf16.gmra.mrb[8].mxu1 %vm276_vm2, %v590_v3  ;;  %v1329_v3 = vpop.permute.xlu0 %1328 }
  0x9d   : > { %1802 = vmatmul.mubr.msk.bf16.gmra.mrb[16].mxu0 %vm276_vm2, %v1064_v59  ;;  %1709 = vmatprep.mubr.msk.bf16.mxu1 %vm2003_vm1, %v2002_v2 }
  0x9e   : > { %1807 = vmatprep.mubr.msk.bf16.mxu0 %vm2003_vm1, %v2002_v2 }
  0xa0   : > { %v1339_v16 = vpop.permute.xlu0 %1338 }
  0xa4   : > { %1710 = vmatmul.mubr.msk.bf16.gmra.mrb[12].mxu1 %vm276_vm2, %v591_v62 }
  0xa5   : > { %1808 = vmatmul.mubr.msk.bf16.vlgmr.msra.gmra.mrb[0].mxu0 %vm276_vm2, %v1178_v63  ;;  %1713 = vmatprep.mubr.msk.bf16.mxu1 %vm2003_vm1, %v2002_v2 }
  0xa6   : > { %1811 = vmatprep.mubr.msk.bf16.mxu0 %vm2003_vm1, %v2002_v2 }
  0xac   : > { %1714 = vmatmul.mubr.msk.bf16.gmra.mrb[16].mxu1 %vm276_vm2, %v592_v5 }
  0xad   : > { %1812 = vmatmul.mubr.msk.bf16.gmra.mrb[4].mxu0 %vm276_vm2, %v1179_v6  ;;  %1731 = vmatprep.mubr.msk.bf16.mxu1 %vm2003_vm1, %v2002_v2 }
  0xae   : > { %1815 = vmatprep.mubr.msk.bf16.mxu0 %vm2003_vm1, %v2002_v2 }
  0xb4   : > { %1732 = vmatmul.mubr.msk.bf16.vlgmr.msra.gmra.mrb[12].mxu1 %vm276_vm2, %v709_v11 }
  0xb5   : > { %1816 = vmatmul.mubr.msk.bf16.gmra.mrb[8].mxu0 %vm276_vm2, %v1180_v12  ;;  %1735 = vmatprep.mubr.msk.bf16.mxu1 %vm2003_vm1, %v2002_v2  ;;  %v1334_v12 = vpop.permute.xlu1 %1333 }
  0xb6   : > { %1819 = vmatprep.mubr.msk.bf16.mxu0 %vm2003_vm1, %v2002_v2 }
  0xbc   : > { %1736 = vmatmul.mubr.msk.bf16.gmra.mrb[16].mxu1 %vm276_vm2, %v710_v17 }
  0xbd   : > { %1820 = vmatmul.mubr.msk.bf16.gmra.mrb[12].mxu0 %vm276_vm2, %v1181_v18 }
  0xbe   : > { %1823 = vmatprep.mubr.msk.bf16.mxu0 %vm2003_vm1, %v2002_v2 }
  0xc5   : > { %1824 = vmatmul.mubr.msk.bf16.gmra.mrb[16].mxu0 %vm276_vm2, %v1182_v21 }
 0x15f   : > { %v647_v22 = vpop.f32.mrb[0].mxu1 }
 0x160   : > { %v1699_v23 = vpop.f32.mrb[1].mxu1 }
 0x161   : > { %v650_v24 = vpop.f32.mrb[2].mxu1 }
 0x162   : > { %v1700_v25 = vpop.f32.mrb[3].mxu1 }
 0x167   : > { %v655_v26 = vpop.f32.mrb[4].mxu1 }
 0x168   : > { %v1703_v27 = vpop.f32.mrb[5].mxu1 }
 0x169   : > { %v658_v28 = vpop.f32.mrb[6].mxu1 }
 0x16a   : > { %v1704_v29 = vpop.f32.mrb[7].mxu1 }
 0x16f   : > { %v663_v30 = vpop.f32.mrb[8].mxu1 }
 0x170   : > { %v1707_v31 = vpop.f32.mrb[9].mxu1 }
 0x171   : > { %v666_v32 = vpop.f32.mrb[10].mxu1 }
 0x172   : > { %v1708_v33 = vpop.f32.mrb[11].mxu1 }
 0x178   : > { %v1237_v2 = vpop.f32.mrb[0].mxu0 }
 0x179   : > { %v1829_v35 = vadd.f32 %v1237_v2, %v647_v22  ;;  %v1809_v36 = vpop.f32.mrb[1].mxu0 }
 0x17a   : > { %v1240_v37 = vpop.f32.mrb[2].mxu0 }
 0x17b   : > { %1286 = vst [vmem:[%s2378_s17] sm:$0xff] %v1829_v35  ;;  %v1830_v39 = vadd.f32 %v1240_v37, %v650_v24  ;;  %v1810_v40 = vpop.f32.mrb[3].mxu0  ;;  %v1356_v41 = vmul.f32 %v1829_v35, %v1309_v34 }
 0x17d   : > { %1287 = vst [vmem:[%s2378_s17 + $0x8] sm:$0xff] %v1830_v39  ;;  %v1357_v42 = vmul.f32 %v1830_v39, %v1314_v38  ;;  %v1382_v45 = vmul.f32 %v1829_v35, %v1356_v41 }
 0x17f   : > { %v1366_v44 = vadd.f32 %v1357_v42, %v1356_v41  ;;  %v1383_v46 = vmul.f32 %v1830_v39, %v1357_v42  ;;  %v1349_v42 = vpop.permute.xlu0 %1348 }
 0x180   : > { %v1245_v47 = vpop.f32.mrb[4].mxu0 }
 0x181   : > { %v1392_v48 = vadd.f32 %v1383_v46, %v1382_v45  ;;  %v1831_v49 = vadd.f32 %v1245_v47, %v655_v26  ;;  %v1813_v50 = vpop.f32.mrb[5].mxu0 }
 0x182   : > { %v1248_v51 = vpop.f32.mrb[6].mxu0 }
 0x183   : > { %1288 = vst [vmem:[%s2378_s17 + $0x10] sm:$0xff] %v1831_v49  ;;  %v1358_v52 = vmul.f32 %v1831_v49, %v1319_v43  ;;  %v1832_v53 = vadd.f32 %v1248_v51, %v658_v28  ;;  %v1814_v54 = vpop.f32.mrb[7].mxu0 }
 0x185   : > { %v1367_v56 = vadd.f32 %v1366_v44, %v1358_v52  ;;  %v1384_v57 = vmul.f32 %v1831_v49, %v1358_v52  ;;  %1289 = vst [vmem:[%s2378_s17 + $0x18] sm:$0xff] %v1832_v53  ;;  %v1359_v58 = vmul.f32 %v1832_v53, %v1324_v55 }
 0x187   : > { %v1393_v59 = vadd.f32 %v1392_v48, %v1384_v57  ;;  %v1368_v60 = vadd.f32 %v1367_v56, %v1359_v58  ;;  %v1385_v61 = vmul.f32 %v1832_v53, %v1359_v58  ;;  %v789_v62 = vpop.f32.mrb[12].mxu1 }
 0x188   : > { %v1253_v63 = vpop.f32.mrb[8].mxu0  ;;  %v1733_v0 = vpop.f32.mrb[13].mxu1 }
 0x189   : > { %v1394_v1 = vadd.f32 %v1393_v59, %v1385_v61  ;;  %v1833_v4 = vadd.f32 %v1253_v63, %v663_v30  ;;  %v1817_v5 = vpop.f32.mrb[9].mxu0  ;;  %v792_v6 = vpop.f32.mrb[14].mxu1 }
 0x18a   : > { %v1256_v7 = vpop.f32.mrb[10].mxu0  ;;  %v1734_v8 = vpop.f32.mrb[15].mxu1 }
 0x18b   : > { %1290 = vst [vmem:[%s2378_s17 + $0x20] sm:$0xff] %v1833_v4  ;;  %v1360_v9 = vmul.f32 %v1833_v4, %v1329_v3  ;;  %v1834_v10 = vadd.f32 %v1256_v7, %v666_v32  ;;  %v1818_v11 = vpop.f32.mrb[11].mxu0  ;;  %v1344_v32 = vpop.permute.xlu1 %1343 }
 0x18d   : > { %v1369_v13 = vadd.f32 %v1368_v60, %v1360_v9  ;;  %v1386_v14 = vmul.f32 %v1833_v4, %v1360_v9  ;;  %1291 = vst [vmem:[%s2378_s17 + $0x28] sm:$0xff] %v1834_v10  ;;  %v1361_v15 = vmul.f32 %v1834_v10, %v1334_v12 }
 0x18f   : > { %v1395_v17 = vadd.f32 %v1394_v1, %v1386_v14  ;;  %v1370_v18 = vadd.f32 %v1369_v13, %v1361_v15  ;;  %v1387_v19 = vmul.f32 %v1834_v10, %v1361_v15  ;;  %v797_v20 = vpop.f32.mrb[16].mxu1  ;;  %v1354_v47 = vpop.permute.xlu1 %1353 }
 0x190   : > { %v1261_v21 = vpop.f32.mrb[12].mxu0  ;;  %v1737_v22 = vpop.f32.mrb[17].mxu1 }
 0x191   : > { %v1396_v23 = vadd.f32 %v1395_v17, %v1387_v19  ;;  %v1835_v24 = vadd.f32 %v1261_v21, %v789_v62  ;;  %v1821_v25 = vpop.f32.mrb[13].mxu0  ;;  %v800_v26 = vpop.f32.mrb[18].mxu1 }
 0x192   : > { %v1264_v27 = vpop.f32.mrb[14].mxu0  ;;  %v1738_v28 = vpop.f32.mrb[19].mxu1 }
 0x193   : > { %1292 = vst [vmem:[%s2378_s17 + $0x30] sm:$0xff] %v1835_v24  ;;  %v1362_v29 = vmul.f32 %v1835_v24, %v1339_v16  ;;  %v1836_v30 = vadd.f32 %v1264_v27, %v792_v6  ;;  %v1822_v31 = vpop.f32.mrb[15].mxu0 }
 0x195   : > { %v1371_v33 = vadd.f32 %v1370_v18, %v1362_v29  ;;  %v1388_v34 = vmul.f32 %v1835_v24, %v1362_v29  ;;  %1293 = vst [vmem:[%s2378_s17 + $0x38] sm:$0xff] %v1836_v30  ;;  %v1363_v2 = vmul.f32 %v1836_v30, %v1344_v32 }
 0x197   : > { %v1397_v35 = vadd.f32 %v1396_v23, %v1388_v34  ;;  %v1372_v36 = vadd.f32 %v1371_v33, %v1363_v2  ;;  %v1389_v37 = vmul.f32 %v1836_v30, %v1363_v2 }
 0x198   : > { %v1269_v38 = vpop.f32.mrb[16].mxu0 }
 0x199   : > { %v1398_v39 = vadd.f32 %v1397_v35, %v1389_v37  ;;  %v1837_v40 = vadd.f32 %v1269_v38, %v797_v20  ;;  %v1825_v41 = vpop.f32.mrb[17].mxu0 }
 0x19a   : > { %v1272_v43 = vpop.f32.mrb[18].mxu0 }
 0x19b   : > { %1294 = vst [vmem:[%s2378_s17 + $0x40] sm:$0xff] %v1837_v40  ;;  %v1364_v44 = vmul.f32 %v1837_v40, %v1349_v42  ;;  %v1838_v45 = vadd.f32 %v1272_v43, %v800_v26  ;;  %v1826_v46 = vpop.f32.mrb[19].mxu0 }
 0x19d   : > { %v1373_v48 = vadd.f32 %v1372_v36, %v1364_v44  ;;  %v1390_v49 = vmul.f32 %v1837_v40, %v1364_v44  ;;  %1295 = vst [vmem:[%s2378_s17 + $0x48] sm:$0xff] %v1838_v45  ;;  %v1365_v50 = vmul.f32 %v1838_v45, %v1354_v47 }
 0x19f   : > { %v1399_v51 = vadd.f32 %v1398_v39, %v1390_v49  ;;  %v1374_v52 = vadd.f32 %v1373_v48, %v1365_v50  ;;  %v1391_v53 = vmul.f32 %v1838_v45, %v1365_v50 }
 0x1a1   : > { %v1375_v54 = vrot.slane %v1374_v52, 4  ;;  %v1400_v55 = vadd.f32 %v1399_v51, %v1391_v53 }
 0x1a3   : > { %v1376_v56 = vadd.f32 %v1375_v54, %v1374_v52  ;;  %v1401_v57 = vrot.slane %v1400_v55, 4 }
 0x1a5   : > { %v1377_v58 = vrot.slane %v1376_v56, 2  ;;  %v1402_v3 = vadd.f32 %v1401_v57, %v1400_v55 }
 0x1a7   : > { %v1378_v59 = vadd.f32 %v1377_v58, %v1376_v56  ;;  %v1403_v60 = vrot.slane %v1402_v3, 2 }
 0x1a9   : > { %v1379_v61 = vrot.slane %v1378_v59, 1  ;;  %v1404_v62 = vadd.f32 %v1403_v60, %v1402_v3 }
 0x1ab   : > { %v1380_v63 = vadd.f32 %v1379_v61, %v1378_v59  ;;  %v1405_v0 = vrot.slane %v1404_v62, 1 }
 0x1ad   : > { %1381 = vst [vmem:[%s238_s22] sm:$0x1] %v1380_v63  ;;  %v1406_v1 = vadd.f32 %v1405_v0, %v1404_v62 }
 0x1af   : > { %1407 = vst [vmem:[%s241_s25] sm:$0x1] %v1406_v1 }
 0x1b0 PF: > { %s16_s18 = sadd.s32 1, %s2000_s18  }
 0x1b1   : > { %p13_p4 = scmp.ge.s32.totalorder %s16_s18, 4  }
 0x1b3   :  { %15 = sbr.rel (!%p13_p4) target bundleno = 1 (0x1), region = 94 }

// kernel: downblock_forward.9
= control target key start
LH: loop header
LB: loop body
LE: loop exit
PB: predicated region body
PF: predicated region fallthrough
CT: control target
= control target key end

     0   :  { %vm180_vm0 = vcmask 1041408   ;;  %vm149_vm1 = vcmask 31744   ;;  %s733_s4 = inlined_call_operand.vmem [shape: bf16[4,128], index: 4, kind: input, shape index: {}]   ;;  %s734_s3 = inlined_call_operand.vmem [shape: f32[160,4], index: 3, kind: input, shape index: {}]   ;;  %s735_s0 = inlined_call_operand.vmem [shape: f32[160,128], index: 0, kind: input, shape index: {}]   ;;  %s736_s1 = inlined_call_operand.vmem [shape: f32[1,128], index: 1, kind: input, shape index: {}]   ;;  %s737_s2 = inlined_call_operand.vmem [shape: f32[1,128], index: 2, kind: input, shape index: {}]   ;;  %s738_s5 = inlined_call_operand.vmem [shape: f32[1,128], index: 5, kind: input, shape index: {}]   ;;  %s739_s6 = inlined_call_operand.vmem [shape: f32[160,128], index: 6, kind: output, shape index: {}]  }
   0x1   :  { %v148_v0 = vld [vmem:[%s733_s4] sm:$0x3]  ;;  %v119_v2 = vld [vmem:[%s734_s3 + $0x8] sm:$0xff]  ;;  %v120_v5 = vld [vmem:[%s734_s3 + $0x10] sm:$0xff] }
   0x2   :  { %v118_v1 = vld [vmem:[%s734_s3] sm:$0xff]  ;;  %416 = vmatprep.subr.msk.bf16.mxu0 %vm180_vm0, %v148_v0  ;;  %v182_v3 = vsel %vm180_vm0, %v148_v0, 0  ;;  %v121_v6 = vld [vmem:[%s734_s3 + $0x18] sm:$0xff]  ;;  %417 = vmatprep.subr.msk.bf16.mxu1 %vm180_vm0, %v148_v0  ;;  %v131_v9 = vld [vmem:[%s734_s3 + $0x68] sm:$0xff] }
   0x3   :  { %v138_v4 = vpack.c.bf16 %v119_v2, %v118_v1  ;;  %v130_v7 = vld [vmem:[%s734_s3 + $0x60] sm:$0xff]  ;;  %393 = vmatpush3.bf16.msra.mxu0 %v182_v3  ;;  %v139_v8 = vpack.c.bf16 %v121_v6, %v120_v5  ;;  %415 = vmatpush3.bf16.msra.mxu1 %v182_v3  ;;  %v132_v10 = vld [vmem:[%s734_s3 + $0x70] sm:$0xff]  ;;  %v133_v11 = vld [vmem:[%s734_s3 + $0x78] sm:$0xff] }
   0x4   :  { %v144_v12 = vpack.c.bf16 %v131_v9, %v130_v7  ;;  %v145_v13 = vpack.c.bf16 %v133_v11, %v132_v10  ;;  %v122_v14 = vld [vmem:[%s734_s3 + $0x20] sm:$0xff]  ;;  %v123_v15 = vld [vmem:[%s734_s3 + $0x28] sm:$0xff]  ;;  %v124_v20 = vld [vmem:[%s734_s3 + $0x30] sm:$0xff] }
   0x5   :  { %394 = vmatprep.mubr.msk.bf16.mxu0 %vm149_vm1, %v138_v4  ;;  %v140_v16 = vpack.c.bf16 %v123_v15, %v122_v14  ;;  %v134_v17 = vld [vmem:[%s734_s3 + $0x80] sm:$0xff]  ;;  %v135_v18 = vld [vmem:[%s734_s3 + $0x88] sm:$0xff]  ;;  %v125_v21 = vld [vmem:[%s734_s3 + $0x38] sm:$0xff] }
   0x6   :  { %395 = vmatmul.mubr.msk.bf16.vlgmr.msra.gmra.mrb[0].mxu0 %vm149_vm1, %v139_v8  ;;  %406 = vmatprep.mubr.msk.bf16.mxu1 %vm149_vm1, %v144_v12  ;;  %v146_v19 = vpack.c.bf16 %v135_v18, %v134_v17  ;;  %v136_v22 = vld [vmem:[%s734_s3 + $0x90] sm:$0xff]  ;;  %v137_v23 = vld [vmem:[%s734_s3 + $0x98] sm:$0xff]  ;;  %v126_v24 = vld [vmem:[%s734_s3 + $0x40] sm:$0xff]  ;;  %v141_v26 = vpack.c.bf16 %v125_v21, %v124_v20 }
   0x7   :  { %407 = vmatmul.mubr.msk.bf16.vlgmr.msra.gmra.mrb[0].mxu1 %vm149_vm1, %v145_v13  ;;  %398 = vmatprep.mubr.msk.bf16.mxu0 %vm149_vm1, %v140_v16  ;;  %v127_v25 = vld [vmem:[%s734_s3 + $0x48] sm:$0xff]  ;;  %v147_v27 = vpack.c.bf16 %v137_v23, %v136_v22  ;;  %v128_v29 = vld [vmem:[%s734_s3 + $0x50] sm:$0xff]  ;;  %v129_v30 = vld [vmem:[%s734_s3 + $0x58] sm:$0xff] }
   0x8   :  { %410 = vmatprep.mubr.msk.bf16.mxu1 %vm149_vm1, %v146_v19  ;;  %v142_v28 = vpack.c.bf16 %v127_v25, %v126_v24  ;;  %v143_v31 = vpack.c.bf16 %v129_v30, %v128_v29  ;;  %v26_v32 = vld [vmem:[%s735_s0 + $0x10] sm:$0xff]  ;;  %v532_v33 = vld [vmem:[%s736_s1] ss:$0 sm:$0xff]  ;;  %v27_v35 = vld [vmem:[%s735_s0 + $0x18] sm:$0xff] }
   0x9   :  { %v24_v34 = vld [vmem:[%s735_s0] sm:$0xff]  ;;  %v25_v36 = vld [vmem:[%s735_s0 + $0x8] sm:$0xff]  ;;  %v38_v37 = vld [vmem:[%s735_s0 + $0x70] sm:$0xff]  ;;  %v53_v40 = vmul.f32 %v532_v33, %v26_v32  ;;  %v54_v42 = vmul.f32 %v532_v33, %v27_v35 }
   0xa   :  { %v36_v38 = vld [vmem:[%s735_s0 + $0x60] sm:$0xff]  ;;  %v39_v39 = vld [vmem:[%s735_s0 + $0x78] sm:$0xff]  ;;  %v51_v41 = vmul.f32 %v532_v33, %v24_v34  ;;  %v30_v43 = vld [vmem:[%s735_s0 + $0x30] sm:$0xff]  ;;  %v52_v47 = vmul.f32 %v532_v33, %v25_v36  ;;  %v65_v48 = vmul.f32 %v532_v33, %v38_v37 }
   0xb   :  { %v37_v44 = vld [vmem:[%s735_s0 + $0x68] sm:$0xff]  ;;  %v28_v45 = vld [vmem:[%s735_s0 + $0x20] sm:$0xff]  ;;  %v63_v49 = vmul.f32 %v532_v33, %v36_v38  ;;  %v66_v50 = vmul.f32 %v532_v33, %v39_v39  ;;  %v57_v51 = vmul.f32 %v532_v33, %v30_v43  ;;  %v31_v54 = vld [vmem:[%s735_s0 + $0x38] sm:$0xff] }
   0xc   :  { %v567_v46 = vld [vmem:[%s737_s2] ss:$0 sm:$0xff]  ;;  %v64_v52 = vmul.f32 %v532_v33, %v37_v44  ;;  %v55_v53 = vmul.f32 %v532_v33, %v28_v45  ;;  %v29_v58 = vld [vmem:[%s735_s0 + $0x28] sm:$0xff]  ;;  %v58_v63 = vmul.f32 %v532_v33, %v31_v54  ;;  %v42_v0 = vld [vmem:[%s735_s0 + $0x90] sm:$0xff] }
   0xd   :  { %v80_v55 = vadd.f32 %v567_v46, %v53_v40  ;;  %v78_v56 = vadd.f32 %v567_v46, %v51_v41  ;;  %v81_v57 = vadd.f32 %v567_v46, %v54_v42  ;;  %v79_v59 = vadd.f32 %v567_v46, %v52_v47  ;;  %v40_v1 = vld [vmem:[%s735_s0 + $0x80] sm:$0xff]  ;;  %v43_v6 = vld [vmem:[%s735_s0 + $0x98] sm:$0xff]  ;;  %v34_v14 = vld [vmem:[%s735_s0 + $0x50] sm:$0xff] }
   0xe   :  { %399 = vmatmul.mubr.msk.bf16.gmra.mrb[4].mxu0 %vm149_vm1, %v141_v26  ;;  %v92_v60 = vadd.f32 %v567_v46, %v65_v48  ;;  %v90_v61 = vadd.f32 %v567_v46, %v63_v49  ;;  %v93_v62 = vadd.f32 %v567_v46, %v66_v50  ;;  %v597_v2 = vadd.f32 %v567_v46, %v57_v51  ;;  %v41_v15 = vld [vmem:[%s735_s0 + $0x88] sm:$0xff]  ;;  %v32_v16 = vld [vmem:[%s735_s0 + $0x40] sm:$0xff]  ;;  %v35_v47 = vld [vmem:[%s735_s0 + $0x58] sm:$0xff] }
   0xf   :  { %411 = vmatmul.mubr.msk.bf16.gmra.mrb[4].mxu1 %vm149_vm1, %v147_v27  ;;  %402 = vmatprep.mubr.msk.bf16.mxu0 %vm149_vm1, %v142_v28  ;;  %v91_v3 = vadd.f32 %v567_v46, %v64_v52  ;;  %v601_v4 = vadd.f32 %v567_v46, %v55_v53  ;;  %v56_v5 = vmul.f32 %v532_v33, %v29_v58  ;;  %v100_v7 = vmax.f32 %v80_v55, 0.0  ;;  %v625_v22 = vld [vmem:[%s738_s5] ss:$0 sm:$0xff]  ;;  %v33_v53 = vld [vmem:[%s735_s0 + $0x48] sm:$0xff] }
  0x10   :  { %v98_v8 = vmax.f32 %v78_v56, 0.0  ;;  %v101_v9 = vmax.f32 %v81_v57, 0.0  ;;  %v99_v10 = vmax.f32 %v79_v59, 0.0  ;;  %v112_v11 = vmax.f32 %v92_v60, 0.0 }
  0x11   :  { %v69_v12 = vmul.f32 %v532_v33, %v42_v0  ;;  %v67_v13 = vmul.f32 %v532_v33, %v40_v1  ;;  %v110_v17 = vmax.f32 %v90_v61, 0.0  ;;  %v113_v18 = vmax.f32 %v93_v62, 0.0 }
  0x12   :  { %v619_v19 = vadd.f32 %v567_v46, %v58_v63  ;;  %v70_v20 = vmul.f32 %v532_v33, %v43_v6  ;;  %v104_v23 = vmax.f32 %v597_v2, 0.0  ;;  %v111_v24 = vmax.f32 %v91_v3, 0.0 }
  0x13   :  { %v102_v25 = vmax.f32 %v601_v4, 0.0  ;;  %v630_v26 = vadd.f32 %v567_v46, %v56_v5  ;;  %v61_v30 = vmul.f32 %v532_v33, %v34_v14  ;;  %v59_v32 = vmul.f32 %v532_v33, %v32_v16 }
  0x14   :  { %v96_v38 = vadd.f32 %v567_v46, %v69_v12  ;;  %v94_v39 = vadd.f32 %v567_v46, %v67_v13  ;;  %v97_v45 = vadd.f32 %v567_v46, %v70_v20  ;;  %v62_v61 = vmul.f32 %v532_v33, %v35_v47 }
  0x15   :  { %v105_v63 = vmax.f32 %v619_v19, 0.0  ;;  %v60_v1 = vmul.f32 %v532_v33, %v33_v53  ;;  %v103_v3 = vmax.f32 %v630_v26, 0.0  ;;  %v86_v13 = vadd.f32 %v567_v46, %v59_v32 }
  0x16   :  { %403 = vmatmul.mubr.msk.bf16.gmra.mrb[8].mxu0 %vm149_vm1, %v143_v31  ;;  %v68_v31 = vmul.f32 %v532_v33, %v41_v15  ;;  %v116_v60 = vmax.f32 %v96_v38, 0.0  ;;  %v114_v0 = vmax.f32 %v94_v39, 0.0  ;;  %v117_v4 = vmax.f32 %v97_v45, 0.0 }
  0x17   :  { %v88_v33 = vadd.f32 %v567_v46, %v61_v30  ;;  %v89_v14 = vadd.f32 %v567_v46, %v62_v61  ;;  %v87_v20 = vadd.f32 %v567_v46, %v60_v1  ;;  %v106_v32 = vmax.f32 %v86_v13, 0.0 }
  0x18   :  { %v95_v57 = vadd.f32 %v567_v46, %v68_v31 }
  0xd9   :  { %v396_v21 = vpop.f32.mrb[0].mxu0 }
  0xda   :  { %v299_v27 = vadd.f32 %v396_v21, %v100_v7  ;;  %v218_v28 = vpop.f32.mrb[1].mxu0  ;;  %v408_v29 = vpop.f32.mrb[0].mxu1 }
  0xdb   :  { %v297_v34 = vadd.f32 %v218_v28, %v98_v8  ;;  %v397_v35 = vpop.f32.mrb[2].mxu0  ;;  %v311_v36 = vadd.f32 %v408_v29, %v112_v11  ;;  %v266_v37 = vpop.f32.mrb[1].mxu1  ;;  %v115_v8 = vmax.f32 %v95_v57, 0.0  ;;  %v108_v29 = vmax.f32 %v88_v33, 0.0 }
  0xdc   :  { %v326_v40 = vadd.f32 %v625_v22, %v299_v27  ;;  %v300_v41 = vadd.f32 %v397_v35, %v101_v9  ;;  %v221_v42 = vpop.f32.mrb[3].mxu0  ;;  %v309_v43 = vadd.f32 %v266_v37, %v110_v17  ;;  %v409_v44 = vpop.f32.mrb[2].mxu1  ;;  %v109_v35 = vmax.f32 %v89_v14, 0.0 }
  0xdd   :  { %v324_v48 = vadd.f32 %v625_v22, %v297_v34  ;;  %v298_v49 = vadd.f32 %v221_v42, %v99_v10  ;;  %v338_v50 = vadd.f32 %v625_v22, %v311_v36  ;;  %v312_v51 = vadd.f32 %v409_v44, %v113_v18  ;;  %v269_v52 = vpop.f32.mrb[3].mxu1 }
  0xde   :  { %346 = vst [vmem:[%s739_s6 + $0x10] sm:$0xff] %v326_v40  ;;  %v327_v54 = vadd.f32 %v625_v22, %v300_v41  ;;  %v336_v55 = vadd.f32 %v625_v22, %v309_v43  ;;  %v310_v56 = vadd.f32 %v269_v52, %v111_v24  ;;  %v107_v37 = vmax.f32 %v87_v20, 0.0 }
  0xdf   :  { %344 = vst [vmem:[%s739_s6] sm:$0xff] %v324_v48  ;;  %v325_v58 = vadd.f32 %v625_v22, %v298_v49  ;;  %358 = vst [vmem:[%s739_s6 + $0x70] sm:$0xff] %v338_v50  ;;  %v339_v59 = vadd.f32 %v625_v22, %v312_v51 }
  0xe0   :  { %347 = vst [vmem:[%s739_s6 + $0x18] sm:$0xff] %v327_v54  ;;  %356 = vst [vmem:[%s739_s6 + $0x60] sm:$0xff] %v336_v55  ;;  %v337_v62 = vadd.f32 %v625_v22, %v310_v56 }
  0xe1   :  { %345 = vst [vmem:[%s739_s6 + $0x8] sm:$0xff] %v325_v58  ;;  %359 = vst [vmem:[%s739_s6 + $0x78] sm:$0xff] %v339_v59  ;;  %v400_v2 = vpop.f32.mrb[4].mxu0 }
  0xe2   :  { %v303_v5 = vadd.f32 %v400_v2, %v104_v23  ;;  %357 = vst [vmem:[%s739_s6 + $0x68] sm:$0xff] %v337_v62  ;;  %v234_v6 = vpop.f32.mrb[5].mxu0  ;;  %v412_v7 = vpop.f32.mrb[4].mxu1 }
  0xe3   :  { %v301_v9 = vadd.f32 %v234_v6, %v102_v25  ;;  %v401_v10 = vpop.f32.mrb[6].mxu0  ;;  %v315_v11 = vadd.f32 %v412_v7, %v116_v60  ;;  %v282_v12 = vpop.f32.mrb[5].mxu1 }
  0xe4   :  { %v330_v15 = vadd.f32 %v625_v22, %v303_v5  ;;  %v304_v16 = vadd.f32 %v401_v10, %v105_v63  ;;  %v237_v17 = vpop.f32.mrb[7].mxu0  ;;  %v313_v18 = vadd.f32 %v282_v12, %v114_v0  ;;  %v413_v19 = vpop.f32.mrb[6].mxu1 }
  0xe5   :  { %v328_v21 = vadd.f32 %v625_v22, %v301_v9  ;;  %v302_v23 = vadd.f32 %v237_v17, %v103_v3  ;;  %v342_v24 = vadd.f32 %v625_v22, %v315_v11  ;;  %v316_v25 = vadd.f32 %v413_v19, %v117_v4  ;;  %v285_v26 = vpop.f32.mrb[7].mxu1 }
  0xe6   :  { %350 = vst [vmem:[%s739_s6 + $0x30] sm:$0xff] %v330_v15  ;;  %v331_v27 = vadd.f32 %v625_v22, %v304_v16  ;;  %v340_v28 = vadd.f32 %v625_v22, %v313_v18  ;;  %v314_v30 = vadd.f32 %v285_v26, %v115_v8 }
  0xe7   :  { %348 = vst [vmem:[%s739_s6 + $0x20] sm:$0xff] %v328_v21  ;;  %v329_v46 = vadd.f32 %v625_v22, %v302_v23  ;;  %362 = vst [vmem:[%s739_s6 + $0x90] sm:$0xff] %v342_v24  ;;  %v343_v31 = vadd.f32 %v625_v22, %v316_v25 }
  0xe8   :  { %351 = vst [vmem:[%s739_s6 + $0x38] sm:$0xff] %v331_v27  ;;  %360 = vst [vmem:[%s739_s6 + $0x80] sm:$0xff] %v340_v28  ;;  %v341_v34 = vadd.f32 %v625_v22, %v314_v30 }
  0xe9   :  { %349 = vst [vmem:[%s739_s6 + $0x28] sm:$0xff] %v329_v46  ;;  %363 = vst [vmem:[%s739_s6 + $0x98] sm:$0xff] %v343_v31  ;;  %v404_v36 = vpop.f32.mrb[8].mxu0 }
  0xea   :  { %v307_v38 = vadd.f32 %v404_v36, %v108_v29  ;;  %361 = vst [vmem:[%s739_s6 + $0x88] sm:$0xff] %v341_v34  ;;  %v250_v39 = vpop.f32.mrb[9].mxu0 }
  0xeb   :  { %v305_v40 = vadd.f32 %v250_v39, %v106_v32  ;;  %v405_v41 = vpop.f32.mrb[10].mxu0 }
  0xec   :  { %v334_v42 = vadd.f32 %v625_v22, %v307_v38  ;;  %v308_v43 = vadd.f32 %v405_v41, %v109_v35  ;;  %v253_v44 = vpop.f32.mrb[11].mxu0 }
  0xed   :  { %v332_v45 = vadd.f32 %v625_v22, %v305_v40  ;;  %v306_v47 = vadd.f32 %v253_v44, %v107_v37 }
  0xee   :  { %354 = vst [vmem:[%s739_s6 + $0x50] sm:$0xff] %v334_v42  ;;  %v335_v48 = vadd.f32 %v625_v22, %v308_v43 }
  0xef   :  { %352 = vst [vmem:[%s739_s6 + $0x40] sm:$0xff] %v332_v45  ;;  %v333_v49 = vadd.f32 %v625_v22, %v306_v47 }
  0xf0   :  { %355 = vst [vmem:[%s739_s6 + $0x58] sm:$0xff] %v335_v48 }
  0xf1   :  { %353 = vst [vmem:[%s739_s6 + $0x48] sm:$0xff] %v333_v49 }

// kernel: downblock_forward.8
= control target key start
LH: loop header
LB: loop body
LE: loop exit
PB: predicated region body
PF: predicated region fallthrough
CT: control target
= control target key end

     0   :  { %s2856_s18 = smov 0   ;;  %s3482_s0 = inlined_call_operand.vmem [shape: f32[2,108,128], index: 0, kind: input, shape index: {}]   ;;  %s3483_s1 = inlined_call_operand.vmem [shape: bf16[9,128,128], index: 1, kind: input, shape index: {}]   ;;  %s3484_s2 = inlined_call_operand.vmem [shape: f32[80,1], index: 2, kind: input, shape index: {}]   ;;  %s3485_s3 = inlined_call_operand.vmem [shape: f32[2,80,128], index: 3, kind: output, shape index: {0}]   ;;  %s3486_s4 = inlined_call_operand.vmem [shape: f32[2,1,128], index: 4, kind: output, shape index: {1}]   ;;  %s3487_s5 = inlined_call_operand.vmem [shape: f32[2,1,128], index: 5, kind: output, shape index: {2}]  }
   0x1 LB: > { %s1916_s19 = sadd.s32 4294967295, %s2821_s18   ;;  %p1920_p0 = scmp.ge.s32.totalorder %s2821_s18, 1  ;;  %s2821_s18 = sphi %s2856_s18, %s16_s18  }
   0x2   : > { %p192_p1 = scmp.lt.s32.totalorder %s2821_s18, 3 }
   0x4   : > { %p193_p2 = pnand %p1920_p0, %p192_p1 }
   0x5   : > { %v2743_v0 = vld [vmem:[%s3483_s1 + $0x40] sm:$0xff] (!%p193_p2)   ;;  %v2823_v1 = vmov (!%p193_p2), 0.0   ;;  %v2745_v3 = vld [vmem:[%s3483_s1 + $0x48] sm:$0xff] (!%p193_p2)   ;;  %vm2824_vm0 = vmmov (!%p193_p2), 0   ;;  %v2747_v5 = vld [vmem:[%s3483_s1 + $0x50] sm:$0xff] (!%p193_p2)   ;;  %p226_p3 = scmp.lt.s32.totalorder (!%p193_p2), %s1916_s19, 1 }
   0x6   : > { %196 = sbr.rel (%p193_p2) target bundleno = 458 (0x1ca), region = 32  ;;  %2242 = vmatprep.subr.bf16.mxu1 (!%p193_p2), %v2823_v1  ;;  %2386 = vmatprep.subr.bf16.mxu0 (!%p193_p2), %v2823_v1  ;;  %v2744_v2 = vld [vmem:[%s3483_s1 + $0x100] sm:$0xff] (!%p193_p2)   ;;  %v2746_v4 = vld [vmem:[%s3483_s1 + $0x108] sm:$0xff] (!%p193_p2)   ;;  %v2748_v6 = vld [vmem:[%s3483_s1 + $0x110] sm:$0xff] (!%p193_p2)  }
   0x7   : > { %2243 = vmatpush3.bf16.msra.mxu1 (!%p193_p2), %v2743_v0  ;;  %2258 = vmatprep.mubr.msk.bf16.mxu1 (!%p193_p2), %vm2824_vm0, %v2823_v1  ;;  %v2749_v7 = vld [vmem:[%s3483_s1 + $0x58] sm:$0xff] (!%p193_p2)   ;;  %v2751_v9 = vld [vmem:[%s3483_s1 + $0x60] sm:$0xff] (!%p193_p2)   ;;  %v2753_v11 = vld [vmem:[%s3483_s1 + $0x68] sm:$0xff] (!%p193_p2)  }
   0x8   : > { %2387 = vmatpush3.bf16.msra.mxu0 (!%p193_p2), %v2744_v2  ;;  %2244 = vmatprep.subr.bf16.mxu1 (!%p193_p2), %v2823_v1  ;;  %v2750_v8 = vld [vmem:[%s3483_s1 + $0x118] sm:$0xff] (!%p193_p2)   ;;  %v2752_v10 = vld [vmem:[%s3483_s1 + $0x120] sm:$0xff] (!%p193_p2)   ;;  %v2754_v12 = vld [vmem:[%s3483_s1 + $0x128] sm:$0xff] (!%p193_p2)  }
   0x9   : > { %2388 = vmatprep.subr.bf16.mxu0 (!%p193_p2), %v2823_v1  ;;  %2402 = vmatprep.mubr.msk.bf16.mxu0 (!%p193_p2), %vm2824_vm0, %v2823_v1  ;;  %v2755_v13 = vld [vmem:[%s3483_s1 + $0x70] sm:$0xff] (!%p193_p2)   ;;  %v2757_v15 = vld [vmem:[%s3483_s1 + $0x78] sm:$0xff] (!%p193_p2)   ;;  %v2759_v23 = vld [vmem:[%s3483_s1 + $0x140] sm:$0xff] (!%p193_p2)  }
   0xa   : > { %v2756_v14 = vld [vmem:[%s3483_s1 + $0x130] sm:$0xff] (!%p193_p2)   ;;  %v2758_v17 = vld [vmem:[%s3483_s1 + $0x138] sm:$0xff] (!%p193_p2)   ;;  %v2761_v24 = vld [vmem:[%s3483_s1] sm:$0xff] (!%p193_p2)  }
   0xb   : > { %2245 = vmatpush3.bf16.msra.mxu1 (!%p193_p2), %v2745_v3  ;;  %v2760_v25 = vld [vmem:[%s3483_s1 + $0x148] sm:$0xff] (!%p193_p2)   ;;  %v2762_v33 = vld [vmem:[%s3483_s1 + $0x150] sm:$0xff] (!%p193_p2)   ;;  %v2764_v39 = vld [vmem:[%s3483_s1 + $0x158] sm:$0xff] (!%p193_p2)  }
   0xc   : > { %2389 = vmatpush3.bf16.msra.mxu0 (!%p193_p2), %v2746_v4  ;;  %2246 = vmatprep.subr.bf16.mxu1 (!%p193_p2), %v2823_v1  ;;  %v2763_v30 = vld [vmem:[%s3483_s1 + $0x8] sm:$0xff] (!%p193_p2)   ;;  %v2765_v34 = vld [vmem:[%s3483_s1 + $0x10] sm:$0xff] (!%p193_p2)   ;;  %v2766_v40 = vld [vmem:[%s3483_s1 + $0x18] sm:$0xff] (!%p193_p2)  }
   0xd   : > { %2390 = vmatprep.subr.bf16.mxu0 %v2823_v1  ;;  %s3489_s19 = smov (!%p226_p3, %s1916_s19), 1  ;;  %v2767_v43 = vld [vmem:[%s3483_s1 + $0x160] sm:$0xff]   ;;  %v2769_v49 = vld [vmem:[%s3483_s1 + $0x168] sm:$0xff]   ;;  %v2771_v53 = vld [vmem:[%s3483_s1 + $0x170] sm:$0xff]  }
   0xe   : > { %s2728_s15 = smul.u32 112, %s3489_s19  ;;  %v2768_v45 = vld [vmem:[%s3483_s1 + $0x20] sm:$0xff]   ;;  %v2770_v50 = vld [vmem:[%s3483_s1 + $0x28] sm:$0xff]   ;;  %v2772_v54 = vld [vmem:[%s3483_s1 + $0x30] sm:$0xff]   ;;  %s238_s13 = scalar_lea.vmem %s3486_s4, %s3489_s19 }
   0xf   : > { %2247 = vmatpush3.bf16.msra.mxu1 %v2747_v5  ;;  %v2773_v59 = vld [vmem:[%s3483_s1 + $0x178] sm:$0xff]   ;;  %s241_s16 = scalar_lea.vmem %s3487_s5, %s3489_s19 }
  0x10   : > { %2391 = vmatpush3.bf16.msra.mxu0 %v2748_v6  ;;  %2248 = vmatprep.subr.bf16.mxu1 %v2823_v1  ;;  %s2926_s24 = scalar_lea.vmem %s3482_s0, %s2728_s15  ;;  %v2774_v60 = vld [vmem:[%s3483_s1 + $0x38] sm:$0xff]   ;;  %v2775_v6 = vld [vmem:[%s3483_s1 + $0x180] sm:$0xff]  }
  0x11   : > { %2392 = vmatprep.subr.bf16.mxu0 %v2823_v1  ;;  %v274_v16 = vld [vmem:[%s2926_s24 + $0x1] sm:$0xff]  ;;  %v275_v18 = vld [vmem:[%s2926_s24 + $0x9] sm:$0xff]  ;;  %v875_v20 = vld [vmem:[%s2926_s24 + $0x13] sm:$0xff] }
  0x12   : > { %v874_v19 = vld [vmem:[%s2926_s24 + $0xb] sm:$0xff]  ;;  %v284_v21 = vpack.c.bf16 %v275_v18, %v274_v16  ;;  %v277_v27 = vld [vmem:[%s2926_s24 + $0x19] sm:$0xff]  ;;  %v877_v29 = vld [vmem:[%s2926_s24 + $0x23] sm:$0xff] }
  0x13   : > { %2249 = vmatpush3.bf16.msra.mxu1 %v2749_v7  ;;  %v884_v22 = vpack.c.bf16 %v875_v20, %v874_v19  ;;  %v276_v26 = vld [vmem:[%s2926_s24 + $0x11] sm:$0xff]  ;;  %v876_v28 = vld [vmem:[%s2926_s24 + $0x1b] sm:$0xff]  ;;  %v279_v36 = vld [vmem:[%s2926_s24 + $0x29] sm:$0xff] }
  0x14   : > { %2393 = vmatpush3.bf16.msra.mxu0 %v2750_v8  ;;  %2250 = vmatprep.subr.bf16.mxu1 %v2823_v1  ;;  %v285_v31 = vpack.c.bf16 %v277_v27, %v276_v26  ;;  %v885_v32 = vpack.c.bf16 %v877_v29, %v876_v28  ;;  %v278_v35 = vld [vmem:[%s2926_s24 + $0x21] sm:$0xff]  ;;  %v878_v37 = vld [vmem:[%s2926_s24 + $0x2b] sm:$0xff]  ;;  %v879_v38 = vld [vmem:[%s2926_s24 + $0x33] sm:$0xff] }
  0x15   : > { %2394 = vmatprep.subr.bf16.mxu0 %v2823_v1  ;;  %v286_v41 = vpack.c.bf16 %v279_v36, %v278_v35  ;;  %v886_v42 = vpack.c.bf16 %v879_v38, %v878_v37  ;;  %v280_v44 = vld [vmem:[%s2926_s24 + $0x31] sm:$0xff]  ;;  %v281_v46 = vld [vmem:[%s2926_s24 + $0x39] sm:$0xff]  ;;  %v881_v48 = vld [vmem:[%s2926_s24 + $0x43] sm:$0xff] }
  0x16   : > { %v880_v47 = vld [vmem:[%s2926_s24 + $0x3b] sm:$0xff]  ;;  %v287_v51 = vpack.c.bf16 %v281_v46, %v280_v44  ;;  %v283_v56 = vld [vmem:[%s2926_s24 + $0x49] sm:$0xff]  ;;  %v883_v58 = vld [vmem:[%s2926_s24 + $0x53] sm:$0xff] }
  0x17   : > { %2251 = vmatpush3.bf16.msra.mxu1 %v2751_v9  ;;  %v887_v52 = vpack.c.bf16 %v881_v48, %v880_v47  ;;  %v282_v55 = vld [vmem:[%s2926_s24 + $0x41] sm:$0xff]  ;;  %v882_v57 = vld [vmem:[%s2926_s24 + $0x4b] sm:$0xff]  ;;  %v3054_v3 = vld [vmem:[%s2926_s24 + $0x14] sm:$0xff] }
  0x18   : > { %2395 = vmatpush3.bf16.msra.mxu0 %v2752_v10  ;;  %2252 = vmatprep.subr.bf16.mxu1 %v2823_v1  ;;  %v288_v61 = vpack.c.bf16 %v283_v56, %v282_v55  ;;  %v888_v62 = vpack.c.bf16 %v883_v58, %v882_v57  ;;  %v243_v63 = vld [vmem:[%s2926_s24] sm:$0xff]  ;;  %v244_v0 = vld [vmem:[%s2926_s24 + $0x8] sm:$0xff]  ;;  %v245_v7 = vld [vmem:[%s2926_s24 + $0x10] sm:$0xff] }
  0x19   : > { %2396 = vmatprep.subr.bf16.mxu0 %v2823_v1  ;;  %v1037_v2 = vld [vmem:[%s2926_s24 + $0xc] sm:$0xff]  ;;  %v253_v4 = vpack.c.bf16 %v244_v0, %v243_v63  ;;  %v2777_v8 = vld [vmem:[%s3483_s1 + $0x80] sm:$0xff]   ;;  %v246_v10 = vld [vmem:[%s2926_s24 + $0x18] sm:$0xff] }
  0x1a   : > { %v1047_v5 = vpack.c.bf16 %v3054_v3, %v1037_v2  ;;  %v2776_v9 = vld [vmem:[%s3483_s1 + $0x188] sm:$0xff]   ;;  %v2778_v16 = vld [vmem:[%s3483_s1 + $0x190] sm:$0xff]   ;;  %v247_v18 = vld [vmem:[%s2926_s24 + $0x20] sm:$0xff] }
  0x1b   : > { %2253 = vmatpush3.bf16.msra.mxu1 %v2753_v11  ;;  %v3071_v11 = vld [vmem:[%s2926_s24 + $0x1c] sm:$0xff]  ;;  %v248_v19 = vld [vmem:[%s2926_s24 + $0x28] sm:$0xff]  ;;  %v249_v29 = vld [vmem:[%s2926_s24 + $0x30] sm:$0xff] }
  0x1c   : > { %2397 = vmatpush3.bf16.msra.mxu0 %v2754_v12  ;;  %2254 = vmatprep.subr.bf16.mxu1 %v2823_v1  ;;  %v3076_v12 = vld [vmem:[%s2926_s24 + $0x24] sm:$0xff]  ;;  %v3098_v20 = vld [vmem:[%s2926_s24 + $0x2c] sm:$0xff]  ;;  %v2789_v44 = vld [vmem:[%s3483_s1 + $0x1b8] sm:$0xff]   ;;  %v1210_v56 = vpack.c.bf16 %v3071_v11, %v3054_v3 }
  0x1d   : > { %2398 = vmatprep.subr.bf16.mxu0 %v2823_v1  ;;  %v2783_v27 = vld [vmem:[%s3483_s1 + $0x1a0] sm:$0xff]   ;;  %v2787_v37 = vld [vmem:[%s3483_s1 + $0x1b0] sm:$0xff]   ;;  %v2790_v46 = vld [vmem:[%s3483_s1 + $0xb8] sm:$0xff]   ;;  %v1211_v3 = vpack.c.bf16 %v3098_v20, %v3076_v12 }
  0x1e   : > { %v2784_v28 = vld [vmem:[%s3483_s1 + $0xa0] sm:$0xff]   ;;  %v2788_v38 = vld [vmem:[%s3483_s1 + $0xb0] sm:$0xff]   ;;  %v1704_v55 = vld [vmem:[%s3484_s2 + $0x28] sm:$0xff] }
  0x1f   : > { %2255 = vmatpush3.bf16.msra.mxu1 %v2755_v13  ;;  %v2779_v13 = vld [vmem:[%s3483_s1 + $0x88] sm:$0xff]   ;;  %v2791_v57 = vld [vmem:[%s3483_s1 + $0x1c0] sm:$0xff]   ;;  %v1706_v63 = vld [vmem:[%s3484_s2 + $0x38] sm:$0xff] }
  0x20   : > { %2399 = vmatpush3.bf16.msra.mxu0 %v2756_v14  ;;  %2256 = vmatprep.subr.bf16.mxu1 %v2823_v1  ;;  %v254_v14 = vpack.c.bf16 %v246_v10, %v245_v7  ;;  %v2793_v58 = vld [vmem:[%s3483_s1 + $0xc0] sm:$0xff]   ;;  %v2795_v0 = vld [vmem:[%s3483_s1 + $0xc8] sm:$0xff]  }
  0x21   : > { %2400 = vmatprep.subr.bf16.mxu0 %v2823_v1  ;;  %v3254_v7 = vld [vmem:[%s2926_s24 + $0x2a] sm:$0xff] }
  0x22   : > { %v1708_v10 = vld [vmem:[%s3484_s2 + $0x48] sm:$0xff] }
  0x23   : > { %2257 = vmatpush3.bf16.msra.mxu1 %v2757_v15  ;;  %v1048_v15 = vpack.c.bf16 %v3076_v12, %v3071_v11  ;;  %v2798_v11 = vld [vmem:[%s3483_s1 + $0xd8] sm:$0xff]  }
  0x24   : > { %2401 = vmatpush3.bf16.msra.mxu0 %v2758_v17  ;;  %2278 = vmatprep.subr.bf16.mxu1 %v2823_v1  ;;  %v2781_v17 = vld [vmem:[%s3483_s1 + $0x90] sm:$0xff]  }
  0x25   : > { %2422 = vmatprep.subr.bf16.mxu0 %v2823_v1 }
  0x26   : > { %2259 = vmatmul.mubr.bf16.vlgmr.msra.gmra.mrb[0].mxu1 %v284_v21  ;;  %v3103_v21 = vld [vmem:[%s2926_s24 + $0x34] sm:$0xff] }
  0x27   : > { %2403 = vmatmul.mubr.bf16.vlgmr.msra.gmra.mrb[0].mxu0 %v884_v22  ;;  %2262 = vmatprep.mubr.msk.bf16.mxu1 %vm2824_vm0, %v2823_v1  ;;  %v2780_v22 = vld [vmem:[%s3483_s1 + $0x198] sm:$0xff]   ;;  %v1049_v26 = vpack.c.bf16 %v3103_v21, %v3098_v20 }
  0x28   : > { %2423 = vmatpush3.bf16.msra.mxu0 %v2759_v23  ;;  %2406 = vmatprep.mubr.msk.bf16.mxu0 %vm2824_vm0, %v2823_v1  ;;  %v2782_v23 = vld [vmem:[%s3483_s1 + $0x98] sm:$0xff]  }
  0x29   : > { %2424 = vmatprep.subr.bf16.mxu0 %v2823_v1  ;;  %2279 = vmatpush3.bf16.msra.mxu1 %v2761_v24  ;;  %v255_v24 = vpack.c.bf16 %v248_v19, %v247_v18  ;;  %v2801_v18 = vld [vmem:[%s3483_s1 + $0x1e8] sm:$0xff]  }
  0x2a   : > { %2280 = vmatprep.subr.bf16.mxu1 %v2823_v1  ;;  %v2802_v19 = vld [vmem:[%s3483_s1 + $0xe8] sm:$0xff]  }
  0x2c   : > { %2425 = vmatpush3.bf16.msra.mxu0 %v2760_v25  ;;  %v2825_v25 = vmov 0  }
  0x2d   : > { %2426 = vmatprep.subr.bf16.mxu0 %v2823_v1  ;;  %2281 = vmatpush3.bf16.msra.mxu1 %v2763_v30  ;;  %v250_v30 = vld [vmem:[%s2926_s24 + $0x38] sm:$0xff] }
  0x2e   : > { %2263 = vmatmul.mubr.bf16.gmra.mrb[4].mxu1 %v285_v31  ;;  %2282 = vmatprep.subr.bf16.mxu1 %v2823_v1  ;;  %v3128_v31 = vld [vmem:[%s2926_s24 + $0x3c] sm:$0xff]  ;;  %v256_v35 = vpack.c.bf16 %v250_v30, %v249_v29 }
  0x2f   : > { %2407 = vmatmul.mubr.bf16.gmra.mrb[4].mxu0 %v885_v32  ;;  %2266 = vmatprep.mubr.msk.bf16.mxu1 %vm2824_vm0, %v2823_v1  ;;  %v3133_v32 = vld [vmem:[%s2926_s24 + $0x44] sm:$0xff] }
  0x30   : > { %2427 = vmatpush3.bf16.msra.mxu0 %v2762_v33  ;;  %2410 = vmatprep.mubr.msk.bf16.mxu0 %vm2824_vm0, %v2823_v1  ;;  %v2785_v33 = vld [vmem:[%s3483_s1 + $0x1a8] sm:$0xff]   ;;  %v1050_v36 = vpack.c.bf16 %v3133_v32, %v3128_v31 }
  0x31   : > { %2428 = vmatprep.subr.bf16.mxu0 %v2823_v1  ;;  %2283 = vmatpush3.bf16.msra.mxu1 %v2765_v34  ;;  %v2786_v34 = vld [vmem:[%s3483_s1 + $0xa8] sm:$0xff]  }
  0x32   : > { %2284 = vmatprep.subr.bf16.mxu1 %v2823_v1  ;;  %2741 = vset.pattern.permute.xlu0 %v2825_v25 }
  0x33   : > { %2742 = vset.pattern.permute.xlu1 %v2825_v25  ;;  %v3320_v25 = vld [vmem:[%s2926_s24 + $0x4a] sm:$0xff] }
  0x34   : > { %2429 = vmatpush3.bf16.msra.mxu0 %v2764_v39  ;;  %v251_v39 = vld [vmem:[%s2926_s24 + $0x40] sm:$0xff] }
  0x35   : > { %2430 = vmatprep.subr.bf16.mxu0 %v2823_v1  ;;  %2285 = vmatpush3.bf16.msra.mxu1 %v2766_v40  ;;  %v252_v40 = vld [vmem:[%s2926_s24 + $0x48] sm:$0xff] }
  0x36   : > { %2267 = vmatmul.mubr.bf16.gmra.mrb[8].mxu1 %v286_v41  ;;  %2286 = vmatprep.subr.bf16.mxu1 %v2823_v1  ;;  %v3158_v41 = vld [vmem:[%s2926_s24 + $0x4c] sm:$0xff]  ;;  %v257_v47 = vpack.c.bf16 %v252_v40, %v251_v39 }
  0x37   : > { %2411 = vmatmul.mubr.bf16.gmra.mrb[8].mxu0 %v886_v42  ;;  %2270 = vmatprep.mubr.msk.bf16.mxu1 %vm2824_vm0, %v2823_v1  ;;  %v1699_v42 = vld [vmem:[%s3484_s2] sm:$0xff] }
  0x38   : > { %2431 = vmatpush3.bf16.msra.mxu0 %v2767_v43  ;;  %2414 = vmatprep.mubr.msk.bf16.mxu0 %vm2824_vm0, %v2823_v1  ;;  %v3166_v43 = vld [vmem:[%s2926_s24 + $0x54] sm:$0xff] }
  0x39   : > { %2287 = vmatpush3.bf16.msra.mxu1 %v2768_v45  ;;  %2432 = vmatprep.subr.bf16.mxu0 %v2823_v1  ;;  %v1701_v45 = vld [vmem:[%s3484_s2 + $0x10] sm:$0xff]  ;;  %v1051_v48 = vpack.c.bf16 %v3166_v43, %v3158_v41 }
  0x3a   : > { %2288 = vmatprep.subr.bf16.mxu1 %v2823_v1  ;;  %1711 = vperm.xlu0 %2741, %v1699_v42   ;;  %v1367_v42 = vld [vmem:[%s2926_s24 + $0x35] sm:$0xff] }
  0x3b   : > { %1721 = vperm.xlu1 %2742, %v1701_v45  }
  0x3c   : > { %2433 = vmatpush3.bf16.msra.mxu0 %v2769_v49  ;;  %v1700_v49 = vld [vmem:[%s3484_s2 + $0x8] sm:$0xff] }
  0x3d   : > { %2289 = vmatpush3.bf16.msra.mxu1 %v2770_v50  ;;  %2434 = vmatprep.subr.bf16.mxu0 %v2823_v1  ;;  %v1702_v50 = vld [vmem:[%s3484_s2 + $0x18] sm:$0xff] }
  0x3e   : > { %2271 = vmatmul.mubr.bf16.gmra.mrb[12].mxu1 %v287_v51  ;;  %2290 = vmatprep.subr.bf16.mxu1 %v2823_v1  ;;  %v548_v51 = vld [vmem:[%s2926_s24 + $0x2] sm:$0xff] }
  0x3f   : > { %2415 = vmatmul.mubr.bf16.gmra.mrb[12].mxu0 %v887_v52  ;;  %2274 = vmatprep.mubr.msk.bf16.mxu1 %vm2824_vm0, %v2823_v1  ;;  %v3193_v52 = vld [vmem:[%s2926_s24 + $0xa] sm:$0xff] }
  0x40   : > { %2418 = vmatprep.mubr.msk.bf16.mxu0 %vm2824_vm0, %v2823_v1  ;;  %2435 = vmatpush3.bf16.msra.mxu0 %v2771_v53  ;;  %v1703_v53 = vld [vmem:[%s3484_s2 + $0x20] sm:$0xff] }
  0x41   : > { %2291 = vmatpush3.bf16.msra.mxu1 %v2772_v54  ;;  %2436 = vmatprep.subr.bf16.mxu0 %v2823_v1  ;;  %v558_v54 = vpack.c.bf16 %v3193_v52, %v548_v51 }
  0x42   : > { %2292 = vmatprep.subr.bf16.mxu1 %v2823_v1  ;;  %1716 = vperm.xlu0 %2741, %v1700_v49   ;;  %v1370_v49 = vld [vmem:[%s2926_s24 + $0x4d] sm:$0xff] }
  0x43   : > { %1726 = vperm.xlu1 %2742, %v1702_v50   ;;  %v2812_v50 = vld [vmem:[%s3483_s1 + $0x228] sm:$0xff]  }
  0x44   : > { %2437 = vmatpush3.bf16.msra.mxu0 %v2773_v59  ;;  %v3215_v59 = vld [vmem:[%s2926_s24 + $0x12] sm:$0xff] }
  0x45   : > { %2293 = vmatpush3.bf16.msra.mxu1 %v2774_v60  ;;  %2458 = vmatprep.subr.bf16.mxu0 %v2823_v1  ;;  %v3218_v60 = vld [vmem:[%s2926_s24 + $0x1a] sm:$0xff] }
  0x46   : > { %2275 = vmatmul.mubr.bf16.gmra.mrb[16].mxu1 %v288_v61  ;;  %2314 = vmatprep.subr.bf16.mxu1 %v2823_v1  ;;  %v1705_v61 = vld [vmem:[%s3484_s2 + $0x30] sm:$0xff]  ;;  %v559_v2 = vpack.c.bf16 %v3218_v60, %v3215_v59 }
  0x47   : > { %2419 = vmatmul.mubr.bf16.gmra.mrb[16].mxu0 %v888_v62  ;;  %2294 = vmatprep.mubr.msk.bf16.mxu1 %vm2824_vm0, %v2823_v1  ;;  %v2792_v62 = vld [vmem:[%s3483_s1 + $0x1c8] sm:$0xff]  }
  0x48   : > { %2438 = vmatprep.mubr.msk.bf16.mxu0 %vm2824_vm0, %v2823_v1  ;;  %1731 = vperm.xlu0 %2741, %v1703_v53   ;;  %v2813_v53 = vld [vmem:[%s3483_s1 + $0x230] sm:$0xff]  }
  0x49   : > { %1736 = vperm.xlu1 %2742, %v1704_v55   ;;  %v1371_v55 = vld [vmem:[%s2926_s24 + $0x55] sm:$0xff] }
  0x4c   : > { %1741 = vperm.xlu0 %2741, %v1705_v61   ;;  %v1533_v61 = vld [vmem:[%s2926_s24 + $0x4e] sm:$0xff] }
  0x4d   : > { %1746 = vperm.xlu1 %2742, %v1706_v63   ;;  %v1527_v63 = vld [vmem:[%s2926_s24 + $0x1e] sm:$0xff] }
  0x4e   : > { %2295 = vmatmul.mubr.bf16.vlgmr.msra.gmra.mrb[0].mxu1 %v253_v4  ;;  %v2794_v4 = vld [vmem:[%s3483_s1 + $0x1d0] sm:$0xff]  }
  0x4f   : > { %2439 = vmatmul.mubr.bf16.vlgmr.msra.gmra.mrb[0].mxu0 %v1047_v5  ;;  %2298 = vmatprep.mubr.msk.bf16.mxu1 %vm2824_vm0, %v2823_v1  ;;  %v2797_v5 = vld [vmem:[%s3483_s1 + $0xd0] sm:$0xff]  }
  0x50   : > { %2459 = vmatpush3.bf16.msra.mxu0 %v2775_v6  ;;  %2442 = vmatprep.mubr.msk.bf16.mxu0 %vm2824_vm0, %v2823_v1  ;;  %v3251_v6 = vld [vmem:[%s2926_s24 + $0x22] sm:$0xff] }
  0x51   : > { %2460 = vmatprep.subr.bf16.mxu0 %v2823_v1  ;;  %2315 = vmatpush3.bf16.msra.mxu1 %v2777_v8  ;;  %v1707_v8 = vld [vmem:[%s3484_s2 + $0x40] sm:$0xff]  ;;  %v560_v12 = vpack.c.bf16 %v3254_v7, %v3251_v6  ;;  %v722_v39 = vpack.c.bf16 %v3251_v6, %v3218_v60  ;;  %v1529_v6 = vld [vmem:[%s2926_s24 + $0x2e] sm:$0xff] }
  0x52   : > { %2316 = vmatprep.subr.bf16.mxu1 %v2823_v1  ;;  %1751 = vperm.xlu0 %2741, %v1707_v8   ;;  %v1532_v60 = vld [vmem:[%s2926_s24 + $0x46] sm:$0xff] }
  0x53   : > { %1756 = vperm.xlu1 %2742, %v1708_v10   ;;  %v1531_v10 = vld [vmem:[%s2926_s24 + $0x3e] sm:$0xff] }
  0x54   : > { %2461 = vmatpush3.bf16.msra.mxu0 %v2776_v9  ;;  %v2796_v9 = vld [vmem:[%s3483_s1 + $0x1d8] sm:$0xff]  }
  0x55   : > { %2462 = vmatprep.subr.bf16.mxu0 %v2823_v1  ;;  %2317 = vmatpush3.bf16.msra.mxu1 %v2779_v13  ;;  %v1212_v13 = vpack.c.bf16 %v3128_v31, %v3103_v21  ;;  %v1213_v21 = vpack.c.bf16 %v3158_v41, %v3133_v32  ;;  %v1363_v31 = vld [vmem:[%s2926_s24 + $0x15] sm:$0xff]  ;;  %v1364_v32 = vld [vmem:[%s2926_s24 + $0x1d] sm:$0xff] }
  0x56   : > { %2299 = vmatmul.mubr.bf16.gmra.mrb[4].mxu1 %v254_v14  ;;  %2318 = vmatprep.subr.bf16.mxu1 %v2823_v1  ;;  %v2799_v14 = vld [vmem:[%s3483_s1 + $0x1e0] sm:$0xff]   ;;  %v2809_v41 = vld [vmem:[%s3483_s1 + $0x210] sm:$0xff]  }
  0x57   : > { %2443 = vmatmul.mubr.bf16.gmra.mrb[4].mxu0 %v1048_v15  ;;  %2302 = vmatprep.mubr.msk.bf16.mxu1 %vm2824_vm0, %v2823_v1  ;;  %v2800_v15 = vld [vmem:[%s3483_s1 + $0xe0] sm:$0xff]  }
  0x58   : > { %2463 = vmatpush3.bf16.msra.mxu0 %v2778_v16  ;;  %2446 = vmatprep.mubr.msk.bf16.mxu0 %vm2824_vm0, %v2823_v1  ;;  %v3287_v16 = vld [vmem:[%s2926_s24 + $0x32] sm:$0xff] }
  0x59   : > { %2464 = vmatprep.subr.bf16.mxu0 %v2823_v1  ;;  %2319 = vmatpush3.bf16.msra.mxu1 %v2781_v17  ;;  %v3290_v17 = vld [vmem:[%s2926_s24 + $0x3a] sm:$0xff]  ;;  %v723_v45 = vpack.c.bf16 %v3287_v16, %v3254_v7 }
  0x5a   : > { %2320 = vmatprep.subr.bf16.mxu1 %v2823_v1  ;;  %v561_v20 = vpack.c.bf16 %v3290_v17, %v3287_v16 }
  0x5c   : > { %2465 = vmatpush3.bf16.msra.mxu0 %v2780_v22  ;;  %v2803_v22 = vld [vmem:[%s3483_s1 + $0x1f0] sm:$0xff]  }
  0x5d   : > { %2466 = vmatprep.subr.bf16.mxu0 %v2823_v1  ;;  %2321 = vmatpush3.bf16.msra.mxu1 %v2782_v23  ;;  %v2804_v23 = vld [vmem:[%s3483_s1 + $0xf0] sm:$0xff]  }
  0x5e   : > { %2303 = vmatmul.mubr.bf16.gmra.mrb[8].mxu1 %v255_v24  ;;  %2322 = vmatprep.subr.bf16.mxu1 %v2823_v1  ;;  %v3317_v24 = vld [vmem:[%s2926_s24 + $0x42] sm:$0xff] }
  0x5f   : > { %2447 = vmatmul.mubr.bf16.gmra.mrb[8].mxu0 %v1049_v26  ;;  %2306 = vmatprep.mubr.msk.bf16.mxu1 %vm2824_vm0, %v2823_v1  ;;  %v1209_v26 = vld [vmem:[%s2926_s24 + $0x5c] sm:$0xff]  ;;  %v562_v29 = vpack.c.bf16 %v3320_v25, %v3317_v24  ;;  %v724_v51 = vpack.c.bf16 %v3317_v24, %v3290_v17 }
  0x60   : > { %2467 = vmatpush3.bf16.msra.mxu0 %v2783_v27  ;;  %2450 = vmatprep.mubr.msk.bf16.mxu0 %vm2824_vm0, %v2823_v1  ;;  %v2805_v27 = vld [vmem:[%s3483_s1 + $0x1f8] sm:$0xff]   ;;  %v1214_v30 = vpack.c.bf16 %v1209_v26, %v3166_v43 }
  0x61   : > { %2323 = vmatpush3.bf16.msra.mxu1 %v2784_v28  ;;  %2468 = vmatprep.subr.bf16.mxu0 %v2823_v1  ;;  %v2806_v28 = vld [vmem:[%s3483_s1 + $0xf8] sm:$0xff]  }
  0x62   : > { %2324 = vmatprep.subr.bf16.mxu1 %v2823_v1  ;;  %v1368_v43 = vld [vmem:[%s2926_s24 + $0x3d] sm:$0xff] }
  0x64   : > { %2469 = vmatpush3.bf16.msra.mxu0 %v2785_v33  ;;  %v721_v33 = vpack.c.bf16 %v3215_v59, %v3193_v52 }
  0x65   : > { %2325 = vmatpush3.bf16.msra.mxu1 %v2786_v34  ;;  %2470 = vmatprep.subr.bf16.mxu0 %v2823_v1  ;;  %v1373_v34 = vpack.c.bf16 %v1364_v32, %v1363_v31 }
  0x66   : > { %2307 = vmatmul.mubr.bf16.gmra.mrb[12].mxu1 %v256_v35  ;;  %2326 = vmatprep.subr.bf16.mxu1 %v2823_v1  ;;  %v2807_v35 = vld [vmem:[%s3483_s1 + $0x200] sm:$0xff]  }
  0x67   : > { %2451 = vmatmul.mubr.bf16.gmra.mrb[12].mxu0 %v1050_v36  ;;  %2310 = vmatprep.mubr.msk.bf16.mxu1 %vm2824_vm0, %v2823_v1  ;;  %v2808_v36 = vld [vmem:[%s3483_s1 + $0x208] sm:$0xff]  }
  0x68   : > { %2454 = vmatprep.mubr.msk.bf16.mxu0 %vm2824_vm0, %v2823_v1  ;;  %2471 = vmatpush3.bf16.msra.mxu0 %v2787_v37  ;;  %v1365_v37 = vld [vmem:[%s2926_s24 + $0x25] sm:$0xff] }
  0x69   : > { %2327 = vmatpush3.bf16.msra.mxu1 %v2788_v38  ;;  %2472 = vmatprep.subr.bf16.mxu0 %v2823_v1  ;;  %v1366_v38 = vld [vmem:[%s2926_s24 + $0x2d] sm:$0xff] }
  0x6a   : > { %2328 = vmatprep.subr.bf16.mxu1 %v2823_v1  ;;  %v1374_v40 = vpack.c.bf16 %v1366_v38, %v1365_v37 }
  0x6c   : > { %2473 = vmatpush3.bf16.msra.mxu0 %v2789_v44  ;;  %v2810_v44 = vld [vmem:[%s3483_s1 + $0x218] sm:$0xff]  }
  0x6d   : > { %2329 = vmatpush3.bf16.msra.mxu1 %v2790_v46  ;;  %2494 = vmatprep.subr.bf16.mxu0 %v2823_v1  ;;  %v1375_v46 = vpack.c.bf16 %v1368_v43, %v1367_v42 }
  0x6e   : > { %2311 = vmatmul.mubr.bf16.gmra.mrb[16].mxu1 %v257_v47  ;;  %2350 = vmatprep.subr.bf16.mxu1 %v2823_v1  ;;  %v2811_v47 = vld [vmem:[%s3483_s1 + $0x220] sm:$0xff]  }
  0x6f   : > { %2455 = vmatmul.mubr.bf16.gmra.mrb[16].mxu0 %v1051_v48  ;;  %2330 = vmatprep.mubr.msk.bf16.mxu1 %vm2824_vm0, %v2823_v1  ;;  %v1369_v48 = vld [vmem:[%s2926_s24 + $0x45] sm:$0xff] }
  0x70   : > { %2474 = vmatprep.mubr.msk.bf16.mxu0 %vm2824_vm0, %v2823_v1  ;;  %v1376_v52 = vpack.c.bf16 %v1370_v49, %v1369_v48 }
  0x76   : > { %2331 = vmatmul.mubr.bf16.vlgmr.msra.gmra.mrb[0].mxu1 %v558_v54  ;;  %v720_v54 = vld [vmem:[%s2926_s24 + $0x52] sm:$0xff] }
  0x77   : > { %2475 = vmatmul.mubr.bf16.vlgmr.msra.gmra.mrb[0].mxu0 %v1210_v56  ;;  %2334 = vmatprep.mubr.msk.bf16.mxu1 %vm2824_vm0, %v2823_v1  ;;  %v1372_v56 = vld [vmem:[%s2926_s24 + $0x5d] sm:$0xff] }
  0x78   : > { %2495 = vmatpush3.bf16.msra.mxu0 %v2791_v57  ;;  %2478 = vmatprep.mubr.msk.bf16.mxu0 %vm2824_vm0, %v2823_v1  ;;  %v2814_v57 = vld [vmem:[%s3483_s1 + $0x238] sm:$0xff]   ;;  %v1377_v59 = vpack.c.bf16 %v1372_v56, %v1371_v55 }
  0x79   : > { %2496 = vmatprep.subr.bf16.mxu0 %v2823_v1  ;;  %2351 = vmatpush3.bf16.msra.mxu1 %v2793_v58  ;;  %v725_v58 = vpack.c.bf16 %v720_v54, %v3320_v25 }
  0x7a   : > { %2352 = vmatprep.subr.bf16.mxu1 %v2823_v1 }
  0x7c   : > { %2497 = vmatpush3.bf16.msra.mxu0 %v2792_v62  ;;  %v1526_v62 = vld [vmem:[%s2926_s24 + $0x16] sm:$0xff] }
  0x7d   : > { %2498 = vmatprep.subr.bf16.mxu0 %v2823_v1  ;;  %2353 = vmatpush3.bf16.msra.mxu1 %v2795_v0  ;;  %v1539_v0 = vpack.c.bf16 %v1533_v61, %v1532_v60 }
  0x7e   : > { %2335 = vmatmul.mubr.bf16.gmra.mrb[4].mxu1 %v559_v2  ;;  %2354 = vmatprep.subr.bf16.mxu1 %v2823_v1  ;;  %v1536_v2 = vpack.c.bf16 %v1527_v63, %v1526_v62 }
  0x7f   : > { %2479 = vmatmul.mubr.bf16.gmra.mrb[4].mxu0 %v1211_v3  ;;  %2338 = vmatprep.mubr.msk.bf16.mxu1 %vm2824_vm0, %v2823_v1  ;;  %v1534_v3 = vld [vmem:[%s2926_s24 + $0x56] sm:$0xff] }
  0x80   : > { %2499 = vmatpush3.bf16.msra.mxu0 %v2794_v4  ;;  %2482 = vmatprep.mubr.msk.bf16.mxu0 %vm2824_vm0, %v2823_v1  ;;  %v1535_v4 = vld [vmem:[%s2926_s24 + $0x5e] sm:$0xff] }
  0x81   : > { %2500 = vmatprep.subr.bf16.mxu0 %v2823_v1  ;;  %2355 = vmatpush3.bf16.msra.mxu1 %v2797_v5  ;;  %v1528_v5 = vld [vmem:[%s2926_s24 + $0x26] sm:$0xff]  ;;  %v1540_v7 = vpack.c.bf16 %v1535_v4, %v1534_v3 }
  0x82   : > { %2356 = vmatprep.subr.bf16.mxu1 %v2823_v1  ;;  %v1537_v8 = vpack.c.bf16 %v1529_v6, %v1528_v5 }
  0x84   : > { %2501 = vmatpush3.bf16.msra.mxu0 %v2796_v9  ;;  %v1530_v9 = vld [vmem:[%s2926_s24 + $0x36] sm:$0xff]  ;;  %s2729_s24 = smul.u32 80, %s3489_s19 }
  0x85   : > { %2502 = vmatprep.subr.bf16.mxu0 %v2823_v1  ;;  %2357 = vmatpush3.bf16.msra.mxu1 %v2798_v11  ;;  %v1538_v11 = vpack.c.bf16 %v1531_v10, %v1530_v9 }
  0x86   : > { %2339 = vmatmul.mubr.bf16.gmra.mrb[8].mxu1 %v560_v12  ;;  %2358 = vmatprep.subr.bf16.mxu1 %v2823_v1  ;;  %s3446_s10 = scalar_lea.vmem %s3485_s3, %s2729_s24 }
  0x87   : > { %2483 = vmatmul.mubr.bf16.gmra.mrb[8].mxu0 %v1212_v13  ;;  %2342 = vmatprep.mubr.msk.bf16.mxu1 %vm2824_vm0, %v2823_v1 }
  0x88   : > { %2503 = vmatpush3.bf16.msra.mxu0 %v2799_v14  ;;  %2486 = vmatprep.mubr.msk.bf16.mxu0 %vm2824_vm0, %v2823_v1 }
  0x89   : > { %2359 = vmatpush3.bf16.msra.mxu1 %v2800_v15  ;;  %2504 = vmatprep.subr.bf16.mxu0 %v2823_v1 }
  0x8a   : > { %2360 = vmatprep.subr.bf16.mxu1 %v2823_v1 }
  0x8c   : > { %2505 = vmatpush3.bf16.msra.mxu0 %v2801_v18 }
  0x8d   : > { %2361 = vmatpush3.bf16.msra.mxu1 %v2802_v19  ;;  %2506 = vmatprep.subr.bf16.mxu0 %v2823_v1 }
  0x8e   : > { %2343 = vmatmul.mubr.bf16.gmra.mrb[12].mxu1 %v561_v20  ;;  %2362 = vmatprep.subr.bf16.mxu1 %v2823_v1 }
  0x8f   : > { %2487 = vmatmul.mubr.bf16.gmra.mrb[12].mxu0 %v1213_v21  ;;  %2346 = vmatprep.mubr.msk.bf16.mxu1 %vm2824_vm0, %v2823_v1 }
  0x90   : > { %2490 = vmatprep.mubr.msk.bf16.mxu0 %vm2824_vm0, %v2823_v1  ;;  %2507 = vmatpush3.bf16.msra.mxu0 %v2803_v22 }
  0x91   : > { %2363 = vmatpush3.bf16.msra.mxu1 %v2804_v23  ;;  %2508 = vmatprep.subr.bf16.mxu0 %v2823_v1 }
  0x92   : > { %2364 = vmatprep.subr.bf16.mxu1 %v2823_v1 }
  0x94   : > { %2509 = vmatpush3.bf16.msra.mxu0 %v2805_v27 }
  0x95   : > { %2365 = vmatpush3.bf16.msra.mxu1 %v2806_v28  ;;  %2530 = vmatprep.subr.bf16.mxu0 %v2823_v1 }
  0x96   : > { %2347 = vmatmul.mubr.bf16.gmra.mrb[16].mxu1 %v562_v29  ;;  %2566 = vmatprep.subr.bf16.mxu1 %v2823_v1 }
  0x97   : > { %2491 = vmatmul.mubr.bf16.gmra.mrb[16].mxu0 %v1214_v30  ;;  %2366 = vmatprep.mubr.msk.bf16.mxu1 %vm2824_vm0, %v2823_v1 }
  0x98   : > { %2510 = vmatprep.mubr.msk.bf16.mxu0 %vm2824_vm0, %v2823_v1 }
  0x9e   : > { %2367 = vmatmul.mubr.bf16.vlgmr.msra.gmra.mrb[0].mxu1 %v721_v33 }
  0x9f   : > { %2511 = vmatmul.mubr.bf16.vlgmr.msra.gmra.mrb[0].mxu0 %v1373_v34  ;;  %2370 = vmatprep.mubr.msk.bf16.mxu1 %vm2824_vm0, %v2823_v1 }
  0xa0   : > { %2531 = vmatpush3.bf16.msra.mxu0 %v2807_v35  ;;  %2514 = vmatprep.mubr.msk.bf16.mxu0 %vm2824_vm0, %v2823_v1 }
  0xa1   : > { %2532 = vmatprep.subr.bf16.mxu0 %v2823_v1  ;;  %2574 = vmatpush3.bf16.msra.mxu1 %v2807_v35 }
  0xa2   : > { %2567 = vmatprep.subr.bf16.mxu1 %v2823_v1 }
  0xa4   : > { %2533 = vmatpush3.bf16.msra.mxu0 %v2808_v36 }
  0xa5   : > { %2534 = vmatprep.subr.bf16.mxu0 %v2823_v1  ;;  %2575 = vmatpush3.bf16.msra.mxu1 %v2808_v36 }
  0xa6   : > { %2371 = vmatmul.mubr.bf16.gmra.mrb[4].mxu1 %v722_v39  ;;  %2568 = vmatprep.subr.bf16.mxu1 %v2823_v1 }
  0xa7   : > { %2515 = vmatmul.mubr.bf16.gmra.mrb[4].mxu0 %v1374_v40  ;;  %2374 = vmatprep.mubr.msk.bf16.mxu1 %vm2824_vm0, %v2823_v1 }
  0xa8   : > { %2535 = vmatpush3.bf16.msra.mxu0 %v2809_v41  ;;  %2518 = vmatprep.mubr.msk.bf16.mxu0 %vm2824_vm0, %v2823_v1 }
  0xa9   : > { %2536 = vmatprep.subr.bf16.mxu0 %v2823_v1  ;;  %2576 = vmatpush3.bf16.msra.mxu1 %v2809_v41 }
  0xaa   : > { %2569 = vmatprep.subr.bf16.mxu1 %v2823_v1 }
  0xac   : > { %2537 = vmatpush3.bf16.msra.mxu0 %v2810_v44 }
  0xad   : > { %2538 = vmatprep.subr.bf16.mxu0 %v2823_v1  ;;  %2577 = vmatpush3.bf16.msra.mxu1 %v2810_v44 }
  0xae   : > { %2375 = vmatmul.mubr.bf16.gmra.mrb[8].mxu1 %v723_v45  ;;  %2570 = vmatprep.subr.bf16.mxu1 %v2823_v1 }
  0xaf   : > { %2519 = vmatmul.mubr.bf16.gmra.mrb[8].mxu0 %v1375_v46  ;;  %2378 = vmatprep.mubr.msk.bf16.mxu1 %vm2824_vm0, %v2823_v1 }
  0xb0   : > { %2539 = vmatpush3.bf16.msra.mxu0 %v2811_v47  ;;  %2522 = vmatprep.mubr.msk.bf16.mxu0 %vm2824_vm0, %v2823_v1 }
  0xb1   : > { %2578 = vmatpush3.bf16.msra.mxu1 %v2811_v47  ;;  %2540 = vmatprep.subr.bf16.mxu0 %v2823_v1 }
  0xb2   : > { %2571 = vmatprep.subr.bf16.mxu1 %v2823_v1 }
  0xb4   : > { %2541 = vmatpush3.bf16.msra.mxu0 %v2812_v50 }
  0xb5   : > { %2579 = vmatpush3.bf16.msra.mxu1 %v2812_v50  ;;  %2542 = vmatprep.subr.bf16.mxu0 %v2823_v1 }
  0xb6   : > { %2379 = vmatmul.mubr.bf16.gmra.mrb[12].mxu1 %v724_v51  ;;  %2572 = vmatprep.subr.bf16.mxu1 %v2823_v1 }
  0xb7   : > { %2523 = vmatmul.mubr.bf16.gmra.mrb[12].mxu0 %v1376_v52  ;;  %2382 = vmatprep.mubr.msk.bf16.mxu1 %vm2824_vm0, %v2823_v1 }
  0xb8   : > { %2526 = vmatprep.mubr.msk.bf16.mxu0 %vm2824_vm0, %v2823_v1  ;;  %2543 = vmatpush3.bf16.msra.mxu0 %v2813_v53 }
  0xb9   : > { %2580 = vmatpush3.bf16.msra.mxu1 %v2813_v53  ;;  %2544 = vmatprep.subr.bf16.mxu0 %v2823_v1  ;;  %v1712_v43 = vpop.permute.xlu0 %1711 }
  0xba   : > { %2573 = vmatprep.subr.bf16.mxu1 %v2823_v1  ;;  %v1722_v44 = vpop.permute.xlu1 %1721 }
  0xbc   : > { %2545 = vmatpush3.bf16.msra.mxu0 %v2814_v57 }
  0xbd   : > { %2581 = vmatpush3.bf16.msra.mxu1 %v2814_v57 }
  0xbe   : > { %2383 = vmatmul.mubr.bf16.gmra.mrb[16].mxu1 %v725_v58 }
  0xbf   : > { %2527 = vmatmul.mubr.bf16.gmra.mrb[16].mxu0 %v1377_v59  ;;  %2558 = vmatprep.mubr.msk.bf16.mxu1 %vm2824_vm0, %v2823_v1 }
  0xc0   : > { %2546 = vmatprep.mubr.msk.bf16.mxu0 %vm2824_vm0, %v2823_v1 }
  0xc1   : > { %v1717_v58 = vpop.permute.xlu0 %1716 }
  0xc2   : > { %v1727_v60 = vpop.permute.xlu1 %1726 }
  0xc6   : > { %2559 = vmatmul.mubr.bf16.vlgmr.msra.gmra.mrb[20].mxu1 %v1539_v0 }
  0xc7   : > { %2547 = vmatmul.mubr.bf16.vlgmr.msra.gmra.mrb[0].mxu0 %v1536_v2  ;;  %2562 = vmatprep.mubr.msk.bf16.mxu1 %vm2824_vm0, %v2823_v1 }
  0xc8   : > { %2550 = vmatprep.mubr.msk.bf16.mxu0 %vm2824_vm0, %v2823_v1 }
  0xce   : > { %2563 = vmatmul.mubr.bf16.gmra.mrb[24].mxu1 %v1540_v7 }
  0xcf   : > { %2551 = vmatmul.mubr.bf16.gmra.mrb[4].mxu0 %v1537_v8 }
  0xd0   : > { %2554 = vmatprep.mubr.msk.bf16.mxu0 %vm2824_vm0, %v2823_v1 }
  0xd7   : > { %2555 = vmatmul.mubr.bf16.gmra.mrb[8].mxu0 %v1538_v11 }
 0x171   : > { %v825_v12 = vpop.f32.mrb[0].mxu1 }
 0x172   : > { %v2368_v13 = vpop.f32.mrb[1].mxu1 }
 0x173   : > { %v828_v14 = vpop.f32.mrb[2].mxu1 }
 0x174   : > { %v2369_v15 = vpop.f32.mrb[3].mxu1 }
 0x175   : > { %v1732_v15 = vpop.permute.xlu0 %1731 }
 0x179   : > { %v833_v16 = vpop.f32.mrb[4].mxu1 }
 0x17a   : > { %v2372_v17 = vpop.f32.mrb[5].mxu1 }
 0x17b   : > { %v3436_v18 = vpop.f32.mrb[6].mxu1 }
 0x17c   : > { %v2373_v19 = vpop.f32.mrb[7].mxu1 }
 0x181   : > { %v3438_v20 = vpop.f32.mrb[8].mxu1 }
 0x182   : > { %v2376_v21 = vpop.f32.mrb[9].mxu1 }
 0x183   : > { %v3440_v22 = vpop.f32.mrb[10].mxu1 }
 0x184   : > { %v2377_v23 = vpop.f32.mrb[11].mxu1 }
 0x185   : > { %v1737_v23 = vpop.permute.xlu1 %1736 }
 0x189   : > { %v849_v1 = vpop.f32.mrb[12].mxu1 }
 0x18a   : > { %v1501_v24 = vpop.f32.mrb[12].mxu0  ;;  %v2380_v25 = vpop.f32.mrb[13].mxu1 }
 0x18b   : > { %v2588_v26 = vadd.f32 %v1501_v24, %v849_v1  ;;  %v2524_v27 = vpop.f32.mrb[13].mxu0  ;;  %v852_v28 = vpop.f32.mrb[14].mxu1 }
 0x18c   : > { %v1504_v29 = vpop.f32.mrb[14].mxu0  ;;  %v2381_v30 = vpop.f32.mrb[15].mxu1 }
 0x18d   : > { %v2590_v31 = vadd.f32 %v1504_v29, %v852_v28  ;;  %v2525_v32 = vpop.f32.mrb[15].mxu0  ;;  %v1742_v29 = vpop.permute.xlu0 %1741 }
 0x191   : > { %v857_v33 = vpop.f32.mrb[16].mxu1 }
 0x192   : > { %v1509_v34 = vpop.f32.mrb[16].mxu0  ;;  %v2384_v35 = vpop.f32.mrb[17].mxu1 }
 0x193   : > { %v2592_v36 = vadd.f32 %v1509_v34, %v857_v33  ;;  %v2528_v37 = vpop.f32.mrb[17].mxu0  ;;  %v860_v38 = vpop.f32.mrb[18].mxu1 }
 0x194   : > { %v1512_v39 = vpop.f32.mrb[18].mxu0  ;;  %v2385_v40 = vpop.f32.mrb[19].mxu1 }
 0x195   : > { %v2594_v41 = vadd.f32 %v1512_v39, %v860_v38  ;;  %v2529_v42 = vpop.f32.mrb[19].mxu0  ;;  %v1747_v33 = vpop.permute.xlu1 %1746 }
 0x199   : > { %v1664_v45 = vpop.f32.mrb[20].mxu1  ;;  %v1757_v42 = vpop.permute.xlu1 %1756 }
 0x19a   : > { %v1640_v46 = vpop.f32.mrb[0].mxu0  ;;  %v3448_v47 = vadd.f32 %v2588_v26, %v1664_v45  ;;  %v2560_v48 = vpop.f32.mrb[21].mxu1 }
 0x19b   : > { %v2582_v49 = vadd.f32 %v1640_v46, %v825_v12  ;;  %v2548_v50 = vpop.f32.mrb[1].mxu0  ;;  %v1667_v51 = vpop.f32.mrb[22].mxu1 }
 0x19c   : > { %1695 = vst [vmem:[%s3446_s10 + $0x30] sm:$0xff] %v3448_v47  ;;  %v1643_v52 = vpop.f32.mrb[2].mxu0  ;;  %v3452_v53 = vadd.f32 %v2590_v31, %v1667_v51  ;;  %v2561_v54 = vpop.f32.mrb[23].mxu1  ;;  %v1765_v34 = vmul.f32 %v3448_v47, %v1742_v29 }
 0x19d   : > { %1689 = vst [vmem:[%s3446_s10] sm:$0xff] %v2582_v49  ;;  %v1759_v55 = vmul.f32 %v2582_v49, %v1712_v43  ;;  %v2583_v56 = vadd.f32 %v1643_v52, %v828_v14  ;;  %v2549_v57 = vpop.f32.mrb[3].mxu0 }
 0x19e   : > { %1696 = vst [vmem:[%s3446_s10 + $0x38] sm:$0xff] %v3452_v53  ;;  %v1766_v38 = vmul.f32 %v3452_v53, %v1747_v33  ;;  %v1791_v43 = vmul.f32 %v3448_v47, %v1765_v34 }
 0x19f   : > { %1690 = vst [vmem:[%s3446_s10 + $0x8] sm:$0xff] %v2583_v56  ;;  %v1760_v59 = vmul.f32 %v2583_v56, %v1717_v58  ;;  %v1785_v61 = vmul.f32 %v2582_v49, %v1759_v55 }
 0x1a0   : > { %v1792_v46 = vmul.f32 %v3452_v53, %v1766_v38 }
 0x1a1   : > { %v1769_v62 = vadd.f32 %v1760_v59, %v1759_v55  ;;  %v1786_v63 = vmul.f32 %v2583_v56, %v1760_v59  ;;  %v1672_v0 = vpop.f32.mrb[24].mxu1 }
 0x1a2   : > { %v1648_v2 = vpop.f32.mrb[4].mxu0  ;;  %v2593_v3 = vadd.f32 %v2592_v36, %v1672_v0  ;;  %v2564_v4 = vpop.f32.mrb[25].mxu1 }
 0x1a3   : > { %v1795_v5 = vadd.f32 %v1786_v63, %v1785_v61  ;;  %v2584_v6 = vadd.f32 %v1648_v2, %v833_v16  ;;  %v2552_v7 = vpop.f32.mrb[5].mxu0  ;;  %v1675_v8 = vpop.f32.mrb[26].mxu1 }
 0x1a4   : > { %1697 = vst [vmem:[%s3446_s10 + $0x40] sm:$0xff] %v2593_v3  ;;  %v1651_v9 = vpop.f32.mrb[6].mxu0  ;;  %v2595_v10 = vadd.f32 %v2594_v41, %v1675_v8  ;;  %v2565_v11 = vpop.f32.mrb[27].mxu1 }
 0x1a5   : > { %1691 = vst [vmem:[%s3446_s10 + $0x10] sm:$0xff] %v2584_v6  ;;  %v1761_v12 = vmul.f32 %v2584_v6, %v1722_v44  ;;  %v2585_v13 = vadd.f32 %v1651_v9, %v3436_v18  ;;  %v2553_v14 = vpop.f32.mrb[7].mxu0  ;;  %v1752_v41 = vpop.permute.xlu0 %1751 }
 0x1a6   : > { %1698 = vst [vmem:[%s3446_s10 + $0x48] sm:$0xff] %v2595_v10  ;;  %v1767_v44 = vmul.f32 %v2593_v3, %v1752_v41  ;;  %v1768_v48 = vmul.f32 %v2595_v10, %v1757_v42 }
 0x1a7   : > { %v1770_v17 = vadd.f32 %v1769_v62, %v1761_v12  ;;  %v1787_v19 = vmul.f32 %v2584_v6, %v1761_v12  ;;  %1692 = vst [vmem:[%s3446_s10 + $0x18] sm:$0xff] %v2585_v13  ;;  %v1762_v21 = vmul.f32 %v2585_v13, %v1727_v60 }
 0x1a8   : > { %v1793_v51 = vmul.f32 %v2593_v3, %v1767_v44  ;;  %v1794_v55 = vmul.f32 %v2595_v10, %v1768_v48 }
 0x1a9   : > { %v1796_v16 = vadd.f32 %v1795_v5, %v1787_v19  ;;  %v1771_v1 = vadd.f32 %v1770_v17, %v1762_v21  ;;  %v1788_v24 = vmul.f32 %v2585_v13, %v1762_v21 }
 0x1aa   : > { %v1656_v25 = vpop.f32.mrb[8].mxu0 }
 0x1ab   : > { %v1797_v26 = vadd.f32 %v1796_v16, %v1788_v24  ;;  %v2586_v27 = vadd.f32 %v1656_v25, %v3438_v20  ;;  %v2556_v28 = vpop.f32.mrb[9].mxu0 }
 0x1ac   : > { %v1659_v18 = vpop.f32.mrb[10].mxu0 }
 0x1ad   : > { %1693 = vst [vmem:[%s3446_s10 + $0x20] sm:$0xff] %v2586_v27  ;;  %v1763_v30 = vmul.f32 %v2586_v27, %v1732_v15  ;;  %v2587_v31 = vadd.f32 %v1659_v18, %v3440_v22  ;;  %v2557_v32 = vpop.f32.mrb[11].mxu0 }
 0x1af   : > { %v1772_v35 = vadd.f32 %v1771_v1, %v1763_v30  ;;  %v1789_v36 = vmul.f32 %v2586_v27, %v1763_v30  ;;  %1694 = vst [vmem:[%s3446_s10 + $0x28] sm:$0xff] %v2587_v31  ;;  %v1764_v37 = vmul.f32 %v2587_v31, %v1737_v23 }
 0x1b1   : > { %v1798_v39 = vadd.f32 %v1797_v26, %v1789_v36  ;;  %v1773_v40 = vadd.f32 %v1772_v35, %v1764_v37  ;;  %v1790_v20 = vmul.f32 %v2587_v31, %v1764_v37 }
 0x1b3   : > { %v1774_v45 = vadd.f32 %v1773_v40, %v1765_v34  ;;  %v1799_v22 = vadd.f32 %v1798_v39, %v1790_v20 }
 0x1b5   : > { %v1775_v49 = vadd.f32 %v1774_v45, %v1766_v38  ;;  %v1800_v50 = vadd.f32 %v1799_v22, %v1791_v43 }
 0x1b7   : > { %v1776_v52 = vadd.f32 %v1775_v49, %v1767_v44  ;;  %v1801_v54 = vadd.f32 %v1800_v50, %v1792_v46 }
 0x1b9   : > { %v1777_v56 = vadd.f32 %v1776_v52, %v1768_v48  ;;  %v1802_v57 = vadd.f32 %v1801_v54, %v1793_v51 }
 0x1bb   : > { %v1778_v58 = vrot.slane %v1777_v56, 4  ;;  %v1803_v59 = vadd.f32 %v1802_v57, %v1794_v55 }
 0x1bd   : > { %v1779_v60 = vadd.f32 %v1778_v58, %v1777_v56  ;;  %v1804_v47 = vrot.slane %v1803_v59, 4 }
 0x1bf   : > { %v1780_v61 = vrot.slane %v1779_v60, 2  ;;  %v1805_v62 = vadd.f32 %v1804_v47, %v1803_v59 }
 0x1c1   : > { %v1781_v63 = vadd.f32 %v1780_v61, %v1779_v60  ;;  %v1806_v0 = vrot.slane %v1805_v62, 2 }
 0x1c3   : > { %v1782_v53 = vrot.slane %v1781_v63, 1  ;;  %v1807_v2 = vadd.f32 %v1806_v0, %v1805_v62 }
 0x1c5   : > { %v1783_v3 = vadd.f32 %v1782_v53, %v1781_v63  ;;  %v1808_v4 = vrot.slane %v1807_v2, 1 }
 0x1c7   : > { %1784 = vst [vmem:[%s238_s13] sm:$0x1] %v1783_v3  ;;  %v1809_v5 = vadd.f32 %v1808_v4, %v1807_v2 }
 0x1c9   : > { %1810 = vst [vmem:[%s241_s16] sm:$0x1] %v1809_v5 }
 0x1ca PF: > { %s16_s18 = sadd.s32 1, %s2821_s18  }
 0x1cb   : > { %p13_p4 = scmp.ge.s32.totalorder %s16_s18, 4  }
 0x1cd   :  { %15 = sbr.rel (!%p13_p4) target bundleno = 1 (0x1), region = 94 }

</bundles_post_ra>
